<compile_context>
chip_gen: v6e
topology: v6e:2x2x1
jax: 0.10.0
libtpu: 0.0.40
codegen_flags: <defaults>
</compile_context>

<pallas_src>
import math

import jax
import jax.numpy as jnp
from jax.experimental import pallas as pl
from jax.experimental.pallas import tpu as pltpu

D = 512            # embed_dim (fixed by the module)
NUM_HEADS = 8
HEAD_DIM = D // NUM_HEADS
LN_EPS = 1e-5      # PyTorch nn.LayerNorm default
MATMUL_DTYPE = jnp.bfloat16   # MXU-native operand dtype on all TPU generations


def _layernorm(v, gamma, beta):
    mu = jnp.mean(v, axis=-1, keepdims=True)
    c = v - mu
    var = jnp.mean(c * c, axis=-1, keepdims=True)
    return c * jax.lax.rsqrt(var + LN_EPS) * gamma + beta


def _gelu_exact(x):
    # PyTorch nn.GELU() default is the exact (erf) formulation.
    return 0.5 * x * (1.0 + jax.lax.erf(x * (1.0 / math.sqrt(2.0))))


def encoder_layer_kernel(
    x_ref,
    ln1g_ref, ln1b_ref,
    wqkv_ref, bqkv_ref,
    wo_ref, bo_ref,
    ln2g_ref, ln2b_ref,
    w1_ref, b1_ref, w2_ref, b2_ref,
    o_ref,
):
    TB, S, _ = x_ref.shape
    M = TB * S

    # Flatten the TB sequences into one row block: all dense matmuls see M rows.
    x = x_ref[...].reshape(M, D)                               # (M, D) f32

    # ---- LayerNorm 1 (f32) ----
    h = _layernorm(x, ln1g_ref[...], ln1b_ref[...])

    # ---- Fused Q/K/V projection: one (M, D) x (D, 3D) bf16 matmul, f32 accum ----
    qkv = jnp.dot(h.astype(MATMUL_DTYPE), wqkv_ref[...],
                  preferred_element_type=jnp.float32) + bqkv_ref[...]
    q = qkv[:, 0:D]            # lane-aligned (512-multiple) slices
    k = qkv[:, D:2 * D]
    v = qkv[:, 2 * D:3 * D]

    # ---- Multi-head self attention, batched over the TB sequences ----
    scale = 1.0 / math.sqrt(HEAD_DIM)
    head_outs = []
    for hd in range(NUM_HEADS):
        lo = hd * HEAD_DIM
        hi = lo + HEAD_DIM
        qh = q[:, lo:hi].reshape(TB, S, HEAD_DIM).astype(MATMUL_DTYPE)
        kh = k[:, lo:hi].reshape(TB, S, HEAD_DIM).astype(MATMUL_DTYPE)
        vh = v[:, lo:hi].reshape(TB, S, HEAD_DIM).astype(MATMUL_DTYPE)

        s = jnp.einsum("bqd,bkd->bqk", qh, kh,
                       preferred_element_type=jnp.float32) * scale   # (TB, S, S)
        s = s - jnp.max(s, axis=-1, keepdims=True)
        p = jnp.exp(s)
        p = p * pl.reciprocal(jnp.sum(p, axis=-1, keepdims=True), approx=True)
        head_outs.append(
            jnp.einsum("bqk,bkd->bqd", p.astype(MATMUL_DTYPE), vh,
                       preferred_element_type=jnp.float32))          # (TB, S, Dh)

    attn = jnp.concatenate(head_outs, axis=-1).reshape(M, D)          # (M, D) f32
    attn = jnp.dot(attn.astype(MATMUL_DTYPE), wo_ref[...],
                   preferred_element_type=jnp.float32) + bo_ref[...]

    # ---- residual 1 ----
    x1 = x + attn

    # ---- LayerNorm 2 + feed forward ----
    h2 = _layernorm(x1, ln2g_ref[...], ln2b_ref[...])
    f = jnp.dot(h2.astype(MATMUL_DTYPE), w1_ref[...],
                preferred_element_type=jnp.float32) + b1_ref[...]
    f = _gelu_exact(f)
    f = jnp.dot(f.astype(MATMUL_DTYPE), w2_ref[...],
                preferred_element_type=jnp.float32) + b2_ref[...]

    # ---- residual 2 ----
    o_ref[...] = (x1 + f).reshape(TB, S, D)


def _choose_block_batch(B, S, target_rows=256):
    """Pick TB so TB*S approaches `target_rows` MXU rows, keeping >=2 grid steps
    when possible (v7x megacore) and requiring TB to divide B."""
    tb = max(1, min(B, max(1, target_rows // max(S, 1))))
    while tb > 1 and (B // tb) < 2:
        tb -= 1
    while tb > 1 and (B % tb) != 0:
        tb -= 1
    return tb


def transformer_encoder_layer(x, params, *, target_rows=256):
    """x: (B, S, D) float32. params: dict of f32 weights with (in, out) layout."""
    B, S, Dx = x.shape
    assert Dx == D
    TB = _choose_block_batch(B, S, target_rows)

    # Fuse Q/K/V weights -> (D, 3D); cast all weight matrices to bf16 (halves
    # DMA + VMEM; MXU-native).  Biases / LN params stay f32.
    wqkv = jnp.concatenate(
        [params["wq"], params["wk"], params["wv"]], axis=1).astype(MATMUL_DTYPE)
    bqkv = jnp.concatenate([params["bq"], params["bk"], params["bv"]], axis=1)

    x_spec = pl.BlockSpec((TB, S, D), lambda b: (b, 0, 0))
    wqkv_spec = pl.BlockSpec((D, 3 * D), lambda b: (0, 0))
    bqkv_spec = pl.BlockSpec((1, 3 * D), lambda b: (0, 0))
    mat_spec = pl.BlockSpec((D, D), lambda b: (0, 0))
    vec_spec = pl.BlockSpec((1, D), lambda b: (0, 0))

    in_specs = [
        x_spec,
        vec_spec, vec_spec,                 # ln1 gamma, beta
        wqkv_spec, bqkv_spec,               # fused qkv weight / bias
        mat_spec, vec_spec,                 # wo, bo
        vec_spec, vec_spec,                 # ln2 gamma, beta
        mat_spec, vec_spec,                 # w1, b1
        mat_spec, vec_spec,                 # w2, b2
    ]

    return pl.pallas_call(
        encoder_layer_kernel,
        out_shape=jax.ShapeDtypeStruct((B, S, D), jnp.float32),
        grid_spec=pltpu.PrefetchScalarGridSpec(
            num_scalar_prefetch=0,
            grid=(B // TB,),
            in_specs=in_specs,
            out_specs=x_spec,
        ),
        compiler_params=pltpu.CompilerParams(
            dimension_semantics=("parallel",),
            vmem_limit_bytes=48 << 20,      # leave headroom on v7x's 64 MiB VMEM
        ),
    )(
        x,
        params["ln1_g"], params["ln1_b"],
        wqkv, bqkv,
        params["wo"].astype(MATMUL_DTYPE), params["bo"],
        params["ln2_g"], params["ln2_b"],
        params["w1"].astype(MATMUL_DTYPE), params["b1"],
        params["w2"].astype(MATMUL_DTYPE), params["b2"],
    )


def reference(x, params, *, matmul_dtype=jnp.float32):
    """Pure-JAX reference of the same forward pass.
    matmul_dtype=bf16 mirrors the kernel's operand precision (f32 accumulation)."""
    def ln(v, g, b):
        mu = jnp.mean(v, axis=-1, keepdims=True)
        var = jnp.mean((v - mu) ** 2, axis=-1, keepdims=True)
        return (v - mu) / jnp.sqrt(var + LN_EPS) * g + b

    def mm(a, w):
        return jnp.dot(a.astype(matmul_dtype), w.astype(matmul_dtype),
                       preferred_element_type=jnp.float32)

    x_old = x
    h = ln(x, params["ln1_g"], params["ln1_b"])
    q = mm(h, params["wq"]) + params["bq"]
    k = mm(h, params["wk"]) + params["bk"]
    v = mm(h, params["wv"]) + params["bv"]
    B, S, _ = x.shape
    q = q.reshape(B, S, NUM_HEADS, HEAD_DIM).transpose(0, 2, 1, 3)
    k = k.reshape(B, S, NUM_HEADS, HEAD_DIM).transpose(0, 2, 1, 3)
    v = v.reshape(B, S, NUM_HEADS, HEAD_DIM).transpose(0, 2, 1, 3)
    s = jnp.einsum("bhqd,bhkd->bhqk",
                   q.astype(matmul_dtype), k.astype(matmul_dtype),
                   preferred_element_type=jnp.float32) / math.sqrt(HEAD_DIM)
    p = jax.nn.softmax(s, axis=-1)
    attn = jnp.einsum("bhqk,bhkd->bhqd",
                      p.astype(matmul_dtype), v.astype(matmul_dtype),
                      preferred_element_type=jnp.float32)
    attn = attn.transpose(0, 2, 1, 3).reshape(B, S, D)
    attn = mm(attn, params["wo"]) + params["bo"]
    x = x_old + attn
    x_old = x
    h2 = ln(x, params["ln2_g"], params["ln2_b"])
    f = mm(h2, params["w1"]) + params["b1"]
    f = 0.5 * f * (1.0 + jax.lax.erf(f / math.sqrt(2.0)))
    f = mm(f, params["w2"]) + params["b2"]
    return x_old + f


def init_params(key):
    """Deterministic synthetic parameters (shapes match the PyTorch module).
    Weight matrices are stored transposed to (in, out) so the kernel computes x @ W."""
    ks = jax.random.split(key, 8)
    std = 0.02

    def mat(k):
        return jax.random.normal(k, (D, D), jnp.float32) * std

    return {
        "ln1_g": jnp.ones((1, D), jnp.float32),
        "ln1_b": jnp.zeros((1, D), jnp.float32),
        "wq": mat(ks[0]), "bq": jnp.zeros((1, D), jnp.float32),
        "wk": mat(ks[1]), "bk": jnp.zeros((1, D), jnp.float32),
        "wv": mat(ks[2]), "bv": jnp.zeros((1, D), jnp.float32),
        "wo": mat(ks[3]), "bo": jnp.zeros((1, D), jnp.float32),
        "ln2_g": jnp.ones((1, D), jnp.float32),
        "ln2_b": jnp.zeros((1, D), jnp.float32),
        "w1": mat(ks[4]),
        "b1": jax.random.normal(ks[5], (1, D), jnp.float32) * std,
        "w2": mat(ks[6]),
        "b2": jax.random.normal(ks[7], (1, D), jnp.float32) * std,
    }


if __name__ == "__main__":
    key = jax.random.PRNGKey(0)
    kp, kx = jax.random.split(key)
    params = init_params(kp)

    B, S = 2, 8
    x = jax.random.normal(kx, (B, S, D), jnp.float32)

    out = jax.block_until_ready(transformer_encoder_layer(x, params))
    assert out.shape == (B, S, D)

    # Precision-matched reference (bf16 matmul operands, f32 accumulation).
    ref_bf16 = jax.block_until_ready(reference(x, params, matmul_dtype=MATMUL_DTYPE))
    assert jnp.allclose(out, ref_bf16, atol=2e-2, rtol=2e-2), (
        f"max abs diff vs bf16 reference: {jnp.max(jnp.abs(out - ref_bf16))}")

    # Full-f32 reference of the module semantics (loose tol: kernel uses bf16 MXU operands).
    ref_f32 = jax.block_until_ready(reference(x, params, matmul_dtype=jnp.float32))
    assert jnp.allclose(out, ref_f32, atol=1e-1, rtol=1e-1), (
        f"max abs diff vs f32 reference: {jnp.max(jnp.abs(out - ref_f32))}")

    print("KERNEL_OK")
</pallas_src>

<mosaic_0001>
module attributes {stable_mosaic.version = 11 : i64} {
  func.func @encoder_layer_kernel(%arg0: i32, %arg1: memref<1x8x512xf32, #tpu.memory_space<vmem>>, %arg2: memref<1x512xf32, #tpu.memory_space<vmem>>, %arg3: memref<1x512xf32, #tpu.memory_space<vmem>>, %arg4: memref<512x1536xbf16, #tpu.memory_space<vmem>>, %arg5: memref<1x1536xf32, #tpu.memory_space<vmem>>, %arg6: memref<512x512xbf16, #tpu.memory_space<vmem>>, %arg7: memref<1x512xf32, #tpu.memory_space<vmem>>, %arg8: memref<1x512xf32, #tpu.memory_space<vmem>>, %arg9: memref<1x512xf32, #tpu.memory_space<vmem>>, %arg10: memref<512x512xbf16, #tpu.memory_space<vmem>>, %arg11: memref<1x512xf32, #tpu.memory_space<vmem>>, %arg12: memref<512x512xbf16, #tpu.memory_space<vmem>>, %arg13: memref<1x512xf32, #tpu.memory_space<vmem>>, %arg14: memref<1x8x512xf32, #tpu.memory_space<vmem>>) attributes {dimension_semantics = [#tpu.dimension_semantics<parallel>], iteration_bounds = array<i64: 2>, scalar_prefetch = 0 : i64, scratch_operands = 0 : i64, tpu.core_type = #tpu.core_type<tc>, window_params = [{transform_indices = @transform_0, window_bounds = array<i64: 1, 8, 512>}, {pipeline_mode = #tpu.pipeline_mode<synchronous>, transform_indices = @transform_1, window_bounds = array<i64: 1, 512>}, {pipeline_mode = #tpu.pipeline_mode<synchronous>, transform_indices = @transform_2, window_bounds = array<i64: 1, 512>}, {pipeline_mode = #tpu.pipeline_mode<synchronous>, transform_indices = @transform_3, window_bounds = array<i64: 512, 1536>}, {pipeline_mode = #tpu.pipeline_mode<synchronous>, transform_indices = @transform_4, window_bounds = array<i64: 1, 1536>}, {pipeline_mode = #tpu.pipeline_mode<synchronous>, transform_indices = @transform_5, window_bounds = array<i64: 512, 512>}, {pipeline_mode = #tpu.pipeline_mode<synchronous>, transform_indices = @transform_6, window_bounds = array<i64: 1, 512>}, {pipeline_mode = #tpu.pipeline_mode<synchronous>, transform_indices = @transform_7, window_bounds = array<i64: 1, 512>}, {pipeline_mode = #tpu.pipeline_mode<synchronous>, transform_indices = @transform_8, window_bounds = array<i64: 1, 512>}, {pipeline_mode = #tpu.pipeline_mode<synchronous>, transform_indices = @transform_9, window_bounds = array<i64: 512, 512>}, {pipeline_mode = #tpu.pipeline_mode<synchronous>, transform_indices = @transform_10, window_bounds = array<i64: 1, 512>}, {pipeline_mode = #tpu.pipeline_mode<synchronous>, transform_indices = @transform_11, window_bounds = array<i64: 512, 512>}, {pipeline_mode = #tpu.pipeline_mode<synchronous>, transform_indices = @transform_12, window_bounds = array<i64: 1, 512>}, {transform_indices = @transform_13, window_bounds = array<i64: 1, 8, 512>}]} {
    %c0 = arith.constant 0 : index
    %c0_0 = arith.constant 0 : index
    %c0_1 = arith.constant 0 : index
    %0 = vector.load %arg1[%c0, %c0_0, %c0_1] : memref<1x8x512xf32, #tpu.memory_space<vmem>>, vector<1x8x512xf32>
    %1 = vector.shape_cast %0 : vector<1x8x512xf32> to vector<8x512xf32>
    %c0_2 = arith.constant 0 : index
    %c0_3 = arith.constant 0 : index
    %2 = vector.load %arg2[%c0_2, %c0_3] : memref<1x512xf32, #tpu.memory_space<vmem>>, vector<1x512xf32>
    %c0_4 = arith.constant 0 : index
    %c0_5 = arith.constant 0 : index
    %3 = vector.load %arg3[%c0_4, %c0_5] : memref<1x512xf32, #tpu.memory_space<vmem>>, vector<1x512xf32>
    %cst = arith.constant dense<0.000000e+00> : vector<8xf32>
    %4 = vector.multi_reduction <add>, %1, %cst [1] : vector<8x512xf32> to vector<8xf32>
    %5 = vector.shape_cast %4 : vector<8xf32> to vector<8x1xf32>
    %cst_6 = arith.constant 5.120000e+02 : f32
    %6 = vector.broadcast %cst_6 : f32 to vector<8x1xf32>
    %7 = arith.divf %5, %6 : vector<8x1xf32>
    %8 = vector.broadcast %7 : vector<8x1xf32> to vector<8x512xf32>
    %9 = arith.subf %1, %8 : vector<8x512xf32>
    %10 = arith.mulf %9, %9 : vector<8x512xf32>
    %cst_7 = arith.constant dense<0.000000e+00> : vector<8xf32>
    %11 = vector.multi_reduction <add>, %10, %cst_7 [1] : vector<8x512xf32> to vector<8xf32>
    %12 = vector.shape_cast %11 : vector<8xf32> to vector<8x1xf32>
    %cst_8 = arith.constant 5.120000e+02 : f32
    %13 = vector.broadcast %cst_8 : f32 to vector<8x1xf32>
    %14 = arith.divf %12, %13 : vector<8x1xf32>
    %cst_9 = arith.constant 9.99999974E-6 : f32
    %15 = vector.broadcast %cst_9 : f32 to vector<8x1xf32>
    %16 = arith.addf %14, %15 : vector<8x1xf32>
    %17 = math.rsqrt %16 : vector<8x1xf32>
    %18 = vector.broadcast %17 : vector<8x1xf32> to vector<8x512xf32>
    %19 = arith.mulf %9, %18 : vector<8x512xf32>
    %20 = vector.broadcast %2 : vector<1x512xf32> to vector<8x512xf32>
    %21 = arith.mulf %19, %20 : vector<8x512xf32>
    %22 = vector.broadcast %3 : vector<1x512xf32> to vector<8x512xf32>
    %23 = arith.addf %21, %22 : vector<8x512xf32>
    %24 = arith.truncf %23 : vector<8x512xf32> to vector<8x512xbf16>
    %c0_10 = arith.constant 0 : index
    %c0_11 = arith.constant 0 : index
    %25 = vector.load %arg4[%c0_10, %c0_11] : memref<512x1536xbf16, #tpu.memory_space<vmem>>, vector<512x1536xbf16>
    %cst_12 = arith.constant dense<0.000000e+00> : vector<8x1536xf32>
    %26 = tpu.matmul %24, %25, %cst_12 {dimension_numbers = #tpu.dot_dimension_numbers<[1], [0], [0], [1], [0, 0, 1, 1], [], []>} : vector<8x512xbf16>, vector<512x1536xbf16>, vector<8x1536xf32> -> vector<8x1536xf32>
    %c0_13 = arith.constant 0 : index
    %c0_14 = arith.constant 0 : index
    %27 = vector.load %arg5[%c0_13, %c0_14] : memref<1x1536xf32, #tpu.memory_space<vmem>>, vector<1x1536xf32>
    %28 = vector.broadcast %27 : vector<1x1536xf32> to vector<8x1536xf32>
    %29 = arith.addf %26, %28 : vector<8x1536xf32>
    %30 = vector.extract_strided_slice %29 {offsets = [0, 0], sizes = [8, 512], strides = [1, 1]} : vector<8x1536xf32> to vector<8x512xf32>
    %31 = vector.extract_strided_slice %29 {offsets = [0, 512], sizes = [8, 512], strides = [1, 1]} : vector<8x1536xf32> to vector<8x512xf32>
    %32 = vector.extract_strided_slice %29 {offsets = [0, 1024], sizes = [8, 512], strides = [1, 1]} : vector<8x1536xf32> to vector<8x512xf32>
    %33 = vector.extract_strided_slice %30 {offsets = [0, 0], sizes = [8, 64], strides = [1, 1]} : vector<8x512xf32> to vector<8x64xf32>
    %34 = vector.shape_cast %33 : vector<8x64xf32> to vector<1x8x64xf32>
    %35 = arith.truncf %34 : vector<1x8x64xf32> to vector<1x8x64xbf16>
    %36 = vector.extract_strided_slice %31 {offsets = [0, 0], sizes = [8, 64], strides = [1, 1]} : vector<8x512xf32> to vector<8x64xf32>
    %37 = vector.shape_cast %36 : vector<8x64xf32> to vector<1x8x64xf32>
    %38 = arith.truncf %37 : vector<1x8x64xf32> to vector<1x8x64xbf16>
    %39 = vector.extract_strided_slice %32 {offsets = [0, 0], sizes = [8, 64], strides = [1, 1]} : vector<8x512xf32> to vector<8x64xf32>
    %40 = vector.shape_cast %39 : vector<8x64xf32> to vector<1x8x64xf32>
    %41 = arith.truncf %40 : vector<1x8x64xf32> to vector<1x8x64xbf16>
    "tpu.trace_start"() <{level = 10 : i32, message = "bqd,bkd->bqk"}> : () -> ()
    %cst_15 = arith.constant dense<0.000000e+00> : vector<1x8x8xf32>
    %42 = tpu.matmul %35, %38, %cst_15 {dimension_numbers = #tpu.dot_dimension_numbers<[2], [2], [1], [1], [0, 0, 0, 1, 1, 1], [0], [0]>} : vector<1x8x64xbf16>, vector<1x8x64xbf16>, vector<1x8x8xf32> -> vector<1x8x8xf32>
    "tpu.trace_stop"() : () -> ()
    %cst_16 = arith.constant 1.250000e-01 : f32
    %43 = vector.broadcast %cst_16 : f32 to vector<1x8x8xf32>
    %44 = arith.mulf %42, %43 : vector<1x8x8xf32>
    %cst_17 = arith.constant dense<0xFF800000> : vector<1x8xf32>
    %45 = vector.multi_reduction <maximumf>, %44, %cst_17 [2] : vector<1x8x8xf32> to vector<1x8xf32>
    %46 = vector.shape_cast %45 : vector<1x8xf32> to vector<1x8x1xf32>
    %47 = vector.broadcast %46 : vector<1x8x1xf32> to vector<1x8x8xf32>
    %48 = arith.subf %44, %47 : vector<1x8x8xf32>
    %49 = math.exp %48 : vector<1x8x8xf32>
    %cst_18 = arith.constant dense<0.000000e+00> : vector<1x8xf32>
    %50 = vector.multi_reduction <add>, %49, %cst_18 [2] : vector<1x8x8xf32> to vector<1x8xf32>
    %51 = vector.shape_cast %50 : vector<1x8xf32> to vector<1x8x1xf32>
    %52 = tpu.reciprocal %51 {approx = true} : vector<1x8x1xf32> -> vector<1x8x1xf32>
    %53 = vector.broadcast %52 : vector<1x8x1xf32> to vector<1x8x8xf32>
    %54 = arith.mulf %49, %53 : vector<1x8x8xf32>
    %55 = arith.truncf %54 : vector<1x8x8xf32> to vector<1x8x8xbf16>
    "tpu.trace_start"() <{level = 10 : i32, message = "bqk,bkd->bqd"}> : () -> ()
    %cst_19 = arith.constant dense<0.000000e+00> : vector<1x8x64xf32>
    %56 = tpu.matmul %55, %41, %cst_19 {dimension_numbers = #tpu.dot_dimension_numbers<[2], [1], [1], [2], [0, 0, 0, 1, 1, 2], [0], [0]>} : vector<1x8x8xbf16>, vector<1x8x64xbf16>, vector<1x8x64xf32> -> vector<1x8x64xf32>
    "tpu.trace_stop"() : () -> ()
    %57 = vector.extract_strided_slice %30 {offsets = [0, 64], sizes = [8, 64], strides = [1, 1]} : vector<8x512xf32> to vector<8x64xf32>
    %58 = vector.shape_cast %57 : vector<8x64xf32> to vector<1x8x64xf32>
    %59 = arith.truncf %58 : vector<1x8x64xf32> to vector<1x8x64xbf16>
    %60 = vector.extract_strided_slice %31 {offsets = [0, 64], sizes = [8, 64], strides = [1, 1]} : vector<8x512xf32> to vector<8x64xf32>
    %61 = vector.shape_cast %60 : vector<8x64xf32> to vector<1x8x64xf32>
    %62 = arith.truncf %61 : vector<1x8x64xf32> to vector<1x8x64xbf16>
    %63 = vector.extract_strided_slice %32 {offsets = [0, 64], sizes = [8, 64], strides = [1, 1]} : vector<8x512xf32> to vector<8x64xf32>
    %64 = vector.shape_cast %63 : vector<8x64xf32> to vector<1x8x64xf32>
    %65 = arith.truncf %64 : vector<1x8x64xf32> to vector<1x8x64xbf16>
    "tpu.trace_start"() <{level = 10 : i32, message = "bqd,bkd->bqk"}> : () -> ()
    %cst_20 = arith.constant dense<0.000000e+00> : vector<1x8x8xf32>
    %66 = tpu.matmul %59, %62, %cst_20 {dimension_numbers = #tpu.dot_dimension_numbers<[2], [2], [1], [1], [0, 0, 0, 1, 1, 1], [0], [0]>} : vector<1x8x64xbf16>, vector<1x8x64xbf16>, vector<1x8x8xf32> -> vector<1x8x8xf32>
    "tpu.trace_stop"() : () -> ()
    %cst_21 = arith.constant 1.250000e-01 : f32
    %67 = vector.broadcast %cst_21 : f32 to vector<1x8x8xf32>
    %68 = arith.mulf %66, %67 : vector<1x8x8xf32>
    %cst_22 = arith.constant dense<0xFF800000> : vector<1x8xf32>
    %69 = vector.multi_reduction <maximumf>, %68, %cst_22 [2] : vector<1x8x8xf32> to vector<1x8xf32>
    %70 = vector.shape_cast %69 : vector<1x8xf32> to vector<1x8x1xf32>
    %71 = vector.broadcast %70 : vector<1x8x1xf32> to vector<1x8x8xf32>
    %72 = arith.subf %68, %71 : vector<1x8x8xf32>
    %73 = math.exp %72 : vector<1x8x8xf32>
    %cst_23 = arith.constant dense<0.000000e+00> : vector<1x8xf32>
    %74 = vector.multi_reduction <add>, %73, %cst_23 [2] : vector<1x8x8xf32> to vector<1x8xf32>
    %75 = vector.shape_cast %74 : vector<1x8xf32> to vector<1x8x1xf32>
    %76 = tpu.reciprocal %75 {approx = true} : vector<1x8x1xf32> -> vector<1x8x1xf32>
    %77 = vector.broadcast %76 : vector<1x8x1xf32> to vector<1x8x8xf32>
    %78 = arith.mulf %73, %77 : vector<1x8x8xf32>
    %79 = arith.truncf %78 : vector<1x8x8xf32> to vector<1x8x8xbf16>
    "tpu.trace_start"() <{level = 10 : i32, message = "bqk,bkd->bqd"}> : () -> ()
    %cst_24 = arith.constant dense<0.000000e+00> : vector<1x8x64xf32>
    %80 = tpu.matmul %79, %65, %cst_24 {dimension_numbers = #tpu.dot_dimension_numbers<[2], [1], [1], [2], [0, 0, 0, 1, 1, 2], [0], [0]>} : vector<1x8x8xbf16>, vector<1x8x64xbf16>, vector<1x8x64xf32> -> vector<1x8x64xf32>
    "tpu.trace_stop"() : () -> ()
    %81 = vector.extract_strided_slice %30 {offsets = [0, 128], sizes = [8, 64], strides = [1, 1]} : vector<8x512xf32> to vector<8x64xf32>
    %82 = vector.shape_cast %81 : vector<8x64xf32> to vector<1x8x64xf32>
    %83 = arith.truncf %82 : vector<1x8x64xf32> to vector<1x8x64xbf16>
    %84 = vector.extract_strided_slice %31 {offsets = [0, 128], sizes = [8, 64], strides = [1, 1]} : vector<8x512xf32> to vector<8x64xf32>
    %85 = vector.shape_cast %84 : vector<8x64xf32> to vector<1x8x64xf32>
    %86 = arith.truncf %85 : vector<1x8x64xf32> to vector<1x8x64xbf16>
    %87 = vector.extract_strided_slice %32 {offsets = [0, 128], sizes = [8, 64], strides = [1, 1]} : vector<8x512xf32> to vector<8x64xf32>
    %88 = vector.shape_cast %87 : vector<8x64xf32> to vector<1x8x64xf32>
    %89 = arith.truncf %88 : vector<1x8x64xf32> to vector<1x8x64xbf16>
    "tpu.trace_start"() <{level = 10 : i32, message = "bqd,bkd->bqk"}> : () -> ()
    %cst_25 = arith.constant dense<0.000000e+00> : vector<1x8x8xf32>
    %90 = tpu.matmul %83, %86, %cst_25 {dimension_numbers = #tpu.dot_dimension_numbers<[2], [2], [1], [1], [0, 0, 0, 1, 1, 1], [0], [0]>} : vector<1x8x64xbf16>, vector<1x8x64xbf16>, vector<1x8x8xf32> -> vector<1x8x8xf32>
    "tpu.trace_stop"() : () -> ()
    %cst_26 = arith.constant 1.250000e-01 : f32
    %91 = vector.broadcast %cst_26 : f32 to vector<1x8x8xf32>
    %92 = arith.mulf %90, %91 : vector<1x8x8xf32>
    %cst_27 = arith.constant dense<0xFF800000> : vector<1x8xf32>
    %93 = vector.multi_reduction <maximumf>, %92, %cst_27 [2] : vector<1x8x8xf32> to vector<1x8xf32>
    %94 = vector.shape_cast %93 : vector<1x8xf32> to vector<1x8x1xf32>
    %95 = vector.broadcast %94 : vector<1x8x1xf32> to vector<1x8x8xf32>
    %96 = arith.subf %92, %95 : vector<1x8x8xf32>
    %97 = math.exp %96 : vector<1x8x8xf32>
    %cst_28 = arith.constant dense<0.000000e+00> : vector<1x8xf32>
    %98 = vector.multi_reduction <add>, %97, %cst_28 [2] : vector<1x8x8xf32> to vector<1x8xf32>
    %99 = vector.shape_cast %98 : vector<1x8xf32> to vector<1x8x1xf32>
    %100 = tpu.reciprocal %99 {approx = true} : vector<1x8x1xf32> -> vector<1x8x1xf32>
    %101 = vector.broadcast %100 : vector<1x8x1xf32> to vector<1x8x8xf32>
    %102 = arith.mulf %97, %101 : vector<1x8x8xf32>
    %103 = arith.truncf %102 : vector<1x8x8xf32> to vector<1x8x8xbf16>
    "tpu.trace_start"() <{level = 10 : i32, message = "bqk,bkd->bqd"}> : () -> ()
    %cst_29 = arith.constant dense<0.000000e+00> : vector<1x8x64xf32>
    %104 = tpu.matmul %103, %89, %cst_29 {dimension_numbers = #tpu.dot_dimension_numbers<[2], [1], [1], [2], [0, 0, 0, 1, 1, 2], [0], [0]>} : vector<1x8x8xbf16>, vector<1x8x64xbf16>, vector<1x8x64xf32> -> vector<1x8x64xf32>
    "tpu.trace_stop"() : () -> ()
    %105 = vector.extract_strided_slice %30 {offsets = [0, 192], sizes = [8, 64], strides = [1, 1]} : vector<8x512xf32> to vector<8x64xf32>
    %106 = vector.shape_cast %105 : vector<8x64xf32> to vector<1x8x64xf32>
    %107 = arith.truncf %106 : vector<1x8x64xf32> to vector<1x8x64xbf16>
    %108 = vector.extract_strided_slice %31 {offsets = [0, 192], sizes = [8, 64], strides = [1, 1]} : vector<8x512xf32> to vector<8x64xf32>
    %109 = vector.shape_cast %108 : vector<8x64xf32> to vector<1x8x64xf32>
    %110 = arith.truncf %109 : vector<1x8x64xf32> to vector<1x8x64xbf16>
    %111 = vector.extract_strided_slice %32 {offsets = [0, 192], sizes = [8, 64], strides = [1, 1]} : vector<8x512xf32> to vector<8x64xf32>
    %112 = vector.shape_cast %111 : vector<8x64xf32> to vector<1x8x64xf32>
    %113 = arith.truncf %112 : vector<1x8x64xf32> to vector<1x8x64xbf16>
    "tpu.trace_start"() <{level = 10 : i32, message = "bqd,bkd->bqk"}> : () -> ()
    %cst_30 = arith.constant dense<0.000000e+00> : vector<1x8x8xf32>
    %114 = tpu.matmul %107, %110, %cst_30 {dimension_numbers = #tpu.dot_dimension_numbers<[2], [2], [1], [1], [0, 0, 0, 1, 1, 1], [0], [0]>} : vector<1x8x64xbf16>, vector<1x8x64xbf16>, vector<1x8x8xf32> -> vector<1x8x8xf32>
    "tpu.trace_stop"() : () -> ()
    %cst_31 = arith.constant 1.250000e-01 : f32
    %115 = vector.broadcast %cst_31 : f32 to vector<1x8x8xf32>
    %116 = arith.mulf %114, %115 : vector<1x8x8xf32>
    %cst_32 = arith.constant dense<0xFF800000> : vector<1x8xf32>
    %117 = vector.multi_reduction <maximumf>, %116, %cst_32 [2] : vector<1x8x8xf32> to vector<1x8xf32>
    %118 = vector.shape_cast %117 : vector<1x8xf32> to vector<1x8x1xf32>
    %119 = vector.broadcast %118 : vector<1x8x1xf32> to vector<1x8x8xf32>
    %120 = arith.subf %116, %119 : vector<1x8x8xf32>
    %121 = math.exp %120 : vector<1x8x8xf32>
    %cst_33 = arith.constant dense<0.000000e+00> : vector<1x8xf32>
    %122 = vector.multi_reduction <add>, %121, %cst_33 [2] : vector<1x8x8xf32> to vector<1x8xf32>
    %123 = vector.shape_cast %122 : vector<1x8xf32> to vector<1x8x1xf32>
    %124 = tpu.reciprocal %123 {approx = true} : vector<1x8x1xf32> -> vector<1x8x1xf32>
    %125 = vector.broadcast %124 : vector<1x8x1xf32> to vector<1x8x8xf32>
    %126 = arith.mulf %121, %125 : vector<1x8x8xf32>
    %127 = arith.truncf %126 : vector<1x8x8xf32> to vector<1x8x8xbf16>
    "tpu.trace_start"() <{level = 10 : i32, message = "bqk,bkd->bqd"}> : () -> ()
    %cst_34 = arith.constant dense<0.000000e+00> : vector<1x8x64xf32>
    %128 = tpu.matmul %127, %113, %cst_34 {dimension_numbers = #tpu.dot_dimension_numbers<[2], [1], [1], [2], [0, 0, 0, 1, 1, 2], [0], [0]>} : vector<1x8x8xbf16>, vector<1x8x64xbf16>, vector<1x8x64xf32> -> vector<1x8x64xf32>
    "tpu.trace_stop"() : () -> ()
    %129 = vector.extract_strided_slice %30 {offsets = [0, 256], sizes = [8, 64], strides = [1, 1]} : vector<8x512xf32> to vector<8x64xf32>
    %130 = vector.shape_cast %129 : vector<8x64xf32> to vector<1x8x64xf32>
    %131 = arith.truncf %130 : vector<1x8x64xf32> to vector<1x8x64xbf16>
    %132 = vector.extract_strided_slice %31 {offsets = [0, 256], sizes = [8, 64], strides = [1, 1]} : vector<8x512xf32> to vector<8x64xf32>
    %133 = vector.shape_cast %132 : vector<8x64xf32> to vector<1x8x64xf32>
    %134 = arith.truncf %133 : vector<1x8x64xf32> to vector<1x8x64xbf16>
    %135 = vector.extract_strided_slice %32 {offsets = [0, 256], sizes = [8, 64], strides = [1, 1]} : vector<8x512xf32> to vector<8x64xf32>
    %136 = vector.shape_cast %135 : vector<8x64xf32> to vector<1x8x64xf32>
    %137 = arith.truncf %136 : vector<1x8x64xf32> to vector<1x8x64xbf16>
    "tpu.trace_start"() <{level = 10 : i32, message = "bqd,bkd->bqk"}> : () -> ()
    %cst_35 = arith.constant dense<0.000000e+00> : vector<1x8x8xf32>
    %138 = tpu.matmul %131, %134, %cst_35 {dimension_numbers = #tpu.dot_dimension_numbers<[2], [2], [1], [1], [0, 0, 0, 1, 1, 1], [0], [0]>} : vector<1x8x64xbf16>, vector<1x8x64xbf16>, vector<1x8x8xf32> -> vector<1x8x8xf32>
    "tpu.trace_stop"() : () -> ()
    %cst_36 = arith.constant 1.250000e-01 : f32
    %139 = vector.broadcast %cst_36 : f32 to vector<1x8x8xf32>
    %140 = arith.mulf %138, %139 : vector<1x8x8xf32>
    %cst_37 = arith.constant dense<0xFF800000> : vector<1x8xf32>
    %141 = vector.multi_reduction <maximumf>, %140, %cst_37 [2] : vector<1x8x8xf32> to vector<1x8xf32>
    %142 = vector.shape_cast %141 : vector<1x8xf32> to vector<1x8x1xf32>
    %143 = vector.broadcast %142 : vector<1x8x1xf32> to vector<1x8x8xf32>
    %144 = arith.subf %140, %143 : vector<1x8x8xf32>
    %145 = math.exp %144 : vector<1x8x8xf32>
    %cst_38 = arith.constant dense<0.000000e+00> : vector<1x8xf32>
    %146 = vector.multi_reduction <add>, %145, %cst_38 [2] : vector<1x8x8xf32> to vector<1x8xf32>
    %147 = vector.shape_cast %146 : vector<1x8xf32> to vector<1x8x1xf32>
    %148 = tpu.reciprocal %147 {approx = true} : vector<1x8x1xf32> -> vector<1x8x1xf32>
    %149 = vector.broadcast %148 : vector<1x8x1xf32> to vector<1x8x8xf32>
    %150 = arith.mulf %145, %149 : vector<1x8x8xf32>
    %151 = arith.truncf %150 : vector<1x8x8xf32> to vector<1x8x8xbf16>
    "tpu.trace_start"() <{level = 10 : i32, message = "bqk,bkd->bqd"}> : () -> ()
    %cst_39 = arith.constant dense<0.000000e+00> : vector<1x8x64xf32>
    %152 = tpu.matmul %151, %137, %cst_39 {dimension_numbers = #tpu.dot_dimension_numbers<[2], [1], [1], [2], [0, 0, 0, 1, 1, 2], [0], [0]>} : vector<1x8x8xbf16>, vector<1x8x64xbf16>, vector<1x8x64xf32> -> vector<1x8x64xf32>
    "tpu.trace_stop"() : () -> ()
    %153 = vector.extract_strided_slice %30 {offsets = [0, 320], sizes = [8, 64], strides = [1, 1]} : vector<8x512xf32> to vector<8x64xf32>
    %154 = vector.shape_cast %153 : vector<8x64xf32> to vector<1x8x64xf32>
    %155 = arith.truncf %154 : vector<1x8x64xf32> to vector<1x8x64xbf16>
    %156 = vector.extract_strided_slice %31 {offsets = [0, 320], sizes = [8, 64], strides = [1, 1]} : vector<8x512xf32> to vector<8x64xf32>
    %157 = vector.shape_cast %156 : vector<8x64xf32> to vector<1x8x64xf32>
    %158 = arith.truncf %157 : vector<1x8x64xf32> to vector<1x8x64xbf16>
    %159 = vector.extract_strided_slice %32 {offsets = [0, 320], sizes = [8, 64], strides = [1, 1]} : vector<8x512xf32> to vector<8x64xf32>
    %160 = vector.shape_cast %159 : vector<8x64xf32> to vector<1x8x64xf32>
    %161 = arith.truncf %160 : vector<1x8x64xf32> to vector<1x8x64xbf16>
    "tpu.trace_start"() <{level = 10 : i32, message = "bqd,bkd->bqk"}> : () -> ()
    %cst_40 = arith.constant dense<0.000000e+00> : vector<1x8x8xf32>
    %162 = tpu.matmul %155, %158, %cst_40 {dimension_numbers = #tpu.dot_dimension_numbers<[2], [2], [1], [1], [0, 0, 0, 1, 1, 1], [0], [0]>} : vector<1x8x64xbf16>, vector<1x8x64xbf16>, vector<1x8x8xf32> -> vector<1x8x8xf32>
    "tpu.trace_stop"() : () -> ()
    %cst_41 = arith.constant 1.250000e-01 : f32
    %163 = vector.broadcast %cst_41 : f32 to vector<1x8x8xf32>
    %164 = arith.mulf %162, %163 : vector<1x8x8xf32>
    %cst_42 = arith.constant dense<0xFF800000> : vector<1x8xf32>
    %165 = vector.multi_reduction <maximumf>, %164, %cst_42 [2] : vector<1x8x8xf32> to vector<1x8xf32>
    %166 = vector.shape_cast %165 : vector<1x8xf32> to vector<1x8x1xf32>
    %167 = vector.broadcast %166 : vector<1x8x1xf32> to vector<1x8x8xf32>
    %168 = arith.subf %164, %167 : vector<1x8x8xf32>
    %169 = math.exp %168 : vector<1x8x8xf32>
    %cst_43 = arith.constant dense<0.000000e+00> : vector<1x8xf32>
    %170 = vector.multi_reduction <add>, %169, %cst_43 [2] : vector<1x8x8xf32> to vector<1x8xf32>
    %171 = vector.shape_cast %170 : vector<1x8xf32> to vector<1x8x1xf32>
    %172 = tpu.reciprocal %171 {approx = true} : vector<1x8x1xf32> -> vector<1x8x1xf32>
    %173 = vector.broadcast %172 : vector<1x8x1xf32> to vector<1x8x8xf32>
    %174 = arith.mulf %169, %173 : vector<1x8x8xf32>
    %175 = arith.truncf %174 : vector<1x8x8xf32> to vector<1x8x8xbf16>
    "tpu.trace_start"() <{level = 10 : i32, message = "bqk,bkd->bqd"}> : () -> ()
    %cst_44 = arith.constant dense<0.000000e+00> : vector<1x8x64xf32>
    %176 = tpu.matmul %175, %161, %cst_44 {dimension_numbers = #tpu.dot_dimension_numbers<[2], [1], [1], [2], [0, 0, 0, 1, 1, 2], [0], [0]>} : vector<1x8x8xbf16>, vector<1x8x64xbf16>, vector<1x8x64xf32> -> vector<1x8x64xf32>
    "tpu.trace_stop"() : () -> ()
    %177 = vector.extract_strided_slice %30 {offsets = [0, 384], sizes = [8, 64], strides = [1, 1]} : vector<8x512xf32> to vector<8x64xf32>
    %178 = vector.shape_cast %177 : vector<8x64xf32> to vector<1x8x64xf32>
    %179 = arith.truncf %178 : vector<1x8x64xf32> to vector<1x8x64xbf16>
    %180 = vector.extract_strided_slice %31 {offsets = [0, 384], sizes = [8, 64], strides = [1, 1]} : vector<8x512xf32> to vector<8x64xf32>
    %181 = vector.shape_cast %180 : vector<8x64xf32> to vector<1x8x64xf32>
    %182 = arith.truncf %181 : vector<1x8x64xf32> to vector<1x8x64xbf16>
    %183 = vector.extract_strided_slice %32 {offsets = [0, 384], sizes = [8, 64], strides = [1, 1]} : vector<8x512xf32> to vector<8x64xf32>
    %184 = vector.shape_cast %183 : vector<8x64xf32> to vector<1x8x64xf32>
    %185 = arith.truncf %184 : vector<1x8x64xf32> to vector<1x8x64xbf16>
    "tpu.trace_start"() <{level = 10 : i32, message = "bqd,bkd->bqk"}> : () -> ()
    %cst_45 = arith.constant dense<0.000000e+00> : vector<1x8x8xf32>
    %186 = tpu.matmul %179, %182, %cst_45 {dimension_numbers = #tpu.dot_dimension_numbers<[2], [2], [1], [1], [0, 0, 0, 1, 1, 1], [0], [0]>} : vector<1x8x64xbf16>, vector<1x8x64xbf16>, vector<1x8x8xf32> -> vector<1x8x8xf32>
    "tpu.trace_stop"() : () -> ()
    %cst_46 = arith.constant 1.250000e-01 : f32
    %187 = vector.broadcast %cst_46 : f32 to vector<1x8x8xf32>
    %188 = arith.mulf %186, %187 : vector<1x8x8xf32>
    %cst_47 = arith.constant dense<0xFF800000> : vector<1x8xf32>
    %189 = vector.multi_reduction <maximumf>, %188, %cst_47 [2] : vector<1x8x8xf32> to vector<1x8xf32>
    %190 = vector.shape_cast %189 : vector<1x8xf32> to vector<1x8x1xf32>
    %191 = vector.broadcast %190 : vector<1x8x1xf32> to vector<1x8x8xf32>
    %192 = arith.subf %188, %191 : vector<1x8x8xf32>
    %193 = math.exp %192 : vector<1x8x8xf32>
    %cst_48 = arith.constant dense<0.000000e+00> : vector<1x8xf32>
    %194 = vector.multi_reduction <add>, %193, %cst_48 [2] : vector<1x8x8xf32> to vector<1x8xf32>
    %195 = vector.shape_cast %194 : vector<1x8xf32> to vector<1x8x1xf32>
    %196 = tpu.reciprocal %195 {approx = true} : vector<1x8x1xf32> -> vector<1x8x1xf32>
    %197 = vector.broadcast %196 : vector<1x8x1xf32> to vector<1x8x8xf32>
    %198 = arith.mulf %193, %197 : vector<1x8x8xf32>
    %199 = arith.truncf %198 : vector<1x8x8xf32> to vector<1x8x8xbf16>
    "tpu.trace_start"() <{level = 10 : i32, message = "bqk,bkd->bqd"}> : () -> ()
    %cst_49 = arith.constant dense<0.000000e+00> : vector<1x8x64xf32>
    %200 = tpu.matmul %199, %185, %cst_49 {dimension_numbers = #tpu.dot_dimension_numbers<[2], [1], [1], [2], [0, 0, 0, 1, 1, 2], [0], [0]>} : vector<1x8x8xbf16>, vector<1x8x64xbf16>, vector<1x8x64xf32> -> vector<1x8x64xf32>
    "tpu.trace_stop"() : () -> ()
    %201 = vector.extract_strided_slice %30 {offsets = [0, 448], sizes = [8, 64], strides = [1, 1]} : vector<8x512xf32> to vector<8x64xf32>
    %202 = vector.shape_cast %201 : vector<8x64xf32> to vector<1x8x64xf32>
    %203 = arith.truncf %202 : vector<1x8x64xf32> to vector<1x8x64xbf16>
    %204 = vector.extract_strided_slice %31 {offsets = [0, 448], sizes = [8, 64], strides = [1, 1]} : vector<8x512xf32> to vector<8x64xf32>
    %205 = vector.shape_cast %204 : vector<8x64xf32> to vector<1x8x64xf32>
    %206 = arith.truncf %205 : vector<1x8x64xf32> to vector<1x8x64xbf16>
    %207 = vector.extract_strided_slice %32 {offsets = [0, 448], sizes = [8, 64], strides = [1, 1]} : vector<8x512xf32> to vector<8x64xf32>
    %208 = vector.shape_cast %207 : vector<8x64xf32> to vector<1x8x64xf32>
    %209 = arith.truncf %208 : vector<1x8x64xf32> to vector<1x8x64xbf16>
    "tpu.trace_start"() <{level = 10 : i32, message = "bqd,bkd->bqk"}> : () -> ()
    %cst_50 = arith.constant dense<0.000000e+00> : vector<1x8x8xf32>
    %210 = tpu.matmul %203, %206, %cst_50 {dimension_numbers = #tpu.dot_dimension_numbers<[2], [2], [1], [1], [0, 0, 0, 1, 1, 1], [0], [0]>} : vector<1x8x64xbf16>, vector<1x8x64xbf16>, vector<1x8x8xf32> -> vector<1x8x8xf32>
    "tpu.trace_stop"() : () -> ()
    %cst_51 = arith.constant 1.250000e-01 : f32
    %211 = vector.broadcast %cst_51 : f32 to vector<1x8x8xf32>
    %212 = arith.mulf %210, %211 : vector<1x8x8xf32>
    %cst_52 = arith.constant dense<0xFF800000> : vector<1x8xf32>
    %213 = vector.multi_reduction <maximumf>, %212, %cst_52 [2] : vector<1x8x8xf32> to vector<1x8xf32>
    %214 = vector.shape_cast %213 : vector<1x8xf32> to vector<1x8x1xf32>
    %215 = vector.broadcast %214 : vector<1x8x1xf32> to vector<1x8x8xf32>
    %216 = arith.subf %212, %215 : vector<1x8x8xf32>
    %217 = math.exp %216 : vector<1x8x8xf32>
    %cst_53 = arith.constant dense<0.000000e+00> : vector<1x8xf32>
    %218 = vector.multi_reduction <add>, %217, %cst_53 [2] : vector<1x8x8xf32> to vector<1x8xf32>
    %219 = vector.shape_cast %218 : vector<1x8xf32> to vector<1x8x1xf32>
    %220 = tpu.reciprocal %219 {approx = true} : vector<1x8x1xf32> -> vector<1x8x1xf32>
    %221 = vector.broadcast %220 : vector<1x8x1xf32> to vector<1x8x8xf32>
    %222 = arith.mulf %217, %221 : vector<1x8x8xf32>
    %223 = arith.truncf %222 : vector<1x8x8xf32> to vector<1x8x8xbf16>
    "tpu.trace_start"() <{level = 10 : i32, message = "bqk,bkd->bqd"}> : () -> ()
    %cst_54 = arith.constant dense<0.000000e+00> : vector<1x8x64xf32>
    %224 = tpu.matmul %223, %209, %cst_54 {dimension_numbers = #tpu.dot_dimension_numbers<[2], [1], [1], [2], [0, 0, 0, 1, 1, 2], [0], [0]>} : vector<1x8x8xbf16>, vector<1x8x64xbf16>, vector<1x8x64xf32> -> vector<1x8x64xf32>
    "tpu.trace_stop"() : () -> ()
    %225 = tpu.concatenate %56, %80, %104, %128, %152, %176, %200, %224 in 2 : vector<1x8x64xf32>, vector<1x8x64xf32>, vector<1x8x64xf32>, vector<1x8x64xf32>, vector<1x8x64xf32>, vector<1x8x64xf32>, vector<1x8x64xf32>, vector<1x8x64xf32> -> vector<1x8x512xf32>
    %226 = vector.shape_cast %225 : vector<1x8x512xf32> to vector<8x512xf32>
    %227 = arith.truncf %226 : vector<8x512xf32> to vector<8x512xbf16>
    %c0_55 = arith.constant 0 : index
    %c0_56 = arith.constant 0 : index
    %228 = vector.load %arg6[%c0_55, %c0_56] : memref<512x512xbf16, #tpu.memory_space<vmem>>, vector<512x512xbf16>
    %cst_57 = arith.constant dense<0.000000e+00> : vector<8x512xf32>
    %229 = tpu.matmul %227, %228, %cst_57 {dimension_numbers = #tpu.dot_dimension_numbers<[1], [0], [0], [1], [0, 0, 1, 1], [], []>} : vector<8x512xbf16>, vector<512x512xbf16>, vector<8x512xf32> -> vector<8x512xf32>
    %c0_58 = arith.constant 0 : index
    %c0_59 = arith.constant 0 : index
    %230 = vector.load %arg7[%c0_58, %c0_59] : memref<1x512xf32, #tpu.memory_space<vmem>>, vector<1x512xf32>
    %231 = vector.broadcast %230 : vector<1x512xf32> to vector<8x512xf32>
    %232 = arith.addf %229, %231 : vector<8x512xf32>
    %233 = arith.addf %1, %232 : vector<8x512xf32>
    %c0_60 = arith.constant 0 : index
    %c0_61 = arith.constant 0 : index
    %234 = vector.load %arg8[%c0_60, %c0_61] : memref<1x512xf32, #tpu.memory_space<vmem>>, vector<1x512xf32>
    %c0_62 = arith.constant 0 : index
    %c0_63 = arith.constant 0 : index
    %235 = vector.load %arg9[%c0_62, %c0_63] : memref<1x512xf32, #tpu.memory_space<vmem>>, vector<1x512xf32>
    %cst_64 = arith.constant dense<0.000000e+00> : vector<8xf32>
    %236 = vector.multi_reduction <add>, %233, %cst_64 [1] : vector<8x512xf32> to vector<8xf32>
    %237 = vector.shape_cast %236 : vector<8xf32> to vector<8x1xf32>
    %cst_65 = arith.constant 5.120000e+02 : f32
    %238 = vector.broadcast %cst_65 : f32 to vector<8x1xf32>
    %239 = arith.divf %237, %238 : vector<8x1xf32>
    %240 = vector.broadcast %239 : vector<8x1xf32> to vector<8x512xf32>
    %241 = arith.subf %233, %240 : vector<8x512xf32>
    %242 = arith.mulf %241, %241 : vector<8x512xf32>
    %cst_66 = arith.constant dense<0.000000e+00> : vector<8xf32>
    %243 = vector.multi_reduction <add>, %242, %cst_66 [1] : vector<8x512xf32> to vector<8xf32>
    %244 = vector.shape_cast %243 : vector<8xf32> to vector<8x1xf32>
    %cst_67 = arith.constant 5.120000e+02 : f32
    %245 = vector.broadcast %cst_67 : f32 to vector<8x1xf32>
    %246 = arith.divf %244, %245 : vector<8x1xf32>
    %cst_68 = arith.constant 9.99999974E-6 : f32
    %247 = vector.broadcast %cst_68 : f32 to vector<8x1xf32>
    %248 = arith.addf %246, %247 : vector<8x1xf32>
    %249 = math.rsqrt %248 : vector<8x1xf32>
    %250 = vector.broadcast %249 : vector<8x1xf32> to vector<8x512xf32>
    %251 = arith.mulf %241, %250 : vector<8x512xf32>
    %252 = vector.broadcast %234 : vector<1x512xf32> to vector<8x512xf32>
    %253 = arith.mulf %251, %252 : vector<8x512xf32>
    %254 = vector.broadcast %235 : vector<1x512xf32> to vector<8x512xf32>
    %255 = arith.addf %253, %254 : vector<8x512xf32>
    %256 = arith.truncf %255 : vector<8x512xf32> to vector<8x512xbf16>
    %c0_69 = arith.constant 0 : index
    %c0_70 = arith.constant 0 : index
    %257 = vector.load %arg10[%c0_69, %c0_70] : memref<512x512xbf16, #tpu.memory_space<vmem>>, vector<512x512xbf16>
    %cst_71 = arith.constant dense<0.000000e+00> : vector<8x512xf32>
    %258 = tpu.matmul %256, %257, %cst_71 {dimension_numbers = #tpu.dot_dimension_numbers<[1], [0], [0], [1], [0, 0, 1, 1], [], []>} : vector<8x512xbf16>, vector<512x512xbf16>, vector<8x512xf32> -> vector<8x512xf32>
    %c0_72 = arith.constant 0 : index
    %c0_73 = arith.constant 0 : index
    %259 = vector.load %arg11[%c0_72, %c0_73] : memref<1x512xf32, #tpu.memory_space<vmem>>, vector<1x512xf32>
    %260 = vector.broadcast %259 : vector<1x512xf32> to vector<8x512xf32>
    %261 = arith.addf %258, %260 : vector<8x512xf32>
    %cst_74 = arith.constant 5.000000e-01 : f32
    %262 = vector.broadcast %cst_74 : f32 to vector<8x512xf32>
    %263 = arith.mulf %262, %261 : vector<8x512xf32>
    %cst_75 = arith.constant 0.707106769 : f32
    %264 = vector.broadcast %cst_75 : f32 to vector<8x512xf32>
    %265 = arith.mulf %261, %264 : vector<8x512xf32>
    %266 = math.erf %265 : vector<8x512xf32>
    %cst_76 = arith.constant 1.000000e+00 : f32
    %267 = vector.broadcast %cst_76 : f32 to vector<8x512xf32>
    %268 = arith.addf %267, %266 : vector<8x512xf32>
    %269 = arith.mulf %263, %268 : vector<8x512xf32>
    %270 = arith.truncf %269 : vector<8x512xf32> to vector<8x512xbf16>
    %c0_77 = arith.constant 0 : index
    %c0_78 = arith.constant 0 : index
    %271 = vector.load %arg12[%c0_77, %c0_78] : memref<512x512xbf16, #tpu.memory_space<vmem>>, vector<512x512xbf16>
    %cst_79 = arith.constant dense<0.000000e+00> : vector<8x512xf32>
    %272 = tpu.matmul %270, %271, %cst_79 {dimension_numbers = #tpu.dot_dimension_numbers<[1], [0], [0], [1], [0, 0, 1, 1], [], []>} : vector<8x512xbf16>, vector<512x512xbf16>, vector<8x512xf32> -> vector<8x512xf32>
    %c0_80 = arith.constant 0 : index
    %c0_81 = arith.constant 0 : index
    %273 = vector.load %arg13[%c0_80, %c0_81] : memref<1x512xf32, #tpu.memory_space<vmem>>, vector<1x512xf32>
    %274 = vector.broadcast %273 : vector<1x512xf32> to vector<8x512xf32>
    %275 = arith.addf %272, %274 : vector<8x512xf32>
    %276 = arith.addf %233, %275 : vector<8x512xf32>
    %277 = vector.shape_cast %276 : vector<8x512xf32> to vector<1x8x512xf32>
    %c0_82 = arith.constant 0 : index
    %c0_83 = arith.constant 0 : index
    %c0_84 = arith.constant 0 : index
    %278 = vector.load %arg14[%c0_82, %c0_83, %c0_84] : memref<1x8x512xf32, #tpu.memory_space<vmem>>, vector<1x8x512xf32>
    tpu.vector_store %arg14[%c0_82, %c0_83, %c0_84], %277 {strides = array<i32>} : memref<1x8x512xf32, #tpu.memory_space<vmem>>, vector<1x8x512xf32>,
    return
  }
  func.func @transform_0(%arg0: i32) -> (i32, i32, i32) {
    %c0_i32 = arith.constant 0 : i32
    %c0_i32_0 = arith.constant 0 : i32
    %c0_i32_1 = arith.constant 0 : i32
    return %arg0, %c0_i32, %c0_i32_0 : i32, i32, i32
  }
  func.func @transform_1(%arg0: i32) -> (i32, i32) {
    %c0_i32 = arith.constant 0 : i32
    %c0_i32_0 = arith.constant 0 : i32
    %c0_i32_1 = arith.constant 0 : i32
    return %c0_i32, %c0_i32_0 : i32, i32
  }
  func.func @transform_2(%arg0: i32) -> (i32, i32) {
    %c0_i32 = arith.constant 0 : i32
    %c0_i32_0 = arith.constant 0 : i32
    %c0_i32_1 = arith.constant 0 : i32
    return %c0_i32, %c0_i32_0 : i32, i32
  }
  func.func @transform_3(%arg0: i32) -> (i32, i32) {
    %c0_i32 = arith.constant 0 : i32
    %c0_i32_0 = arith.constant 0 : i32
    %c0_i32_1 = arith.constant 0 : i32
    return %c0_i32, %c0_i32_0 : i32, i32
  }
  func.func @transform_4(%arg0: i32) -> (i32, i32) {
    %c0_i32 = arith.constant 0 : i32
    %c0_i32_0 = arith.constant 0 : i32
    %c0_i32_1 = arith.constant 0 : i32
    return %c0_i32, %c0_i32_0 : i32, i32
  }
  func.func @transform_5(%arg0: i32) -> (i32, i32) {
    %c0_i32 = arith.constant 0 : i32
    %c0_i32_0 = arith.constant 0 : i32
    %c0_i32_1 = arith.constant 0 : i32
    return %c0_i32, %c0_i32_0 : i32, i32
  }
  func.func @transform_6(%arg0: i32) -> (i32, i32) {
    %c0_i32 = arith.constant 0 : i32
    %c0_i32_0 = arith.constant 0 : i32
    %c0_i32_1 = arith.constant 0 : i32
    return %c0_i32, %c0_i32_0 : i32, i32
  }
  func.func @transform_7(%arg0: i32) -> (i32, i32) {
    %c0_i32 = arith.constant 0 : i32
    %c0_i32_0 = arith.constant 0 : i32
    %c0_i32_1 = arith.constant 0 : i32
    return %c0_i32, %c0_i32_0 : i32, i32
  }
  func.func @transform_8(%arg0: i32) -> (i32, i32) {
    %c0_i32 = arith.constant 0 : i32
    %c0_i32_0 = arith.constant 0 : i32
    %c0_i32_1 = arith.constant 0 : i32
    return %c0_i32, %c0_i32_0 : i32, i32
  }
  func.func @transform_9(%arg0: i32) -> (i32, i32) {
    %c0_i32 = arith.constant 0 : i32
    %c0_i32_0 = arith.constant 0 : i32
    %c0_i32_1 = arith.constant 0 : i32
    return %c0_i32, %c0_i32_0 : i32, i32
  }
  func.func @transform_10(%arg0: i32) -> (i32, i32) {
    %c0_i32 = arith.constant 0 : i32
    %c0_i32_0 = arith.constant 0 : i32
    %c0_i32_1 = arith.constant 0 : i32
    return %c0_i32, %c0_i32_0 : i32, i32
  }
  func.func @transform_11(%arg0: i32) -> (i32, i32) {
    %c0_i32 = arith.constant 0 : i32
    %c0_i32_0 = arith.constant 0 : i32
    %c0_i32_1 = arith.constant 0 : i32
    return %c0_i32, %c0_i32_0 : i32, i32
  }
  func.func @transform_12(%arg0: i32) -> (i32, i32) {
    %c0_i32 = arith.constant 0 : i32
    %c0_i32_0 = arith.constant 0 : i32
    %c0_i32_1 = arith.constant 0 : i32
    return %c0_i32, %c0_i32_0 : i32, i32
  }
  func.func @transform_13(%arg0: i32) -> (i32, i32, i32) {
    %c0_i32 = arith.constant 0 : i32
    %c0_i32_0 = arith.constant 0 : i32
    %c0_i32_1 = arith.constant 0 : i32
    return %arg0, %c0_i32, %c0_i32_0 : i32, i32, i32
  }
}

</mosaic_0001>

<bundles_post_ra>
// kernel: tpu_custom_call.1
= control target key start
LH: loop header
LB: loop body
LE: loop exit
PB: predicated region body
PF: predicated region fallthrough
CT: control target
= control target key end

     0   :  { %s11210_s0 = inlined_call_operand.hbm [shape: f32[2,8,512], index: 0, kind: input, shape index: {}]   ;;  %s11211_s1 = inlined_call_operand.hbm [shape: f32[1,512], index: 1, kind: input, shape index: {}]   ;;  %s11212_s2 = inlined_call_operand.hbm [shape: f32[1,512], index: 2, kind: input, shape index: {}]   ;;  %s11213_s3 = inlined_call_operand.hbm [shape: bf16[512,1536], index: 3, kind: input, shape index: {}]   ;;  %s11214_s4 = inlined_call_operand.hbm [shape: f32[1,1536], index: 4, kind: input, shape index: {}]   ;;  %s11215_s5 = inlined_call_operand.hbm [shape: bf16[512,512], index: 5, kind: input, shape index: {}]   ;;  %s11216_s6 = inlined_call_operand.hbm [shape: f32[1,512], index: 6, kind: input, shape index: {}]   ;;  %s11217_s7 = inlined_call_operand.hbm [shape: f32[1,512], index: 7, kind: input, shape index: {}]   ;;  %s11218_s8 = inlined_call_operand.hbm [shape: f32[1,512], index: 8, kind: input, shape index: {}]   ;;  %s11219_s9 = inlined_call_operand.hbm [shape: bf16[512,512], index: 9, kind: input, shape index: {}]   ;;  %s11220_s10 = inlined_call_operand.hbm [shape: f32[1,512], index: 10, kind: input, shape index: {}]   ;;  %s11221_s11 = inlined_call_operand.hbm [shape: bf16[512,512], index: 11, kind: input, shape index: {}]   ;;  %s11222_s12 = inlined_call_operand.hbm [shape: f32[1,512], index: 12, kind: input, shape index: {}]   ;;  %s11223_s13 = inlined_call_operand.hbm [shape: f32[2,8,512], index: 13, kind: output, shape index: {}]  }
   0x1   :  { %11228 = sst [smem:[#allocation32_spill]] %s11211_s1 }
   0x2   :  { %11229 = sst [smem:[#allocation33_spill]] %s11212_s2 }
   0x3   :  { %11230 = sst [smem:[#allocation34_spill]] %s11213_s3 }
   0x4   :  { %11231 = sst [smem:[#allocation35_spill]] %s11214_s4 }
   0x5   :  { %11232 = sst [smem:[#allocation36_spill]] %s11215_s5 }
   0x6   :  { %11233 = sst [smem:[#allocation37_spill]] %s11216_s6 }
   0x7   :  { %11234 = sst [smem:[#allocation38_spill]] %s11217_s7 }
   0x8   :  { %11235 = sst [smem:[#allocation39_spill]] %s11218_s8 }
   0x9   :  { %18 = vsyncpa [#allocation3], 0 }
   0xa   :  { %20 = vsyncpa [#allocation3 + $0x1], 0 }
   0xb   :  { %21 = vsyncpa [#allocation6], 0 }
   0xc   :  { %22 = vsyncpa [#allocation9], 0 }
   0xd   :  { %23 = vsyncpa [#allocation12], 0 }
   0xe   :  { %24 = vsyncpa [#allocation15], 0 }
   0xf   :  { %25 = vsyncpa [#allocation18], 0 }
  0x10   :  { %26 = vsyncpa [#allocation21], 0 }
  0x11   :  { %27 = vsyncpa [#allocation4], 0 }
  0x12   :  { %29 = vsyncpa [#allocation4 + $0x1], 0  ;;  %s10514_s25 = smov 0   ;;  %s10516_s26 = smov 0  }
  0x13   :  { %s10518_s27 = smov 0   ;;  %s10520_s28 = smov 0  }
  0x14 LB: > { %s10423_s29 = smov [#allocation5]   ;;  %s10535_s14 = sadd.s32 4294967295, %s10421_s28   ;;  %s10421_s28 = sphi %s10520_s28, %s11273_s28   ;;  %s10417_s27 = sphi %s10518_s27, %s11272_s27   ;;  %s10413_s26 = sphi %s10516_s26, %s11271_s26   ;;  %s10409_s25 = sphi %s10514_s25, %s11270_s25  }
  0x15   : > { %s357_s30 = sshll.u32 %s10423_s29, 4  ;;  %p7658_p0 = scmp.ge.s32.totalorder %s10421_s28, 1  ;;  %s358_s30 = int_to_ptr.vmem [resolvable:$true] %s357_s30 }
  0x16   : > { %p11224_p1 = scmp.eq.s32.totalorder %s10535_s14, 0  ;;  %p344_p2 = scmp.lt.s32.totalorder %s10421_s28, 3 }
  0x17   : > { %s10424_s16 = smov [#allocation8]   ;;  %s10425_s19 = smov [#allocation11]  }
  0x18   : > { %p10540_p3 = pnand %p7658_p0, %p344_p2  ;;  %s378_s17 = sshll.u32 %s10424_s16, 4  ;;  %s10547_s17 = int_to_ptr.vmem [resolvable:$true] %s378_s17 }
  0x19   : > { %s402_s20 = sshll.u32 %s10425_s19, 4  ;;  %s10004_s22 = scalar_lea.vmem %s358_s30, 64  ;;  %s10555_s20 = int_to_ptr.vmem [resolvable:$true] %s402_s20 }
  0x1a   : > { %s11236_s15 = scalar_select %p10540_p3, 1, 0 }
  0x1b   : > { %p8661_p5 = pneg %p10540_p3  ;;  %p10005_p8 = scmp.ne.s32.totalorder %s358_s30, %s10004_s22 }
  0x1c   : > { %p10012_p11 = scmp.lt.s32.totalorder %s358_s30, %s358_s30  ;;  %p10013_p12 = scmp.lt.s32.totalorder %s10004_s22, %s10004_s22 }
  0x1d   : > { %p10551_p6 = pnand %p8661_p5, %p11224_p1 }
  0x1e   : > { %p10014_p13 = por %p10013_p12, %p10012_p11 }
  0x1f   : > { %p10559_p7 = pneg %p10551_p6 }
  0x21   : > { %p10007_p9 = pnand %p10005_p8, %p10559_p7 }
  0x23   : > { %p10008_p10 = pneg %p10007_p9 }
  0x25   : > { %p10015_p0 = pnand %p10014_p13, %p10008_p10 }
  0x27   : > { %10018 = shalt.err (!%p10015_p0)
}
  0x28   : > { %s11239_s1 = sld [smem:[#allocation32_spill]]  ;;  %s10030_s29 = scalar_lea.vmem %s10547_s17, 49152 }
  0x29   : > { %p10031_p2 = scmp.ne.s32.totalorder %s10547_s17, %s10030_s29  ;;  %p10038_p9 = scmp.lt.s32.totalorder %s10547_s17, %s10547_s17 }
  0x2a   : > { %p10039_p11 = scmp.lt.s32.totalorder %s10030_s29, %s10030_s29 }
  0x2b   : > { %p10033_p5 = pnand %p10031_p2, %p10559_p7 }
  0x2c   : > { %p10040_p10 = por %p10039_p11, %p10038_p9 }
  0x2d   : > { %p10034_p8 = pneg %p10033_p5 }
  0x2e   : > { %8664 = dma.hbm_to_vmem [thread:$0]  (!%p10551_p6), %s11239_s1, 64, %s358_s30, [#allocation6]  }
  0x2f   : > { %p10041_p12 = pnand %p10040_p10, %p10034_p8 }
  0x31   : > { %10044 = shalt.err (!%p10041_p12)
}
  0x32   : > { %s10426_s16 = smov 768   ;;  %s10427_s19 = smov 48  }
  0x33   : > { %s11240_s3 = sld [smem:[#allocation34_spill]]  ;;  %s10056_s23 = scalar_lea.vmem %s10555_s20, 16384 }
  0x34   : > { %p10057_p13 = scmp.ne.s32.totalorder %s10555_s20, %s10056_s23  ;;  %p10064_p5 = scmp.lt.s32.totalorder %s10555_s20, %s10555_s20 }
  0x35   : > { %p10065_p8 = scmp.lt.s32.totalorder %s10056_s23, %s10056_s23 }
  0x36   : > { %p10059_p0 = pnand %p10057_p13, %p10559_p7 }
  0x37   : > { %p10066_p9 = por %p10065_p8, %p10064_p5 }
  0x38   : > { %p10060_p2 = pneg %p10059_p0 }
  0x39   : > { %8670 = dma.hbm_to_vmem [thread:$0]  (!%p10551_p6), %s11240_s3, 49152, %s10547_s17, [#allocation9], %s10426_s16, %s10426_s16, %s10427_s19  }
  0x3a   : > { %p10067_p11 = pnand %p10066_p9, %p10060_p2 }
  0x3c   : > { %10070 = shalt.err (!%p10067_p11)
}
  0x3d   : > { %s10428_s24 = smov 256   ;;  %s10429_s29 = smov 16  }
  0x3e   : > { %s11241_s5 = sld [smem:[#allocation36_spill]]  ;;  %s10430_s19 = smov [#allocation14]  }
  0x3f   : > { %s427_s30 = sshll.u32 %s10430_s19, 4  ;;  %s10431_s22 = smov [#allocation17]   ;;  %s428_s30 = int_to_ptr.vmem [resolvable:$true] %s427_s30 }
  0x40   : > { %s448_s23 = sshll.u32 %s10431_s22, 4  ;;  %s10082_s1 = scalar_lea.vmem %s428_s30, 64  ;;  %s449_s23 = int_to_ptr.vmem [resolvable:$true] %s448_s23 }
  0x41   : > { %p10083_p10 = scmp.ne.s32.totalorder %s428_s30, %s10082_s1  ;;  %p10090_p0 = scmp.lt.s32.totalorder %s428_s30, %s428_s30 }
  0x42   : > { %p10091_p2 = scmp.lt.s32.totalorder %s10082_s1, %s10082_s1 }
  0x43   : > { %p10085_p12 = pnand %p10083_p10, %p10559_p7 }
  0x44   : > { %8676 = dma.hbm_to_vmem [thread:$0]  (!%p10551_p6), %s11241_s5, 16384, %s10555_s20, [#allocation12], %s10428_s24, %s10428_s24, %s10429_s29  }
  0x45   : > { %p10086_p13 = pneg %p10085_p12  ;;  %p10092_p5 = por %p10091_p2, %p10090_p0 }
  0x47   : > { %p10093_p8 = pnand %p10092_p5, %p10086_p13 }
  0x49   : > { %10096 = shalt.err (!%p10093_p8)
}
  0x4a   : > { %s11242_s7 = sld [smem:[#allocation38_spill]]  ;;  %s10108_s20 = scalar_lea.vmem %s449_s23, 16384 }
  0x4b   : > { %p10109_p9 = scmp.ne.s32.totalorder %s449_s23, %s10108_s20  ;;  %p10116_p10 = scmp.lt.s32.totalorder %s449_s23, %s449_s23 }
  0x4c   : > { %p10117_p12 = scmp.lt.s32.totalorder %s10108_s20, %s10108_s20 }
  0x4d   : > { %p10111_p11 = pnand %p10109_p9, %p10559_p7 }
  0x4e   : > { %p10118_p1 = por %p10117_p12, %p10116_p10 }
  0x4f   : > { %p10112_p4 = pneg %p10111_p11 }
  0x50   : > { %8682 = dma.hbm_to_vmem [thread:$0]  (!%p10551_p6), %s11242_s7, 64, %s428_s30, [#allocation15]  }
  0x51   : > { %p10119_p3 = pnand %p10118_p1, %p10112_p4 }
  0x53   : > { %10122 = shalt.err (!%p10119_p3)
}
  0x54   : > { %8688 = dma.hbm_to_vmem [thread:$0]  (!%p10551_p6), %s11219_s9, 16384, %s449_s23, [#allocation18], %s10428_s24, %s10428_s24, %s10429_s29  }
  0x55   : > { %s10432_s16 = smov [#allocation20]   ;;  %s10433_s30 = smov [#allocation7]  }
  0x56   : > { %s472_s19 = sshll.u32 %s10432_s16, 4  ;;  %s368_s22 = sshll.u32 %s10433_s30, 4  ;;  %s473_s19 = int_to_ptr.vmem [resolvable:$true] %s472_s19  ;;  %s369_s22 = int_to_ptr.vmem [resolvable:$true] %s368_s22 }
  0x57   : > { %s10134_s17 = scalar_lea.vmem %s473_s19, 16384  ;;  %p10142_p4 = scmp.lt.s32.totalorder %s473_s19, %s473_s19 }
  0x58   : > { %p10135_p13 = scmp.ne.s32.totalorder %s473_s19, %s10134_s17  ;;  %p10143_p0 = scmp.lt.s32.totalorder %s10134_s17, %s10134_s17 }
  0x5a   : > { %p10137_p1 = pnand %p10135_p13, %p10559_p7  ;;  %p10144_p2 = por %p10143_p0, %p10142_p4 }
  0x5c   : > { %p10138_p3 = pneg %p10137_p1 }
  0x5e   : > { %p10145_p5 = pnand %p10144_p2, %p10138_p3 }
  0x60   : > { %10148 = shalt.err (!%p10145_p5)
}
  0x61   : > { %8694 = dma.hbm_to_vmem [thread:$0]  (!%p10551_p6), %s11221_s11, 16384, %s473_s19, [#allocation21], %s10428_s24, %s10428_s24, %s10429_s29  }
  0x62   : > { %s10160_s1 = scalar_lea.vmem %s369_s22, 64  ;;  %p10168_p10 = scmp.lt.s32.totalorder %s369_s22, %s369_s22 }
  0x63   : > { %p10161_p8 = scmp.ne.s32.totalorder %s369_s22, %s10160_s1  ;;  %p10169_p12 = scmp.lt.s32.totalorder %s10160_s1, %s10160_s1 }
  0x65   : > { %p10163_p9 = pnand %p10161_p8, %p10559_p7  ;;  %p10170_p13 = por %p10169_p12, %p10168_p10 }
  0x67   : > { %p10164_p11 = pneg %p10163_p9 }
  0x69   : > { %p10171_p1 = pnand %p10170_p13, %p10164_p11 }
  0x6b   : > { %10174 = shalt.err (!%p10171_p1)
}
  0x6c   : > { %s11243_s2 = sld [smem:[#allocation33_spill]]  ;;  %s10434_s30 = smov [#allocation10]  }
  0x6d   : > { %s392_s24 = sshll.u32 %s10434_s30, 4  ;;  %s10435_s29 = smov [#allocation13]   ;;  %s393_s24 = int_to_ptr.vmem [resolvable:$true] %s392_s24 }
  0x6e   : > { %s416_s19 = sshll.u32 %s10435_s29, 4  ;;  %s10186_s17 = scalar_lea.vmem %s393_s24, 192  ;;  %s417_s19 = int_to_ptr.vmem [resolvable:$true] %s416_s19 }
  0x6f   : > { %p10187_p3 = scmp.ne.s32.totalorder %s393_s24, %s10186_s17  ;;  %p10194_p2 = scmp.lt.s32.totalorder %s393_s24, %s393_s24 }
  0x70   : > { %p10195_p5 = scmp.lt.s32.totalorder %s10186_s17, %s10186_s17 }
  0x71   : > { %p10189_p4 = pnand %p10187_p3, %p10559_p7 }
  0x72   : > { %8667 = dma.hbm_to_vmem [thread:$0]  (!%p10551_p6), %s11243_s2, 64, %s369_s22, [#allocation6]  }
  0x73   : > { %p10190_p0 = pneg %p10189_p4  ;;  %p10196_p8 = por %p10195_p5, %p10194_p2 }
  0x75   : > { %p10197_p9 = pnand %p10196_p8, %p10190_p0 }
  0x77   : > { %10200 = shalt.err (!%p10197_p9)
}
  0x78   : > { %s11244_s4 = sld [smem:[#allocation35_spill]]  ;;  %s10212_s22 = scalar_lea.vmem %s417_s19, 64 }
  0x79   : > { %p10213_p11 = scmp.ne.s32.totalorder %s417_s19, %s10212_s22  ;;  %p10220_p13 = scmp.lt.s32.totalorder %s417_s19, %s417_s19 }
  0x7a   : > { %p10221_p1 = scmp.lt.s32.totalorder %s10212_s22, %s10212_s22 }
  0x7b   : > { %p10215_p10 = pnand %p10213_p11, %p10559_p7 }
  0x7c   : > { %p10222_p3 = por %p10221_p1, %p10220_p13 }
  0x7d   : > { %p10216_p12 = pneg %p10215_p10 }
  0x7e   : > { %8673 = dma.hbm_to_vmem [thread:$0]  (!%p10551_p6), %s11244_s4, 192, %s393_s24, [#allocation9]  }
  0x7f   : > { %p10223_p4 = pnand %p10222_p3, %p10216_p12 }
  0x81   : > { %10226 = shalt.err (!%p10223_p4)
}
  0x82   : > { %s11245_s6 = sld [smem:[#allocation37_spill]]  ;;  %s10436_s16 = smov [#allocation16]  }
  0x83   : > { %s438_s30 = sshll.u32 %s10436_s16, 4  ;;  %s10437_s24 = smov [#allocation19]   ;;  %s439_s30 = int_to_ptr.vmem [resolvable:$true] %s438_s30 }
  0x84   : > { %s462_s29 = sshll.u32 %s10437_s24, 4  ;;  %s10238_s17 = scalar_lea.vmem %s439_s30, 64  ;;  %s463_s29 = int_to_ptr.vmem [resolvable:$true] %s462_s29 }
  0x85   : > { %p10239_p0 = scmp.ne.s32.totalorder %s439_s30, %s10238_s17  ;;  %p10246_p8 = scmp.lt.s32.totalorder %s439_s30, %s439_s30 }
  0x86   : > { %p10247_p9 = scmp.lt.s32.totalorder %s10238_s17, %s10238_s17 }
  0x87   : > { %p10241_p2 = pnand %p10239_p0, %p10559_p7 }
  0x88   : > { %8679 = dma.hbm_to_vmem [thread:$0]  (!%p10551_p6), %s11245_s6, 64, %s417_s19, [#allocation12]  }
  0x89   : > { %p10242_p5 = pneg %p10241_p2  ;;  %p10248_p11 = por %p10247_p9, %p10246_p8 }
  0x8b   : > { %p10249_p10 = pnand %p10248_p11, %p10242_p5 }
  0x8d   : > { %10252 = shalt.err (!%p10249_p10)
}
  0x8e   : > { %s11246_s8 = sld [smem:[#allocation39_spill]]  ;;  %s10264_s19 = scalar_lea.vmem %s463_s29, 64 }
  0x8f   : > { %p10265_p12 = scmp.ne.s32.totalorder %s463_s29, %s10264_s19  ;;  %p10272_p3 = scmp.lt.s32.totalorder %s463_s29, %s463_s29 }
  0x90   : > { %p10273_p4 = scmp.lt.s32.totalorder %s10264_s19, %s10264_s19 }
  0x91   : > { %p10267_p13 = pnand %p10265_p12, %p10559_p7 }
  0x92   : > { %p10274_p0 = por %p10273_p4, %p10272_p3 }
  0x93   : > { %p10268_p1 = pneg %p10267_p13 }
  0x94   : > { %8685 = dma.hbm_to_vmem [thread:$0]  (!%p10551_p6), %s11246_s8, 64, %s439_s30, [#allocation15]  }
  0x95   : > { %p10275_p2 = pnand %p10274_p0, %p10268_p1 }
  0x97   : > { %10278 = shalt.err (!%p10275_p2)
}
  0x98   : > { %8691 = dma.hbm_to_vmem [thread:$0]  (!%p10551_p6), %s11220_s10, 64, %s463_s29, [#allocation18]  }
  0x99   : > { %s10438_s3 = smov [#allocation22]  }
  0x9a   : > { %s486_s16 = sshll.u32 %s10438_s3, 4  ;;  %s487_s16 = int_to_ptr.vmem [resolvable:$true] %s486_s16 }
  0x9b   : > { %s10290_s30 = scalar_lea.vmem %s487_s16, 64  ;;  %p10298_p11 = scmp.lt.s32.totalorder %s487_s16, %s487_s16 }
  0x9c   : > { %p10291_p5 = scmp.ne.s32.totalorder %s487_s16, %s10290_s30  ;;  %p10299_p10 = scmp.lt.s32.totalorder %s10290_s30, %s10290_s30 }
  0x9e   : > { %p10293_p8 = pnand %p10291_p5, %p10559_p7  ;;  %p10300_p12 = por %p10299_p10, %p10298_p11 }
  0xa0   : > { %p10294_p9 = pneg %p10293_p8 }
  0xa2   : > { %p10301_p13 = pnand %p10300_p12, %p10294_p9 }
  0xa4   : > { %10304 = shalt.err (!%p10301_p13)
}
  0xa5   : > { %8697 = dma.hbm_to_vmem [thread:$0]  (!%p10551_p6), %s11222_s12, 64, %s487_s16, [#allocation21]  }
  0xa6   : > { %s7657_s21 = sadd.s32 4294967294, %s10421_s28   ;;  %s10668_s18 = sadd.s32 1, %s10421_s28  }
  0xa7   : > { %s39_s29 = ssub.s32 %s10421_s28, %s10668_s18  ;;  %s42_s23 = sadd.s32 1, %s10417_s27 }
  0xa8   : > { %p40_p7 = scmp.eq.s32.totalorder %s39_s29, 0  ;;  %p49_p1 = scmp.ne.s32.totalorder %s10417_s27, %s10413_s26 }
  0xa9   : > { %p50_p3 = scmp.eq.s32.totalorder %s10421_s28, 0  ;;  %p55_p4 = scmp.ne.s32.totalorder %s10413_s26, %s10409_s25 }
  0xaa   : > { %s10679_s20 = scalar_select %p40_p7, %s10417_s27, %s42_s23  }
  0xab   : > { %p10681_p0 = por %p50_p3, %p49_p1  ;;  %p11248_p2 = scmp.eq.s32.totalorder %s10535_s14, 0 }
  0xac   : > { %p331_p5 = scmp.eq.s32.totalorder %s10535_s14, 1  ;;  %p337_p8 = scmp.eq.s32.totalorder %s7657_s21, 1 }
  0xad   : > { %p10687_p6 = por %p11248_p2, %p55_p4  ;;  %p8718_p9 = scmp.lt.s32.totalorder %s10421_s28, 2 }
  0xae   : > { %s497_s1 = sand.u32 1, %s10417_s27   ;;  %p10694_p11 = por %p331_p5, %p49_p1 }
  0xaf   : > { %s11249_s22 = scalar_select %p10687_p6, 1, 0 }
  0xb0   : > { %s11250_s3 = scalar_select %p10694_p11, 1, 0 }
  0xb1   : > { %p10698_p10 = por %p337_p8, %p55_p4  ;;  %s7672_s30 = sshll.u32 %s497_s1, 5 }
  0xb2   : > { %s8479_s24 = sshll.u32 %s10421_s28, 9  ;;  %s501_s21 = scalar_lea.vmem [#allocation2], %s7672_s30 }
  0xb3   : > { %s11251_s16 = scalar_select %p10698_p10, 1, 0 }
  0xb4   : > { %s10706_s23 = scalar_lea.hbm %s11210_s0, %s8479_s24  ;;  %s509_s2 = sshll.u32 %s501_s21, 4  ;;  %s510_s2 = int_to_ptr.vmem [resolvable:$true] %s509_s2 }
  0xb5   : > { %p10710_p12 = pnand %p8718_p9, %p10681_p0  ;;  %s498_s5 = scalar_lea.sflag [#allocation3], %s497_s1 }
  0xb6   : > { %s10305_s6 = scalar_lea.hbm %s10706_s23, 512  ;;  %s10310_s29 = scalar_lea.hbm %s11210_s0, 1024 }
  0xb7   : > { %p10306_p13 = scmp.ne.s32.totalorder %s10706_s23, %s10305_s6  ;;  %p10307_p7 = pneg %p10710_p12 }
  0xb8   : > { %p10311_p4 = scmp.lt.s32.totalorder %s10706_s23, %s11210_s0  ;;  %p10312_p0 = scmp.lt.s32.totalorder %s10310_s29, %s10305_s6 }
  0xb9   : > { %p10308_p1 = pnand %p10307_p7, %p10306_p13 }
  0xba   : > { %p10313_p2 = por %p10312_p0, %p10311_p4 }
  0xbb   : > { %p10309_p3 = pneg %p10308_p1 }
  0xbd   : > { %p10314_p5 = pnand %p10313_p2, %p10309_p3 }
  0xbf   : > { %10317 = shalt.err (!%p10314_p5)
}
  0xc0   : > { %s10318_s19 = scalar_lea.vmem %s510_s2, 512  ;;  %s10439_s1 = smov [#allocation2]  }
  0xc1   : > { %p10319_p8 = scmp.ne.s32.totalorder %s510_s2, %s10318_s19  ;;  %s10323_s7 = sshll.u32 %s10439_s1, 4  ;;  %s10324_s7 = int_to_ptr.vmem [resolvable:$false] %s10323_s7 }
  0xc2   : > { %s10325_s8 = scalar_lea.vmem %s10324_s7, 1024  ;;  %p10326_p13 = scmp.lt.s32.totalorder %s510_s2, %s10324_s7 }
  0xc3   : > { %p10321_p9 = pnand %p10319_p8, %p10307_p7  ;;  %p10327_p1 = scmp.lt.s32.totalorder %s10325_s8, %s10318_s19 }
  0xc5   : > { %p10322_p10 = pneg %p10321_p9  ;;  %p10328_p11 = por %p10327_p1, %p10326_p13 }
  0xc7   : > { %p10329_p6 = pnand %p10328_p11, %p10322_p10 }
  0xc9   : > { %10332 = shalt.err (!%p10329_p6)
}
  0xca   : > { %8701 = dma.hbm_to_vmem [thread:$0]  (!%p10710_p12), %s10706_s23, 512, %s510_s2, %s498_s5  }
  0xcb   : > { %p11253_p3 = scmp.ne.s32.totalorder %s11236_s15, 0 }
  0xcc   : > { %s10731_s6 = sand.u32 (!%p11253_p3), 1, %s10413_s26   ;;  %p11254_p6 = scmp.ne.s32.totalorder (!%p11253_p3), %s11249_s22, 0 }
  0xcd   : > { %518 = sbr.rel (%p11253_p3) target bundleno = 3055 (0xbef), region = 72  ;;  %s7676_s24 = sshll.u32 (!%p11253_p3), %s10731_s6, 5 }
  0xce   : > { %s521_s7 = scalar_lea.sflag (!%p11253_p3), [#allocation3], %s10731_s6  ;;  %s10737_s8 = scalar_lea.vmem (!%p11253_p3), [#allocation2], %s7676_s24 }
  0xd2   : > { %10376 = dma.done.wait (%p11254_p6), %s521_s7, 512  }
  0xd3   : > { %10378 = vsyncadd (%p11254_p6), %s521_s7, 4294966784  ;;  %p11255_p11 = scmp.eq.s32.totalorder %s10535_s14, 0 }
  0xd5   : > { %10380 = dma.done.wait (%p11255_p11), [#allocation6], 128   ;;  %p11256_p10 = pmov %p11255_p11 }
  0xd7   : > { %10382 = vsyncadd (%p11256_p10), [#allocation6], 4294967168  ;;  %p11257_p12 = pmov %p11256_p10 }
  0xd8   : > { %p11258_p7 = pmov %p11256_p10 }
  0xd9   : > { %10384 = dma.done.wait (%p11257_p12), [#allocation9], 49344  }
  0xda   : > { %10386 = vsyncadd (%p11258_p7), [#allocation9], 4294917952  ;;  %p11259_p4 = pmov %p11258_p7 }
  0xdc   : > { %10388 = dma.done.wait (%p11259_p4), [#allocation12], 16448   ;;  %p11260_p0 = pmov %p11259_p4 }
  0xde   : > { %10390 = vsyncadd (%p11260_p0), [#allocation12], 4294950848  ;;  %p11261_p2 = pmov %p11260_p0 }
  0xdf   : > { %p11262_p5 = pmov %p11260_p0 }
  0xe0   : > { %10392 = dma.done.wait (%p11261_p2), [#allocation15], 128  }
  0xe1   : > { %10394 = vsyncadd (%p11262_p5), [#allocation15], 4294967168  ;;  %p11263_p8 = pmov %p11260_p0 }
  0xe2   : > { %p11264_p9 = pmov %p11260_p0 }
  0xe3   : > { %10396 = dma.done.wait (%p11263_p8), [#allocation18], 16448  }
  0xe4   : > { %10398 = vsyncadd (%p11264_p9), [#allocation18], 4294950848  ;;  %p11265_p13 = pmov %p11260_p0 }
  0xe5   : > { %p11266_p1 = pmov %p11260_p0 }
  0xe6   : > { %10400 = dma.done.wait (%p11265_p13), [#allocation21], 16448  }
  0xe7   : > { %10402 = vsyncadd (%p11266_p1), [#allocation21], 4294950848  ;;  %v10768_v0 = vld [vmem:[%s10737_s8] sm:$0xff]  ;;  %v10771_v1 = vld [vmem:[%s10737_s8 + $0x8] sm:$0xff]  ;;  %vm10441_vm0 = vmmov 0   ;;  %vm3566_vm1 = vcmask 523264  }
  0xe8   : > { %v10774_v2 = vld [vmem:[%s10737_s8 + $0x10] sm:$0xff]  ;;  %v10777_v3 = vld [vmem:[%s10737_s8 + $0x18] sm:$0xff]  ;;  %v622_v4 = vadd.f32 %v10771_v1, %v10768_v0  ;;  %s10442_s2 = smov 64   ;;  %vm3630_vm2 = vcmask 1043456   ;;  %vm3614_vm3 = vcmask 64512   ;;  %s614_s4 = scalar_lea.vmem [#allocation23], %s7676_s24 }
  0xe9   : > { %v8793_v7 = vld [vmem:[#allocation8 + $0x2a4] ss:$48 sps:$4 sm:$0xff]   ;;  %v8797_v9 = vld [vmem:[#allocation8 + $0x2a0] ss:$48 sps:$4 sm:$0xff]   ;;  %s8480_s5 = sshll.u32 %s10535_s14, 9  ;;  %s7473_s15 = sshll.u32 %s614_s4, 4  ;;  %s7474_s15 = int_to_ptr.vmem [resolvable:$true] %s7473_s15 }
  0xea   : > { %v623_v5 = vadd.f32 %v622_v4, %v10774_v2  ;;  %v8795_v8 = vld [vmem:[#allocation8 + $0x8a4] ss:$48 sps:$4 sm:$0xff]   ;;  %v8798_v10 = vld [vmem:[#allocation8 + $0x8a0] ss:$48 sps:$4 sm:$0xff]   ;;  %3071 = vmatprep.subr.bf16.mxu0 %v8793_v7  ;;  %s11173_s17 = scalar_lea.hbm %s11223_s13, %s8480_s5  ;;  %s7459_s29 = scalar_lea.sflag [#allocation4], %s10731_s6 }
  0xeb   : > { %v8799_v11 = vld [vmem:[#allocation8 + $0x244] ss:$48 sps:$4 sm:$0xff]   ;;  %3112 = vmatprep.subr.bf16.mxu1 %v8795_v8  ;;  %3072 = vmatpush1.bf16.msra.mxu0 %v8797_v9  ;;  %v8803_v13 = vld [vmem:[#allocation8 + $0x240] ss:$48 sps:$4 sm:$0xff]   ;;  %s10333_s30 = scalar_lea.vmem %s7474_s15, 512  ;;  %p11267_p6 = scmp.ne.s32.totalorder %s11250_s3, 0 }
  0xec   : > { %v624_v6 = vadd.f32 %v623_v5, %v10777_v3  ;;  %v8801_v12 = vld [vmem:[#allocation8 + $0x844] ss:$48 sps:$4 sm:$0xff]   ;;  %3113 = vmatpush1.bf16.msra.mxu1 %v8798_v10  ;;  %v8804_v14 = vld [vmem:[#allocation8 + $0x840] ss:$48 sps:$4 sm:$0xff]   ;;  %3073 = vmatprep.subr.bf16.mxu0 %v8799_v11  ;;  %p10334_p3 = scmp.ne.s32.totalorder %s7474_s15, %s10333_s30  ;;  %s10443_s14 = smov [#allocation23]  }
  0xed   : > { %3114 = vmatprep.subr.bf16.mxu1 %v8801_v12  ;;  %v8805_v15 = vld [vmem:[#allocation8 + $0x1e4] ss:$48 sps:$4 sm:$0xff]   ;;  %v8809_v17 = vld [vmem:[#allocation8 + $0x1e0] ss:$48 sps:$4 sm:$0xff]   ;;  %s10337_s21 = sshll.u32 %s10443_s14, 4  ;;  %s10338_s21 = int_to_ptr.vmem [resolvable:$false] %s10337_s21 }
  0xee   : > { %625 = vadd.xlane.f32.xlu0 %v624_v6  ;;  %v8807_v16 = vld [vmem:[#allocation8 + $0x7e4] ss:$48 sps:$4 sm:$0xff]   ;;  %v8810_v18 = vld [vmem:[#allocation8 + $0x7e0] ss:$48 sps:$4 sm:$0xff]   ;;  %p10335_p11 = pnand %p10334_p3, %p11267_p6  ;;  %s10339_s19 = scalar_lea.vmem %s10338_s21, 1024 }
  0xef   : > { %3074 = vmatpush1.bf16.msra.mxu0 %v8803_v13  ;;  %v8811_v19 = vld [vmem:[#allocation8 + $0x184] ss:$48 sps:$4 sm:$0xff]   ;;  %v8815_v21 = vld [vmem:[#allocation8 + $0x180] ss:$48 sps:$4 sm:$0xff]   ;;  %p10340_p12 = scmp.lt.s32.totalorder %s7474_s15, %s10338_s21  ;;  %p10341_p7 = scmp.lt.s32.totalorder %s10339_s19, %s10333_s30 }
  0xf0   : > { %3115 = vmatpush1.bf16.msra.mxu1 %v8804_v14  ;;  %3075 = vmatprep.subr.bf16.mxu0 %v8805_v15  ;;  %v8813_v20 = vld [vmem:[#allocation8 + $0x784] ss:$48 sps:$4 sm:$0xff]   ;;  %v8816_v22 = vld [vmem:[#allocation8 + $0x780] ss:$48 sps:$4 sm:$0xff]   ;;  %p10336_p10 = pneg %p10335_p11 }
  0xf1   : > { %3116 = vmatprep.subr.bf16.mxu1 %v8807_v16  ;;  %v8817_v23 = vld [vmem:[#allocation8 + $0x124] ss:$48 sps:$4 sm:$0xff]   ;;  %v8821_v25 = vld [vmem:[#allocation8 + $0x120] ss:$48 sps:$4 sm:$0xff]   ;;  %p10342_p4 = por %p10341_p7, %p10340_p12 }
  0xf2   : > { %v8819_v24 = vld [vmem:[#allocation8 + $0x724] ss:$48 sps:$4 sm:$0xff]   ;;  %v8822_v26 = vld [vmem:[#allocation8 + $0x720] ss:$48 sps:$4 sm:$0xff]  }
  0xf3   : > { %3076 = vmatpush1.bf16.msra.mxu0 %v8809_v17  ;;  %v8823_v27 = vld [vmem:[#allocation8 + $0xc4] ss:$48 sps:$4 sm:$0xff]   ;;  %v8827_v29 = vld [vmem:[#allocation8 + $0xc0] ss:$48 sps:$4 sm:$0xff]   ;;  %p10343_p0 = pnand %p10342_p4, %p10336_p10 }
  0xf4   : > { %3117 = vmatpush1.bf16.msra.mxu1 %v8810_v18  ;;  %3077 = vmatprep.subr.bf16.mxu0 %v8811_v19  ;;  %v8825_v28 = vld [vmem:[#allocation8 + $0x6c4] ss:$48 sps:$4 sm:$0xff]   ;;  %v8828_v30 = vld [vmem:[#allocation8 + $0x6c0] ss:$48 sps:$4 sm:$0xff]  }
  0xf5   : > { %3118 = vmatprep.subr.bf16.mxu1 %v8813_v20  ;;  %v8829_v31 = vld [vmem:[#allocation8 + $0x64] ss:$48 sps:$4 sm:$0xff]   ;;  %v8833_v33 = vld [vmem:[#allocation8 + $0x60] ss:$48 sps:$4 sm:$0xff]   ;;  %v8891_v20 = vld [vmem:[#allocation8 + $0x2ac] ss:$48 sps:$4 sm:$0xff]  }
  0xf6   : > { %v8831_v32 = vld [vmem:[#allocation8 + $0x664] ss:$48 sps:$4 sm:$0xff]   ;;  %v8834_v34 = vld [vmem:[#allocation8 + $0x660] ss:$48 sps:$4 sm:$0xff]  }
  0xf7   : > { %3078 = vmatpush1.bf16.msra.mxu0 %v8815_v21  ;;  %v8835_v35 = vld [vmem:[#allocation8 + $0x4] ss:$48 sps:$4 sm:$0xff]   ;;  %v8839_v37 = vld [vmem:[#allocation8] ss:$48 sps:$4 sm:$0xff]   ;;  %v8894_v21 = vld [vmem:[#allocation8 + $0x8ac] ss:$48 sps:$4 sm:$0xff]  }
  0xf8   : > { %3119 = vmatpush1.bf16.msra.mxu1 %v8816_v22  ;;  %3079 = vmatprep.subr.bf16.mxu0 %v8817_v23  ;;  %v8837_v36 = vld [vmem:[#allocation8 + $0x604] ss:$48 sps:$4 sm:$0xff]   ;;  %v8840_v38 = vld [vmem:[#allocation8 + $0x600] ss:$48 sps:$4 sm:$0xff]  }
  0xf9   : > { %3120 = vmatprep.subr.bf16.mxu1 %v8819_v24  ;;  %v8841_v39 = vld [vmem:[#allocation8 + $0x5a4] ss:$48 sps:$4 sm:$0xff]   ;;  %v8845_v41 = vld [vmem:[#allocation8 + $0x5a0] ss:$48 sps:$4 sm:$0xff]  }
  0xfa   : > { %v8843_v40 = vld [vmem:[#allocation8 + $0xba4] ss:$48 sps:$4 sm:$0xff]   ;;  %v8846_v42 = vld [vmem:[#allocation8 + $0xba0] ss:$48 sps:$4 sm:$0xff]  }
  0xfb   : > { %3080 = vmatpush1.bf16.msra.mxu0 %v8821_v25  ;;  %v8847_v43 = vld [vmem:[#allocation8 + $0x544] ss:$48 sps:$4 sm:$0xff]   ;;  %v8851_v45 = vld [vmem:[#allocation8 + $0x540] ss:$48 sps:$4 sm:$0xff]   ;;  %v650_v25 = vlaneseq }
  0xfc   : > { %3121 = vmatpush1.bf16.msra.mxu1 %v8822_v26  ;;  %3081 = vmatprep.subr.bf16.mxu0 %v8823_v27  ;;  %v8849_v44 = vld [vmem:[#allocation8 + $0xb44] ss:$48 sps:$4 sm:$0xff]   ;;  %v8852_v46 = vld [vmem:[#allocation8 + $0xb40] ss:$48 sps:$4 sm:$0xff]  }
  0xfd   : > { %3122 = vmatprep.subr.bf16.mxu1 %v8825_v28  ;;  %v8853_v60 = vld [vmem:[#allocation8 + $0x4e4] ss:$48 sps:$4 sm:$0xff]   ;;  %v8857_v62 = vld [vmem:[#allocation8 + $0x4e0] ss:$48 sps:$4 sm:$0xff]   ;;  %v10803_v26 = vshrl.u32 %v650_v25, 7 }
  0xfe   : > { %v8855_v61 = vld [vmem:[#allocation8 + $0xae4] ss:$48 sps:$4 sm:$0xff]   ;;  %v8858_v63 = vld [vmem:[#allocation8 + $0xae0] ss:$48 sps:$4 sm:$0xff]   ;;  %v8942_v25 = vld [vmem:[#allocation8 + $0xbac] ss:$48 sps:$4 sm:$0xff]  }
  0xff   : > { %3082 = vmatpush1.bf16.msra.mxu0 %v8827_v29  ;;  %v8865_v4 = vld [vmem:[#allocation8 + $0x424] ss:$48 sps:$4 sm:$0xff]   ;;  %v8869_v6 = vld [vmem:[#allocation8 + $0x420] ss:$48 sps:$4 sm:$0xff]   ;;  %v10806_v27 = vsub.s32 1, %v10803_v26  ;;  %v10809_v28 = vsub.s32 3, %v10803_v26 }
 0x100   : > { %3123 = vmatpush1.bf16.msra.mxu1 %v8828_v30  ;;  %3083 = vmatprep.subr.bf16.mxu0 %v8829_v31  ;;  %v8867_v5 = vld [vmem:[#allocation8 + $0xa24] ss:$48 sps:$4 sm:$0xff]   ;;  %v8870_v7 = vld [vmem:[#allocation8 + $0xa20] ss:$48 sps:$4 sm:$0xff]   ;;  %v10812_v29 = vsub.s32 0, %v10803_v26  ;;  %v10815_v30 = vsub.s32 2, %v10803_v26 }
 0x101   : > { %3124 = vmatprep.subr.bf16.mxu1 %v8831_v32  ;;  %v8871_v8 = vld [vmem:[#allocation8 + $0x3c4] ss:$48 sps:$4 sm:$0xff]   ;;  %v8875_v10 = vld [vmem:[#allocation8 + $0x3c0] ss:$48 sps:$4 sm:$0xff]   ;;  %v620_v31 = vld [vmem:[#allocation5] sm:$0xf] }
 0x102   : > { %v8873_v9 = vld [vmem:[#allocation8 + $0x9c4] ss:$48 sps:$4 sm:$0xff]   ;;  %v8876_v11 = vld [vmem:[#allocation8 + $0x9c0] ss:$48 sps:$4 sm:$0xff]   ;;  %v621_v32 = vld [vmem:[#allocation7] sm:$0xf] }
 0x103   : > { %3084 = vmatpush1.bf16.msra.mxu0 %v8833_v33  ;;  %v8877_v12 = vld [vmem:[#allocation8 + $0x364] ss:$48 sps:$4 sm:$0xff]   ;;  %v8881_v14 = vld [vmem:[#allocation8 + $0x360] ss:$48 sps:$4 sm:$0xff]   ;;  %v657_v33 = vrot.slane %v620_v31, %v10806_v27 }
 0x104   : > { %3125 = vmatpush1.bf16.msra.mxu1 %v8834_v34  ;;  %3085 = vmatprep.subr.bf16.mxu0 %v8835_v35  ;;  %v8879_v13 = vld [vmem:[#allocation8 + $0x964] ss:$48 sps:$4 sm:$0xff]   ;;  %v8882_v15 = vld [vmem:[#allocation8 + $0x960] ss:$48 sps:$4 sm:$0xff]   ;;  %v665_v34 = vrot.slane %v620_v31, %v10809_v28  ;;  %v653_v35 = vrot.slane %v620_v31, %v10812_v29 }
 0x105   : > { %3126 = vmatprep.subr.bf16.mxu1 %v8837_v36  ;;  %v8883_v16 = vld [vmem:[#allocation8 + $0x304] ss:$48 sps:$4 sm:$0xff]   ;;  %v8887_v18 = vld [vmem:[#allocation8 + $0x300] ss:$48 sps:$4 sm:$0xff]   ;;  %v661_v36 = vrot.slane %v620_v31, %v10815_v30  ;;  %v8937_v31 = vld [vmem:[#allocation8 + $0x5a8] ss:$48 sps:$4 sm:$0xff]  }
 0x106   : > { %v8885_v17 = vld [vmem:[#allocation8 + $0x904] ss:$48 sps:$4 sm:$0xff]   ;;  %v8888_v19 = vld [vmem:[#allocation8 + $0x900] ss:$48 sps:$4 sm:$0xff]  }
 0x107   : > { %3086 = vmatpush1.bf16.msra.mxu0 %v8839_v37 }
 0x108   : > { %3127 = vmatpush1.bf16.msra.mxu1 %v8840_v38  ;;  %3087 = vmatprep.subr.bf16.mxu0 %v8841_v39  ;;  %v682_v38 = vrot.slane %v621_v32, %v10806_v27  ;;  %v690_v39 = vrot.slane %v621_v32, %v10809_v28 }
 0x109   : > { %3128 = vmatprep.subr.bf16.mxu1 %v8843_v40  ;;  %v678_v40 = vrot.slane %v621_v32, %v10812_v29 }
 0x10b   : > { %3088 = vmatpush2.bf16.msra.mxu0 %v8845_v41  ;;  %v686_v41 = vrot.slane %v621_v32, %v10815_v30  ;;  %v8940_v32 = vld [vmem:[#allocation8 + $0xba8] ss:$48 sps:$4 sm:$0xff]  }
 0x10c   : > { %3129 = vmatpush2.bf16.msra.mxu1 %v8846_v42  ;;  %3089 = vmatprep.subr.bf16.mxu0 %v8847_v43 }
 0x10d   : > { %3130 = vmatprep.subr.bf16.mxu1 %v8849_v44 }
 0x10f   : > { %3090 = vmatpush2.bf16.msra.mxu0 %v8851_v45 }
 0x110   : > { %3131 = vmatpush2.bf16.msra.mxu1 %v8852_v46  ;;  %3091 = vmatprep.subr.bf16.mxu0 %v8853_v60 }
 0x111   : > { %3132 = vmatprep.subr.bf16.mxu1 %v8855_v61 }
 0x113   : > { %3092 = vmatpush2.bf16.msra.mxu0 %v8857_v62  ;;  %v8895_v62 = vld [vmem:[#allocation8 + $0x248] ss:$48 sps:$4 sm:$0xff]  }
 0x114   : > { %3133 = vmatpush2.bf16.msra.mxu1 %v8858_v63  ;;  %v8898_v63 = vld [vmem:[#allocation8 + $0x848] ss:$48 sps:$4 sm:$0xff]  }
 0x177   : > { %v626_v47 = vpop.xlane.xlu0 %625 }
 0x178   : > { %v628_v48 = vmul.f32 0.001953125, %v626_v47 }
 0x17a   : > { %v10784_v49 = vsub.f32 %v10768_v0, %v628_v48  ;;  %v10787_v50 = vsub.f32 %v10771_v1, %v628_v48  ;;  %v10790_v51 = vsub.f32 %v10774_v2, %v628_v48  ;;  %v10793_v52 = vsub.f32 %v10777_v3, %v628_v48  ;;  %v8859_v0 = vld [vmem:[#allocation8 + $0x484] ss:$48 sps:$4 sm:$0xff]   ;;  %v8863_v2 = vld [vmem:[#allocation8 + $0x480] ss:$48 sps:$4 sm:$0xff]  }
 0x17b   : > { %v8861_v1 = vld [vmem:[#allocation8 + $0xa84] ss:$48 sps:$4 sm:$0xff]   ;;  %v8864_v3 = vld [vmem:[#allocation8 + $0xa80] ss:$48 sps:$4 sm:$0xff]   ;;  %3093 = vmatprep.subr.bf16.mxu0 %v8859_v0  ;;  %v8903_v0 = vld [vmem:[#allocation8 + $0x1ec] ss:$48 sps:$4 sm:$0xff]  }
 0x17c   : > { %v633_v53 = vmul.f32 %v10784_v49, %v10784_v49  ;;  %v634_v54 = vmul.f32 %v10787_v50, %v10787_v50  ;;  %v635_v55 = vmul.f32 %v10790_v51, %v10790_v51  ;;  %v636_v57 = vmul.f32 %v10793_v52, %v10793_v52  ;;  %3134 = vmatprep.subr.bf16.mxu1 %v8861_v1  ;;  %v8906_v1 = vld [vmem:[#allocation8 + $0x7ec] ss:$48 sps:$4 sm:$0xff]  }
 0x17d   : > { %3094 = vmatpush2.bf16.msra.mxu0 %v8863_v2  ;;  %3135 = vmatpush2.bf16.msra.mxu1 %v8864_v3  ;;  %v8901_v2 = vld [vmem:[#allocation8 + $0x1e8] ss:$48 sps:$4 sm:$0xff]  }
 0x17e   : > { %v637_v56 = vadd.f32 %v634_v54, %v633_v53  ;;  %3095 = vmatprep.subr.bf16.mxu0 %v8865_v4  ;;  %3136 = vmatprep.subr.bf16.mxu1 %v8867_v5  ;;  %v8904_v3 = vld [vmem:[#allocation8 + $0x7e8] ss:$48 sps:$4 sm:$0xff]   ;;  %v8909_v4 = vld [vmem:[#allocation8 + $0x18c] ss:$48 sps:$4 sm:$0xff]  }
 0x17f   : > { %v8912_v5 = vld [vmem:[#allocation8 + $0x78c] ss:$48 sps:$4 sm:$0xff]  }
 0x180   : > { %v638_v58 = vadd.f32 %v637_v56, %v635_v55  ;;  %v8889_v56 = vld [vmem:[#allocation8 + $0x2a8] ss:$48 sps:$4 sm:$0xff]  }
 0x181   : > { %3096 = vmatpush2.bf16.msra.mxu0 %v8869_v6  ;;  %3137 = vmatpush2.bf16.msra.mxu1 %v8870_v7  ;;  %v8907_v6 = vld [vmem:[#allocation8 + $0x188] ss:$48 sps:$4 sm:$0xff]  }
 0x182   : > { %v639_v59 = vadd.f32 %v638_v58, %v636_v57  ;;  %3097 = vmatprep.subr.bf16.mxu0 %v8871_v8  ;;  %3138 = vmatprep.subr.bf16.mxu1 %v8873_v9  ;;  %v8892_v57 = vld [vmem:[#allocation8 + $0x8a8] ss:$48 sps:$4 sm:$0xff]   ;;  %v8915_v8 = vld [vmem:[#allocation8 + $0x12c] ss:$48 sps:$4 sm:$0xff]  }
 0x183   : > { %v8910_v7 = vld [vmem:[#allocation8 + $0x788] ss:$48 sps:$4 sm:$0xff]   ;;  %v8918_v9 = vld [vmem:[#allocation8 + $0x72c] ss:$48 sps:$4 sm:$0xff]  }
 0x184   : > { %640 = vadd.xlane.f32.xlu0 %v639_v59 }
 0x185   : > { %3098 = vmatpush2.bf16.msra.mxu0 %v8875_v10  ;;  %3139 = vmatpush2.bf16.msra.mxu1 %v8876_v11  ;;  %v8913_v10 = vld [vmem:[#allocation8 + $0x128] ss:$48 sps:$4 sm:$0xff]  }
 0x186   : > { %3099 = vmatprep.subr.bf16.mxu0 %v8877_v12  ;;  %3140 = vmatprep.subr.bf16.mxu1 %v8879_v13  ;;  %v8916_v11 = vld [vmem:[#allocation8 + $0x728] ss:$48 sps:$4 sm:$0xff]   ;;  %v8921_v12 = vld [vmem:[#allocation8 + $0xcc] ss:$48 sps:$4 sm:$0xff]  }
 0x187   : > { %v8924_v13 = vld [vmem:[#allocation8 + $0x6cc] ss:$48 sps:$4 sm:$0xff]  }
 0x189   : > { %3100 = vmatpush2.bf16.msra.mxu0 %v8881_v14  ;;  %3141 = vmatpush2.bf16.msra.mxu1 %v8882_v15  ;;  %v8919_v14 = vld [vmem:[#allocation8 + $0xc8] ss:$48 sps:$4 sm:$0xff]  }
 0x18a   : > { %3101 = vmatprep.subr.bf16.mxu0 %v8883_v16  ;;  %3142 = vmatprep.subr.bf16.mxu1 %v8885_v17  ;;  %v8922_v15 = vld [vmem:[#allocation8 + $0x6c8] ss:$48 sps:$4 sm:$0xff]   ;;  %v8927_v16 = vld [vmem:[#allocation8 + $0x6c] ss:$48 sps:$4 sm:$0xff]  }
 0x18b   : > { %v8930_v17 = vld [vmem:[#allocation8 + $0x66c] ss:$48 sps:$4 sm:$0xff]  }
 0x18d   : > { %3102 = vmatpush2.bf16.msra.mxu0 %v8887_v18  ;;  %3143 = vmatpush2.bf16.msra.mxu1 %v8888_v19  ;;  %v8925_v18 = vld [vmem:[#allocation8 + $0x68] ss:$48 sps:$4 sm:$0xff]  }
 0x18e   : > { %3153 = vmatprep.subr.bf16.mxu0 %v8891_v20  ;;  %3194 = vmatprep.subr.bf16.mxu1 %v8894_v21  ;;  %v8928_v19 = vld [vmem:[#allocation8 + $0x668] ss:$48 sps:$4 sm:$0xff]   ;;  %v8933_v20 = vld [vmem:[#allocation8 + $0xc] ss:$48 sps:$4 sm:$0xff]  }
 0x18f   : > { %v8936_v21 = vld [vmem:[#allocation8 + $0x60c] ss:$48 sps:$4 sm:$0xff]  }
 0x20d   : > { %v641_v22 = vpop.xlane.xlu0 %640 }
 0x20e   : > { %v642_v23 = vmul.f32 0.001953125, %v641_v22  ;;  %v8931_v22 = vld [vmem:[#allocation8 + $0x8] ss:$48 sps:$4 sm:$0xff]  }
 0x210   : > { %v643_v24 = vadd.f32 1e-05, %v642_v23  ;;  %v8934_v23 = vld [vmem:[#allocation8 + $0x608] ss:$48 sps:$4 sm:$0xff]  }
 0x212   : > { %9945 = vrsqrt.f32 %v643_v24  ;;  %v8939_v24 = vld [vmem:[#allocation8 + $0x5ac] ss:$48 sps:$4 sm:$0xff]  }
 0x21f   : > { %v9946_v37 = vpop.eup %9945 }
 0x220   : > { %v646_v42 = vmul.f32 %v9946_v37, %v10787_v50  ;;  %v648_v43 = vmul.f32 %v9946_v37, %v10793_v52  ;;  %v645_v44 = vmul.f32 %v9946_v37, %v10784_v49  ;;  %v647_v45 = vmul.f32 %v9946_v37, %v10790_v51  ;;  %v8897_v49 = vld [vmem:[#allocation8 + $0x24c] ss:$48 sps:$4 sm:$0xff]  }
 0x221   : > { %v8900_v51 = vld [vmem:[#allocation8 + $0x84c] ss:$48 sps:$4 sm:$0xff]  }
 0x222   : > { %v671_v46 = vmul.f32 %v657_v33, %v646_v42  ;;  %v673_v47 = vmul.f32 %v665_v34, %v648_v43  ;;  %v670_v48 = vmul.f32 %v653_v35, %v645_v44  ;;  %v672_v53 = vmul.f32 %v661_v36, %v647_v45  ;;  %v8945_v33 = vld [vmem:[#allocation8 + $0x54c] ss:$48 sps:$4 sm:$0xff]   ;;  %v8943_v35 = vld [vmem:[#allocation8 + $0x548] ss:$48 sps:$4 sm:$0xff]  }
 0x223   : > { %v8948_v34 = vld [vmem:[#allocation8 + $0xb4c] ss:$48 sps:$4 sm:$0xff]   ;;  %v8946_v36 = vld [vmem:[#allocation8 + $0xb48] ss:$48 sps:$4 sm:$0xff]  }
 0x224   : > { %v696_v54 = vadd.f32 %v682_v38, %v671_v46  ;;  %v698_v55 = vadd.f32 %v690_v39, %v673_v47  ;;  %v695_v58 = vadd.f32 %v678_v40, %v670_v48  ;;  %v697_v59 = vadd.f32 %v686_v41, %v672_v53  ;;  %v8951_v37 = vld [vmem:[#allocation8 + $0x4ec] ss:$48 sps:$4 sm:$0xff]   ;;  %v8949_v39 = vld [vmem:[#allocation8 + $0x4e8] ss:$48 sps:$4 sm:$0xff]  }
 0x225   : > { %v8954_v38 = vld [vmem:[#allocation8 + $0xaec] ss:$48 sps:$4 sm:$0xff]   ;;  %v8952_v40 = vld [vmem:[#allocation8 + $0xae8] ss:$48 sps:$4 sm:$0xff]  }
 0x226   : > { %v10829_v60 = vpack.c.bf16 %v696_v54, %v696_v54  ;;  %v10831_v61 = vpack.c.bf16 %v698_v55, %v698_v55  ;;  %v10833_v50 = vpack.c.bf16 %v695_v58, %v695_v58  ;;  %v10835_v52 = vpack.c.bf16 %v697_v59, %v697_v59  ;;  %v8957_v41 = vld [vmem:[#allocation8 + $0x48c] ss:$48 sps:$4 sm:$0xff]   ;;  %v8955_v43 = vld [vmem:[#allocation8 + $0x488] ss:$48 sps:$4 sm:$0xff]  }
 0x227   : > { %v8960_v42 = vld [vmem:[#allocation8 + $0xa8c] ss:$48 sps:$4 sm:$0xff]   ;;  %v8958_v44 = vld [vmem:[#allocation8 + $0xa88] ss:$48 sps:$4 sm:$0xff]  }
 0x228   : > { %3103 = vmatprep.mubr.bf16.mxu0 %v10829_v60  ;;  %3144 = vmatprep.mubr.bf16.mxu1 %v10831_v61  ;;  %v8963_v45 = vld [vmem:[#allocation8 + $0x42c] ss:$48 sps:$4 sm:$0xff]   ;;  %v8961_v47 = vld [vmem:[#allocation8 + $0x428] ss:$48 sps:$4 sm:$0xff]  }
 0x229   : > { %3104 = vmatmul.mubr.bf16.vlgmr.msra.gmra.mxu0 %v10833_v50  ;;  %3145 = vmatmul.mubr.bf16.vlgmr.msra.gmra.mxu1 %v10835_v52  ;;  %v8966_v46 = vld [vmem:[#allocation8 + $0xa2c] ss:$48 sps:$4 sm:$0xff]   ;;  %v8964_v48 = vld [vmem:[#allocation8 + $0xa28] ss:$48 sps:$4 sm:$0xff]  }
 0x22a   : > { %3154 = vmatpush1.bf16.msra.mxu0 %v8889_v56  ;;  %3195 = vmatpush1.bf16.msra.mxu1 %v8892_v57  ;;  %v8969_v53 = vld [vmem:[#allocation8 + $0x3cc] ss:$48 sps:$4 sm:$0xff]   ;;  %v8967_v55 = vld [vmem:[#allocation8 + $0x3c8] ss:$48 sps:$4 sm:$0xff]  }
 0x22b   : > { %3185 = vmatprep.mubr.bf16.mxu0 %v10829_v60  ;;  %3226 = vmatprep.mubr.bf16.mxu1 %v10831_v61  ;;  %v8972_v54 = vld [vmem:[#allocation8 + $0x9cc] ss:$48 sps:$4 sm:$0xff]   ;;  %v8970_v56 = vld [vmem:[#allocation8 + $0x9c8] ss:$48 sps:$4 sm:$0xff]  }
 0x22c   : > { %3155 = vmatprep.subr.bf16.mxu0 %v8897_v49  ;;  %3196 = vmatprep.subr.bf16.mxu1 %v8900_v51  ;;  %v8975_v57 = vld [vmem:[#allocation8 + $0x36c] ss:$48 sps:$4 sm:$0xff]   ;;  %v8973_v59 = vld [vmem:[#allocation8 + $0x368] ss:$48 sps:$4 sm:$0xff]  }
 0x22d   : > { %v8978_v58 = vld [vmem:[#allocation8 + $0x96c] ss:$48 sps:$4 sm:$0xff]   ;;  %v8976_v49 = vld [vmem:[#allocation8 + $0x968] ss:$48 sps:$4 sm:$0xff]  }
 0x22e   : > { %3156 = vmatpush1.bf16.msra.mxu0 %v8895_v62  ;;  %3197 = vmatpush1.bf16.msra.mxu1 %v8898_v63  ;;  %v8981_v51 = vld [vmem:[#allocation8 + $0x30c] ss:$48 sps:$4 sm:$0xff]   ;;  %v8979_v63 = vld [vmem:[#allocation8 + $0x308] ss:$48 sps:$4 sm:$0xff]  }
 0x22f   : > { %3157 = vmatprep.subr.bf16.mxu0 %v8903_v0  ;;  %3198 = vmatprep.subr.bf16.mxu1 %v8906_v1  ;;  %v8984_v62 = vld [vmem:[#allocation8 + $0x90c] ss:$48 sps:$4 sm:$0xff]   ;;  %v8982_v0 = vld [vmem:[#allocation8 + $0x908] ss:$48 sps:$4 sm:$0xff]   ;;  %v8987_v1 = vld [vmem:[#allocation8 + $0x2b4] ss:$48 sps:$4 sm:$0xff]  }
 0x232   : > { %3158 = vmatpush1.bf16.msra.mxu0 %v8901_v2  ;;  %3199 = vmatpush1.bf16.msra.mxu1 %v8904_v3  ;;  %v8990_v2 = vld [vmem:[#allocation8 + $0x8b4] ss:$48 sps:$4 sm:$0xff]   ;;  %v8985_v3 = vld [vmem:[#allocation8 + $0x2b0] ss:$48 sps:$4 sm:$0xff]  }
 0x233   : > { %3159 = vmatprep.subr.bf16.mxu0 %v8909_v4  ;;  %3200 = vmatprep.subr.bf16.mxu1 %v8912_v5  ;;  %v8988_v4 = vld [vmem:[#allocation8 + $0x8b0] ss:$48 sps:$4 sm:$0xff]   ;;  %v8993_v5 = vld [vmem:[#allocation8 + $0x254] ss:$48 sps:$4 sm:$0xff]  }
 0x236   : > { %3160 = vmatpush1.bf16.msra.mxu0 %v8907_v6  ;;  %3201 = vmatpush1.bf16.msra.mxu1 %v8910_v7  ;;  %v8996_v6 = vld [vmem:[#allocation8 + $0x854] ss:$48 sps:$4 sm:$0xff]   ;;  %v8991_v7 = vld [vmem:[#allocation8 + $0x250] ss:$48 sps:$4 sm:$0xff]  }
 0x237   : > { %3161 = vmatprep.subr.bf16.mxu0 %v8915_v8  ;;  %3202 = vmatprep.subr.bf16.mxu1 %v8918_v9  ;;  %v8994_v8 = vld [vmem:[#allocation8 + $0x850] ss:$48 sps:$4 sm:$0xff]   ;;  %v8999_v9 = vld [vmem:[#allocation8 + $0x1f4] ss:$48 sps:$4 sm:$0xff]  }
 0x23a   : > { %3162 = vmatpush1.bf16.msra.mxu0 %v8913_v10  ;;  %3203 = vmatpush1.bf16.msra.mxu1 %v8916_v11  ;;  %v9002_v10 = vld [vmem:[#allocation8 + $0x7f4] ss:$48 sps:$4 sm:$0xff]   ;;  %v8997_v11 = vld [vmem:[#allocation8 + $0x1f0] ss:$48 sps:$4 sm:$0xff]  }
 0x23b   : > { %3163 = vmatprep.subr.bf16.mxu0 %v8921_v12  ;;  %3204 = vmatprep.subr.bf16.mxu1 %v8924_v13  ;;  %v9000_v12 = vld [vmem:[#allocation8 + $0x7f0] ss:$48 sps:$4 sm:$0xff]   ;;  %v9005_v13 = vld [vmem:[#allocation8 + $0x194] ss:$48 sps:$4 sm:$0xff]  }
 0x23e   : > { %3164 = vmatpush1.bf16.msra.mxu0 %v8919_v14  ;;  %3205 = vmatpush1.bf16.msra.mxu1 %v8922_v15  ;;  %v9008_v14 = vld [vmem:[#allocation8 + $0x794] ss:$48 sps:$4 sm:$0xff]   ;;  %v9003_v15 = vld [vmem:[#allocation8 + $0x190] ss:$48 sps:$4 sm:$0xff]  }
 0x23f   : > { %3165 = vmatprep.subr.bf16.mxu0 %v8927_v16  ;;  %3206 = vmatprep.subr.bf16.mxu1 %v8930_v17  ;;  %v9006_v16 = vld [vmem:[#allocation8 + $0x790] ss:$48 sps:$4 sm:$0xff]   ;;  %v9011_v17 = vld [vmem:[#allocation8 + $0x134] ss:$48 sps:$4 sm:$0xff]  }
 0x242   : > { %3166 = vmatpush1.bf16.msra.mxu0 %v8925_v18  ;;  %3207 = vmatpush1.bf16.msra.mxu1 %v8928_v19  ;;  %v9014_v18 = vld [vmem:[#allocation8 + $0x734] ss:$48 sps:$4 sm:$0xff]   ;;  %v9009_v19 = vld [vmem:[#allocation8 + $0x130] ss:$48 sps:$4 sm:$0xff]  }
 0x243   : > { %3167 = vmatprep.subr.bf16.mxu0 %v8933_v20  ;;  %3208 = vmatprep.subr.bf16.mxu1 %v8936_v21  ;;  %v9012_v20 = vld [vmem:[#allocation8 + $0x730] ss:$48 sps:$4 sm:$0xff]   ;;  %v9017_v21 = vld [vmem:[#allocation8 + $0xd4] ss:$48 sps:$4 sm:$0xff]  }
 0x246   : > { %3168 = vmatpush1.bf16.msra.mxu0 %v8931_v22  ;;  %3209 = vmatpush1.bf16.msra.mxu1 %v8934_v23  ;;  %v9020_v22 = vld [vmem:[#allocation8 + $0x6d4] ss:$48 sps:$4 sm:$0xff]   ;;  %v9015_v23 = vld [vmem:[#allocation8 + $0xd0] ss:$48 sps:$4 sm:$0xff]  }
 0x247   : > { %3169 = vmatprep.subr.bf16.mxu0 %v8939_v24  ;;  %3210 = vmatprep.subr.bf16.mxu1 %v8942_v25  ;;  %v9018_v24 = vld [vmem:[#allocation8 + $0x6d0] ss:$48 sps:$4 sm:$0xff]   ;;  %v9023_v25 = vld [vmem:[#allocation8 + $0x74] ss:$48 sps:$4 sm:$0xff]  }
 0x24a   : > { %3170 = vmatpush2.bf16.msra.mxu0 %v8937_v31  ;;  %3211 = vmatpush2.bf16.msra.mxu1 %v8940_v32  ;;  %v9026_v31 = vld [vmem:[#allocation8 + $0x674] ss:$48 sps:$4 sm:$0xff]   ;;  %v9021_v32 = vld [vmem:[#allocation8 + $0x70] ss:$48 sps:$4 sm:$0xff]  }
 0x24b   : > { %3171 = vmatprep.subr.bf16.mxu0 %v8945_v33  ;;  %3212 = vmatprep.subr.bf16.mxu1 %v8948_v34  ;;  %v9024_v33 = vld [vmem:[#allocation8 + $0x670] ss:$48 sps:$4 sm:$0xff]   ;;  %v9029_v34 = vld [vmem:[#allocation8 + $0x14] ss:$48 sps:$4 sm:$0xff]  }
 0x24e   : > { %3172 = vmatpush2.bf16.msra.mxu0 %v8943_v35  ;;  %3213 = vmatpush2.bf16.msra.mxu1 %v8946_v36  ;;  %v9032_v35 = vld [vmem:[#allocation8 + $0x614] ss:$48 sps:$4 sm:$0xff]   ;;  %v9027_v36 = vld [vmem:[#allocation8 + $0x10] ss:$48 sps:$4 sm:$0xff]  }
 0x24f   : > { %3173 = vmatprep.subr.bf16.mxu0 %v8951_v37  ;;  %3214 = vmatprep.subr.bf16.mxu1 %v8954_v38  ;;  %v9030_v37 = vld [vmem:[#allocation8 + $0x610] ss:$48 sps:$4 sm:$0xff]   ;;  %v9035_v38 = vld [vmem:[#allocation8 + $0x5b4] ss:$48 sps:$4 sm:$0xff]  }
 0x252   : > { %3174 = vmatpush2.bf16.msra.mxu0 %v8949_v39  ;;  %3215 = vmatpush2.bf16.msra.mxu1 %v8952_v40  ;;  %v9038_v39 = vld [vmem:[#allocation8 + $0xbb4] ss:$48 sps:$4 sm:$0xff]   ;;  %v9033_v40 = vld [vmem:[#allocation8 + $0x5b0] ss:$48 sps:$4 sm:$0xff]  }
 0x253   : > { %3175 = vmatprep.subr.bf16.mxu0 %v8957_v41  ;;  %3216 = vmatprep.subr.bf16.mxu1 %v8960_v42  ;;  %v9036_v41 = vld [vmem:[#allocation8 + $0xbb0] ss:$48 sps:$4 sm:$0xff]   ;;  %v9041_v42 = vld [vmem:[#allocation8 + $0x554] ss:$48 sps:$4 sm:$0xff]  }
 0x256   : > { %3176 = vmatpush2.bf16.msra.mxu0 %v8955_v43  ;;  %3217 = vmatpush2.bf16.msra.mxu1 %v8958_v44  ;;  %v9044_v43 = vld [vmem:[#allocation8 + $0xb54] ss:$48 sps:$4 sm:$0xff]   ;;  %v9039_v44 = vld [vmem:[#allocation8 + $0x550] ss:$48 sps:$4 sm:$0xff]  }
 0x257   : > { %3177 = vmatprep.subr.bf16.mxu0 %v8963_v45  ;;  %3218 = vmatprep.subr.bf16.mxu1 %v8966_v46  ;;  %v9042_v45 = vld [vmem:[#allocation8 + $0xb50] ss:$48 sps:$4 sm:$0xff]   ;;  %v9047_v46 = vld [vmem:[#allocation8 + $0x4f4] ss:$48 sps:$4 sm:$0xff]  }
 0x25a   : > { %3178 = vmatpush2.bf16.msra.mxu0 %v8961_v47  ;;  %3219 = vmatpush2.bf16.msra.mxu1 %v8964_v48  ;;  %v9050_v47 = vld [vmem:[#allocation8 + $0xaf4] ss:$48 sps:$4 sm:$0xff]   ;;  %v9045_v48 = vld [vmem:[#allocation8 + $0x4f0] ss:$48 sps:$4 sm:$0xff]  }
 0x25b   : > { %3179 = vmatprep.subr.bf16.mxu0 %v8969_v53  ;;  %3220 = vmatprep.subr.bf16.mxu1 %v8972_v54  ;;  %v9048_v53 = vld [vmem:[#allocation8 + $0xaf0] ss:$48 sps:$4 sm:$0xff]   ;;  %v9053_v54 = vld [vmem:[#allocation8 + $0x494] ss:$48 sps:$4 sm:$0xff]  }
 0x25e   : > { %3180 = vmatpush2.bf16.msra.mxu0 %v8967_v55  ;;  %3221 = vmatpush2.bf16.msra.mxu1 %v8970_v56  ;;  %v9056_v55 = vld [vmem:[#allocation8 + $0xa94] ss:$48 sps:$4 sm:$0xff]   ;;  %v9051_v56 = vld [vmem:[#allocation8 + $0x490] ss:$48 sps:$4 sm:$0xff]  }
 0x25f   : > { %3181 = vmatprep.subr.bf16.mxu0 %v8975_v57  ;;  %3222 = vmatprep.subr.bf16.mxu1 %v8978_v58  ;;  %v9054_v57 = vld [vmem:[#allocation8 + $0xa90] ss:$48 sps:$4 sm:$0xff]   ;;  %v9059_v58 = vld [vmem:[#allocation8 + $0x434] ss:$48 sps:$4 sm:$0xff]  }
 0x262   : > { %3182 = vmatpush2.bf16.msra.mxu0 %v8973_v59  ;;  %3223 = vmatpush2.bf16.msra.mxu1 %v8976_v49  ;;  %v9062_v59 = vld [vmem:[#allocation8 + $0xa34] ss:$48 sps:$4 sm:$0xff]   ;;  %v9057_v49 = vld [vmem:[#allocation8 + $0x430] ss:$48 sps:$4 sm:$0xff]  }
 0x263   : > { %3183 = vmatprep.subr.bf16.mxu0 %v8981_v51  ;;  %3224 = vmatprep.subr.bf16.mxu1 %v8984_v62  ;;  %v9060_v51 = vld [vmem:[#allocation8 + $0xa30] ss:$48 sps:$4 sm:$0xff]   ;;  %v9065_v62 = vld [vmem:[#allocation8 + $0x3d4] ss:$48 sps:$4 sm:$0xff]  }
 0x266   : > { %3184 = vmatpush2.bf16.msra.mxu0 %v8979_v63  ;;  %3225 = vmatpush2.bf16.msra.mxu1 %v8982_v0  ;;  %v9068_v63 = vld [vmem:[#allocation8 + $0x9d4] ss:$48 sps:$4 sm:$0xff]   ;;  %v9063_v0 = vld [vmem:[#allocation8 + $0x3d0] ss:$48 sps:$4 sm:$0xff]  }
 0x267   : > { %3235 = vmatprep.subr.bf16.mxu0 %v8987_v1  ;;  %3276 = vmatprep.subr.bf16.mxu1 %v8990_v2  ;;  %v9066_v1 = vld [vmem:[#allocation8 + $0x9d0] ss:$48 sps:$4 sm:$0xff]   ;;  %v9071_v2 = vld [vmem:[#allocation8 + $0x374] ss:$48 sps:$4 sm:$0xff]  }
 0x269   : > { %3186 = vmatmul.mubr.bf16.vlgmr.msra.gmra.mxu0 %v10833_v50  ;;  %3227 = vmatmul.mubr.bf16.vlgmr.msra.gmra.mxu1 %v10835_v52 }
 0x26a   : > { %3236 = vmatpush1.bf16.msra.mxu0 %v8985_v3  ;;  %3267 = vmatprep.mubr.bf16.mxu0 %v10829_v60  ;;  %v9074_v3 = vld [vmem:[#allocation8 + $0x974] ss:$48 sps:$4 sm:$0xff]  }
 0x26b   : > { %3277 = vmatpush1.bf16.msra.mxu1 %v8988_v4  ;;  %3308 = vmatprep.mubr.bf16.mxu1 %v10831_v61  ;;  %v9069_v4 = vld [vmem:[#allocation8 + $0x370] ss:$48 sps:$4 sm:$0xff]  }
 0x26c   : > { %3237 = vmatprep.subr.bf16.mxu0 %v8993_v5  ;;  %3278 = vmatprep.subr.bf16.mxu1 %v8996_v6  ;;  %v9072_v5 = vld [vmem:[#allocation8 + $0x970] ss:$48 sps:$4 sm:$0xff]   ;;  %v9077_v6 = vld [vmem:[#allocation8 + $0x314] ss:$48 sps:$4 sm:$0xff]  }
 0x26e   : > { %3238 = vmatpush1.bf16.msra.mxu0 %v8991_v7  ;;  %v9080_v7 = vld [vmem:[#allocation8 + $0x914] ss:$48 sps:$4 sm:$0xff]  }
 0x26f   : > { %3279 = vmatpush1.bf16.msra.mxu1 %v8994_v8  ;;  %3239 = vmatprep.subr.bf16.mxu0 %v8999_v9  ;;  %v9075_v8 = vld [vmem:[#allocation8 + $0x310] ss:$48 sps:$4 sm:$0xff]  }
 0x270   : > { %3280 = vmatprep.subr.bf16.mxu1 %v9002_v10  ;;  %v9078_v9 = vld [vmem:[#allocation8 + $0x910] ss:$48 sps:$4 sm:$0xff]   ;;  %v9083_v10 = vld [vmem:[#allocation8 + $0x2bc] ss:$48 sps:$4 sm:$0xff]  }
 0x272   : > { %3240 = vmatpush1.bf16.msra.mxu0 %v8997_v11  ;;  %v9086_v11 = vld [vmem:[#allocation8 + $0x8bc] ss:$48 sps:$4 sm:$0xff]  }
 0x273   : > { %3281 = vmatpush1.bf16.msra.mxu1 %v9000_v12  ;;  %3241 = vmatprep.subr.bf16.mxu0 %v9005_v13  ;;  %v9081_v12 = vld [vmem:[#allocation8 + $0x2b8] ss:$48 sps:$4 sm:$0xff]  }
 0x274   : > { %3282 = vmatprep.subr.bf16.mxu1 %v9008_v14  ;;  %v9084_v13 = vld [vmem:[#allocation8 + $0x8b8] ss:$48 sps:$4 sm:$0xff]   ;;  %v9089_v14 = vld [vmem:[#allocation8 + $0x25c] ss:$48 sps:$4 sm:$0xff]  }
 0x276   : > { %3242 = vmatpush1.bf16.msra.mxu0 %v9003_v15  ;;  %v9092_v15 = vld [vmem:[#allocation8 + $0x85c] ss:$48 sps:$4 sm:$0xff]  }
 0x277   : > { %3283 = vmatpush1.bf16.msra.mxu1 %v9006_v16  ;;  %3243 = vmatprep.subr.bf16.mxu0 %v9011_v17  ;;  %v9087_v16 = vld [vmem:[#allocation8 + $0x258] ss:$48 sps:$4 sm:$0xff]  }
 0x278   : > { %3284 = vmatprep.subr.bf16.mxu1 %v9014_v18  ;;  %v9090_v17 = vld [vmem:[#allocation8 + $0x858] ss:$48 sps:$4 sm:$0xff]   ;;  %v9095_v18 = vld [vmem:[#allocation8 + $0x1fc] ss:$48 sps:$4 sm:$0xff]  }
 0x27a   : > { %3244 = vmatpush1.bf16.msra.mxu0 %v9009_v19  ;;  %v9098_v19 = vld [vmem:[#allocation8 + $0x7fc] ss:$48 sps:$4 sm:$0xff]  }
 0x27b   : > { %3285 = vmatpush1.bf16.msra.mxu1 %v9012_v20  ;;  %3245 = vmatprep.subr.bf16.mxu0 %v9017_v21  ;;  %v9093_v20 = vld [vmem:[#allocation8 + $0x1f8] ss:$48 sps:$4 sm:$0xff]  }
 0x27c   : > { %3286 = vmatprep.subr.bf16.mxu1 %v9020_v22  ;;  %v9096_v21 = vld [vmem:[#allocation8 + $0x7f8] ss:$48 sps:$4 sm:$0xff]   ;;  %v9101_v22 = vld [vmem:[#allocation8 + $0x19c] ss:$48 sps:$4 sm:$0xff]  }
 0x27e   : > { %3246 = vmatpush1.bf16.msra.mxu0 %v9015_v23  ;;  %v9104_v23 = vld [vmem:[#allocation8 + $0x79c] ss:$48 sps:$4 sm:$0xff]  }
 0x27f   : > { %3287 = vmatpush1.bf16.msra.mxu1 %v9018_v24  ;;  %3247 = vmatprep.subr.bf16.mxu0 %v9023_v25  ;;  %v9099_v24 = vld [vmem:[#allocation8 + $0x198] ss:$48 sps:$4 sm:$0xff]  }
 0x280   : > { %3288 = vmatprep.subr.bf16.mxu1 %v9026_v31  ;;  %v9102_v25 = vld [vmem:[#allocation8 + $0x798] ss:$48 sps:$4 sm:$0xff]   ;;  %v9107_v31 = vld [vmem:[#allocation8 + $0x13c] ss:$48 sps:$4 sm:$0xff]  }
 0x282   : > { %3248 = vmatpush1.bf16.msra.mxu0 %v9021_v32  ;;  %v9110_v32 = vld [vmem:[#allocation8 + $0x73c] ss:$48 sps:$4 sm:$0xff]  }
 0x283   : > { %3289 = vmatpush1.bf16.msra.mxu1 %v9024_v33  ;;  %3249 = vmatprep.subr.bf16.mxu0 %v9029_v34  ;;  %v9105_v33 = vld [vmem:[#allocation8 + $0x138] ss:$48 sps:$4 sm:$0xff]  }
 0x284   : > { %3290 = vmatprep.subr.bf16.mxu1 %v9032_v35  ;;  %v9108_v34 = vld [vmem:[#allocation8 + $0x738] ss:$48 sps:$4 sm:$0xff]   ;;  %v9113_v35 = vld [vmem:[#allocation8 + $0xdc] ss:$48 sps:$4 sm:$0xff]  }
 0x286   : > { %3250 = vmatpush1.bf16.msra.mxu0 %v9027_v36  ;;  %v9116_v36 = vld [vmem:[#allocation8 + $0x6dc] ss:$48 sps:$4 sm:$0xff]  }
 0x287   : > { %3291 = vmatpush1.bf16.msra.mxu1 %v9030_v37  ;;  %3251 = vmatprep.subr.bf16.mxu0 %v9035_v38  ;;  %v9111_v37 = vld [vmem:[#allocation8 + $0xd8] ss:$48 sps:$4 sm:$0xff]  }
 0x288   : > { %3292 = vmatprep.subr.bf16.mxu1 %v9038_v39  ;;  %v9114_v38 = vld [vmem:[#allocation8 + $0x6d8] ss:$48 sps:$4 sm:$0xff]   ;;  %v9119_v39 = vld [vmem:[#allocation8 + $0x7c] ss:$48 sps:$4 sm:$0xff]  }
 0x28a   : > { %3252 = vmatpush2.bf16.msra.mxu0 %v9033_v40  ;;  %v9122_v40 = vld [vmem:[#allocation8 + $0x67c] ss:$48 sps:$4 sm:$0xff]  }
 0x28b   : > { %3293 = vmatpush2.bf16.msra.mxu1 %v9036_v41  ;;  %3253 = vmatprep.subr.bf16.mxu0 %v9041_v42  ;;  %v9117_v41 = vld [vmem:[#allocation8 + $0x78] ss:$48 sps:$4 sm:$0xff]  }
 0x28c   : > { %3294 = vmatprep.subr.bf16.mxu1 %v9044_v43  ;;  %v9120_v42 = vld [vmem:[#allocation8 + $0x678] ss:$48 sps:$4 sm:$0xff]   ;;  %v9125_v43 = vld [vmem:[#allocation8 + $0x1c] ss:$48 sps:$4 sm:$0xff]  }
 0x28e   : > { %3254 = vmatpush2.bf16.msra.mxu0 %v9039_v44  ;;  %v9128_v44 = vld [vmem:[#allocation8 + $0x61c] ss:$48 sps:$4 sm:$0xff]  }
 0x28f   : > { %3295 = vmatpush2.bf16.msra.mxu1 %v9042_v45  ;;  %3255 = vmatprep.subr.bf16.mxu0 %v9047_v46  ;;  %v9123_v45 = vld [vmem:[#allocation8 + $0x18] ss:$48 sps:$4 sm:$0xff]  }
 0x290   : > { %3296 = vmatprep.subr.bf16.mxu1 %v9050_v47  ;;  %v9126_v46 = vld [vmem:[#allocation8 + $0x618] ss:$48 sps:$4 sm:$0xff]   ;;  %v9131_v47 = vld [vmem:[#allocation8 + $0x5bc] ss:$48 sps:$4 sm:$0xff]  }
 0x292   : > { %3256 = vmatpush2.bf16.msra.mxu0 %v9045_v48  ;;  %v9134_v48 = vld [vmem:[#allocation8 + $0xbbc] ss:$48 sps:$4 sm:$0xff]  }
 0x293   : > { %3297 = vmatpush2.bf16.msra.mxu1 %v9048_v53  ;;  %3257 = vmatprep.subr.bf16.mxu0 %v9053_v54  ;;  %v9129_v53 = vld [vmem:[#allocation8 + $0x5b8] ss:$48 sps:$4 sm:$0xff]  }
 0x294   : > { %3298 = vmatprep.subr.bf16.mxu1 %v9056_v55  ;;  %v9132_v54 = vld [vmem:[#allocation8 + $0xbb8] ss:$48 sps:$4 sm:$0xff]   ;;  %v9137_v55 = vld [vmem:[#allocation8 + $0x55c] ss:$48 sps:$4 sm:$0xff]  }
 0x296   : > { %3258 = vmatpush2.bf16.msra.mxu0 %v9051_v56  ;;  %v9140_v56 = vld [vmem:[#allocation8 + $0xb5c] ss:$48 sps:$4 sm:$0xff]  }
 0x297   : > { %3299 = vmatpush2.bf16.msra.mxu1 %v9054_v57  ;;  %3259 = vmatprep.subr.bf16.mxu0 %v9059_v58  ;;  %v9135_v57 = vld [vmem:[#allocation8 + $0x558] ss:$48 sps:$4 sm:$0xff]  }
 0x298   : > { %3300 = vmatprep.subr.bf16.mxu1 %v9062_v59  ;;  %v9138_v58 = vld [vmem:[#allocation8 + $0xb58] ss:$48 sps:$4 sm:$0xff]   ;;  %v9143_v59 = vld [vmem:[#allocation8 + $0x4fc] ss:$48 sps:$4 sm:$0xff]  }
 0x29a   : > { %3260 = vmatpush2.bf16.msra.mxu0 %v9057_v49  ;;  %v9146_v49 = vld [vmem:[#allocation8 + $0xafc] ss:$48 sps:$4 sm:$0xff]  }
 0x29b   : > { %3301 = vmatpush2.bf16.msra.mxu1 %v9060_v51  ;;  %3261 = vmatprep.subr.bf16.mxu0 %v9065_v62  ;;  %v9141_v51 = vld [vmem:[#allocation8 + $0x4f8] ss:$48 sps:$4 sm:$0xff]  }
 0x29c   : > { %3302 = vmatprep.subr.bf16.mxu1 %v9068_v63  ;;  %v9144_v62 = vld [vmem:[#allocation8 + $0xaf8] ss:$48 sps:$4 sm:$0xff]   ;;  %v9149_v63 = vld [vmem:[#allocation8 + $0x49c] ss:$48 sps:$4 sm:$0xff]  }
 0x29e   : > { %3262 = vmatpush2.bf16.msra.mxu0 %v9063_v0  ;;  %v9152_v0 = vld [vmem:[#allocation8 + $0xa9c] ss:$48 sps:$4 sm:$0xff]  }
 0x29f   : > { %3303 = vmatpush2.bf16.msra.mxu1 %v9066_v1  ;;  %3263 = vmatprep.subr.bf16.mxu0 %v9071_v2  ;;  %v9147_v1 = vld [vmem:[#allocation8 + $0x498] ss:$48 sps:$4 sm:$0xff]  }
 0x2a0   : > { %3304 = vmatprep.subr.bf16.mxu1 %v9074_v3  ;;  %v9150_v2 = vld [vmem:[#allocation8 + $0xa98] ss:$48 sps:$4 sm:$0xff]   ;;  %v9155_v3 = vld [vmem:[#allocation8 + $0x43c] ss:$48 sps:$4 sm:$0xff]  }
 0x2a2   : > { %3264 = vmatpush2.bf16.msra.mxu0 %v9069_v4  ;;  %v9158_v4 = vld [vmem:[#allocation8 + $0xa3c] ss:$48 sps:$4 sm:$0xff]  }
 0x2a3   : > { %3305 = vmatpush2.bf16.msra.mxu1 %v9072_v5  ;;  %3265 = vmatprep.subr.bf16.mxu0 %v9077_v6  ;;  %v9153_v5 = vld [vmem:[#allocation8 + $0x438] ss:$48 sps:$4 sm:$0xff]  }
 0x2a4   : > { %3306 = vmatprep.subr.bf16.mxu1 %v9080_v7  ;;  %v9156_v6 = vld [vmem:[#allocation8 + $0xa38] ss:$48 sps:$4 sm:$0xff]   ;;  %v9161_v7 = vld [vmem:[#allocation8 + $0x3dc] ss:$48 sps:$4 sm:$0xff]  }
 0x2a6   : > { %3266 = vmatpush2.bf16.msra.mxu0 %v9075_v8  ;;  %v9164_v8 = vld [vmem:[#allocation8 + $0x9dc] ss:$48 sps:$4 sm:$0xff]  }
 0x2a7   : > { %3307 = vmatpush2.bf16.msra.mxu1 %v9078_v9  ;;  %3317 = vmatprep.subr.bf16.mxu0 %v9083_v10  ;;  %v9159_v9 = vld [vmem:[#allocation8 + $0x3d8] ss:$48 sps:$4 sm:$0xff]  }
 0x2a8   : > { %3358 = vmatprep.subr.bf16.mxu1 %v9086_v11  ;;  %v9162_v10 = vld [vmem:[#allocation8 + $0x9d8] ss:$48 sps:$4 sm:$0xff]   ;;  %v9167_v11 = vld [vmem:[#allocation8 + $0x37c] ss:$48 sps:$4 sm:$0xff]  }
 0x2a9   : > { %3268 = vmatmul.mubr.bf16.vlgmr.msra.gmra.mxu0 %v10833_v50 }
 0x2aa   : > { %3309 = vmatmul.mubr.bf16.vlgmr.msra.gmra.mxu1 %v10835_v52  ;;  %3318 = vmatpush1.bf16.msra.mxu0 %v9081_v12  ;;  %v9170_v12 = vld [vmem:[#allocation8 + $0x97c] ss:$48 sps:$4 sm:$0xff]  }
 0x2ab   : > { %3349 = vmatprep.mubr.bf16.mxu0 %v10829_v60  ;;  %3359 = vmatpush1.bf16.msra.mxu1 %v9084_v13  ;;  %v9165_v13 = vld [vmem:[#allocation8 + $0x378] ss:$48 sps:$4 sm:$0xff]  }
 0x2ac   : > { %3390 = vmatprep.mubr.bf16.mxu1 %v10831_v61  ;;  %3319 = vmatprep.subr.bf16.mxu0 %v9089_v14  ;;  %v9168_v14 = vld [vmem:[#allocation8 + $0x978] ss:$48 sps:$4 sm:$0xff]  }
 0x2ad   : > { %3360 = vmatprep.subr.bf16.mxu1 %v9092_v15  ;;  %v9173_v15 = vld [vmem:[#allocation8 + $0x31c] ss:$48 sps:$4 sm:$0xff]  }
 0x2ae   : > { %3320 = vmatpush1.bf16.msra.mxu0 %v9087_v16  ;;  %v9176_v16 = vld [vmem:[#allocation8 + $0x91c] ss:$48 sps:$4 sm:$0xff]  }
 0x2af   : > { %3361 = vmatpush1.bf16.msra.mxu1 %v9090_v17  ;;  %3321 = vmatprep.subr.bf16.mxu0 %v9095_v18  ;;  %v9171_v17 = vld [vmem:[#allocation8 + $0x318] ss:$48 sps:$4 sm:$0xff]  }
 0x2b0   : > { %3362 = vmatprep.subr.bf16.mxu1 %v9098_v19  ;;  %v9174_v18 = vld [vmem:[#allocation8 + $0x918] ss:$48 sps:$4 sm:$0xff]   ;;  %v9179_v19 = vld [vmem:[#allocation8 + $0x2c4] ss:$48 sps:$4 sm:$0xff]  }
 0x2b2   : > { %3322 = vmatpush1.bf16.msra.mxu0 %v9093_v20  ;;  %v10851_v20 = vld [vmem:[#allocation10] sm:$0xff] }
 0x2b3   : > { %3363 = vmatpush1.bf16.msra.mxu1 %v9096_v21  ;;  %3323 = vmatprep.subr.bf16.mxu0 %v9101_v22  ;;  %v9182_v21 = vld [vmem:[#allocation8 + $0x8c4] ss:$48 sps:$4 sm:$0xff]   ;;  %v9177_v22 = vld [vmem:[#allocation8 + $0x2c0] ss:$48 sps:$4 sm:$0xff]  }
 0x2b4   : > { %3364 = vmatprep.subr.bf16.mxu1 %v9104_v23  ;;  %v1094_v23 = vrot.slane %v10851_v20, %v10812_v29 }
 0x2b6   : > { %3324 = vmatpush1.bf16.msra.mxu0 %v9099_v24  ;;  %v9180_v24 = vld [vmem:[#allocation8 + $0x8c0] ss:$48 sps:$4 sm:$0xff]  }
 0x2b7   : > { %3365 = vmatpush1.bf16.msra.mxu1 %v9102_v25  ;;  %3325 = vmatprep.subr.bf16.mxu0 %v9107_v31  ;;  %v1098_v25 = vrot.slane %v10851_v20, %v10806_v27  ;;  %v9185_v31 = vld [vmem:[#allocation8 + $0x264] ss:$48 sps:$4 sm:$0xff]  }
 0x2b8   : > { %3366 = vmatprep.subr.bf16.mxu1 %v9110_v32 }
 0x2ba   : > { %3326 = vmatpush1.bf16.msra.mxu0 %v9105_v33 }
 0x2bb   : > { %3367 = vmatpush1.bf16.msra.mxu1 %v9108_v34  ;;  %3327 = vmatprep.subr.bf16.mxu0 %v9113_v35  ;;  %v9188_v34 = vld [vmem:[#allocation8 + $0x864] ss:$48 sps:$4 sm:$0xff]  }
 0x2bc   : > { %3368 = vmatprep.subr.bf16.mxu1 %v9116_v36  ;;  %v9183_v36 = vld [vmem:[#allocation8 + $0x260] ss:$48 sps:$4 sm:$0xff]  }
 0x2be   : > { %3328 = vmatpush1.bf16.msra.mxu0 %v9111_v37 }
 0x2bf   : > { %3369 = vmatpush1.bf16.msra.mxu1 %v9114_v38  ;;  %3329 = vmatprep.subr.bf16.mxu0 %v9119_v39  ;;  %v9186_v39 = vld [vmem:[#allocation8 + $0x860] ss:$48 sps:$4 sm:$0xff]  }
 0x2c0   : > { %3370 = vmatprep.subr.bf16.mxu1 %v9122_v40  ;;  %v9191_v40 = vld [vmem:[#allocation8 + $0x204] ss:$48 sps:$4 sm:$0xff]  }
 0x2c2   : > { %3330 = vmatpush1.bf16.msra.mxu0 %v9117_v41 }
 0x2c3   : > { %3371 = vmatpush1.bf16.msra.mxu1 %v9120_v42  ;;  %3331 = vmatprep.subr.bf16.mxu0 %v9125_v43  ;;  %v9194_v43 = vld [vmem:[#allocation8 + $0x804] ss:$48 sps:$4 sm:$0xff]  }
 0x2c4   : > { %3372 = vmatprep.subr.bf16.mxu1 %v9128_v44 }
 0x2c6   : > { %3332 = vmatpush1.bf16.msra.mxu0 %v9123_v45 }
 0x2c7   : > { %3373 = vmatpush1.bf16.msra.mxu1 %v9126_v46  ;;  %3333 = vmatprep.subr.bf16.mxu0 %v9131_v47  ;;  %v9189_v47 = vld [vmem:[#allocation8 + $0x200] ss:$48 sps:$4 sm:$0xff]  }
 0x2c8   : > { %3374 = vmatprep.subr.bf16.mxu1 %v9134_v48 }
 0x2ca   : > { %3334 = vmatpush2.bf16.msra.mxu0 %v9129_v53 }
 0x2cb   : > { %3375 = vmatpush2.bf16.msra.mxu1 %v9132_v54  ;;  %3335 = vmatprep.subr.bf16.mxu0 %v9137_v55  ;;  %v9192_v54 = vld [vmem:[#allocation8 + $0x800] ss:$48 sps:$4 sm:$0xff]   ;;  %v9197_v55 = vld [vmem:[#allocation8 + $0x1a4] ss:$48 sps:$4 sm:$0xff]  }
 0x2cc   : > { %3376 = vmatprep.subr.bf16.mxu1 %v9140_v56  ;;  %v9200_v56 = vld [vmem:[#allocation8 + $0x7a4] ss:$48 sps:$4 sm:$0xff]  }
 0x2ce   : > { %3336 = vmatpush2.bf16.msra.mxu0 %v9135_v57  ;;  %v9195_v57 = vld [vmem:[#allocation8 + $0x1a0] ss:$48 sps:$4 sm:$0xff]  }
 0x2cf   : > { %3377 = vmatpush2.bf16.msra.mxu1 %v9138_v58  ;;  %3337 = vmatprep.subr.bf16.mxu0 %v9143_v59  ;;  %v9198_v58 = vld [vmem:[#allocation8 + $0x7a0] ss:$48 sps:$4 sm:$0xff]   ;;  %v9203_v59 = vld [vmem:[#allocation8 + $0x144] ss:$48 sps:$4 sm:$0xff]  }
 0x2d0   : > { %3378 = vmatprep.subr.bf16.mxu1 %v9146_v49  ;;  %v9206_v49 = vld [vmem:[#allocation8 + $0x744] ss:$48 sps:$4 sm:$0xff]  }
 0x2d2   : > { %3338 = vmatpush2.bf16.msra.mxu0 %v9141_v51  ;;  %v9201_v51 = vld [vmem:[#allocation8 + $0x140] ss:$48 sps:$4 sm:$0xff]  }
 0x2d3   : > { %3379 = vmatpush2.bf16.msra.mxu1 %v9144_v62  ;;  %3339 = vmatprep.subr.bf16.mxu0 %v9149_v63  ;;  %v9204_v62 = vld [vmem:[#allocation8 + $0x740] ss:$48 sps:$4 sm:$0xff]   ;;  %v9209_v63 = vld [vmem:[#allocation8 + $0xe4] ss:$48 sps:$4 sm:$0xff]  }
 0x2d4   : > { %3380 = vmatprep.subr.bf16.mxu1 %v9152_v0  ;;  %v9212_v0 = vld [vmem:[#allocation8 + $0x6e4] ss:$48 sps:$4 sm:$0xff]  }
 0x2d6   : > { %3340 = vmatpush2.bf16.msra.mxu0 %v9147_v1  ;;  %v9207_v1 = vld [vmem:[#allocation8 + $0xe0] ss:$48 sps:$4 sm:$0xff]  }
 0x2d7   : > { %3381 = vmatpush2.bf16.msra.mxu1 %v9150_v2  ;;  %3341 = vmatprep.subr.bf16.mxu0 %v9155_v3  ;;  %v9210_v2 = vld [vmem:[#allocation8 + $0x6e0] ss:$48 sps:$4 sm:$0xff]   ;;  %v9215_v3 = vld [vmem:[#allocation8 + $0x84] ss:$48 sps:$4 sm:$0xff]  }
 0x2d8   : > { %3382 = vmatprep.subr.bf16.mxu1 %v9158_v4  ;;  %v9218_v4 = vld [vmem:[#allocation8 + $0x684] ss:$48 sps:$4 sm:$0xff]  }
 0x2da   : > { %3342 = vmatpush2.bf16.msra.mxu0 %v9153_v5  ;;  %v9213_v5 = vld [vmem:[#allocation8 + $0x80] ss:$48 sps:$4 sm:$0xff]  }
 0x2db   : > { %3383 = vmatpush2.bf16.msra.mxu1 %v9156_v6  ;;  %3343 = vmatprep.subr.bf16.mxu0 %v9161_v7  ;;  %v9216_v6 = vld [vmem:[#allocation8 + $0x680] ss:$48 sps:$4 sm:$0xff]   ;;  %v9221_v7 = vld [vmem:[#allocation8 + $0x24] ss:$48 sps:$4 sm:$0xff]  }
 0x2dc   : > { %3384 = vmatprep.subr.bf16.mxu1 %v9164_v8  ;;  %v9224_v8 = vld [vmem:[#allocation8 + $0x624] ss:$48 sps:$4 sm:$0xff]  }
 0x2de   : > { %3344 = vmatpush2.bf16.msra.mxu0 %v9159_v9  ;;  %v9219_v9 = vld [vmem:[#allocation8 + $0x20] ss:$48 sps:$4 sm:$0xff]  }
 0x2df   : > { %3385 = vmatpush2.bf16.msra.mxu1 %v9162_v10  ;;  %3345 = vmatprep.subr.bf16.mxu0 %v9167_v11  ;;  %v9222_v10 = vld [vmem:[#allocation8 + $0x620] ss:$48 sps:$4 sm:$0xff]   ;;  %v9227_v11 = vld [vmem:[#allocation8 + $0x5c4] ss:$48 sps:$4 sm:$0xff]  }
 0x2e0   : > { %3386 = vmatprep.subr.bf16.mxu1 %v9170_v12  ;;  %v9230_v12 = vld [vmem:[#allocation8 + $0xbc4] ss:$48 sps:$4 sm:$0xff]  }
 0x2e2   : > { %3346 = vmatpush2.bf16.msra.mxu0 %v9165_v13  ;;  %v9225_v13 = vld [vmem:[#allocation8 + $0x5c0] ss:$48 sps:$4 sm:$0xff]  }
 0x2e3   : > { %3387 = vmatpush2.bf16.msra.mxu1 %v9168_v14  ;;  %3347 = vmatprep.subr.bf16.mxu0 %v9173_v15  ;;  %v9228_v14 = vld [vmem:[#allocation8 + $0xbc0] ss:$48 sps:$4 sm:$0xff]   ;;  %v9233_v15 = vld [vmem:[#allocation8 + $0x564] ss:$48 sps:$4 sm:$0xff]  }
 0x2e4   : > { %3388 = vmatprep.subr.bf16.mxu1 %v9176_v16  ;;  %v9236_v16 = vld [vmem:[#allocation8 + $0xb64] ss:$48 sps:$4 sm:$0xff]  }
 0x2e6   : > { %3348 = vmatpush2.bf16.msra.mxu0 %v9171_v17  ;;  %v9231_v17 = vld [vmem:[#allocation8 + $0x560] ss:$48 sps:$4 sm:$0xff]  }
 0x2e7   : > { %3389 = vmatpush2.bf16.msra.mxu1 %v9174_v18  ;;  %3399 = vmatprep.subr.bf16.mxu0 %v9179_v19  ;;  %v9234_v18 = vld [vmem:[#allocation8 + $0xb60] ss:$48 sps:$4 sm:$0xff]   ;;  %v9239_v19 = vld [vmem:[#allocation8 + $0x504] ss:$48 sps:$4 sm:$0xff]  }
 0x2e8   : > { %3440 = vmatprep.subr.bf16.mxu1 %v9182_v21  ;;  %v9242_v21 = vld [vmem:[#allocation8 + $0xb04] ss:$48 sps:$4 sm:$0xff]  }
 0x2e9   : > { %3350 = vmatmul.mubr.bf16.vlgmr.msra.gmra.mxu0 %v10833_v50  ;;  %v3105_v32 = vpop.f32.mrf.mxu0  ;;  %v3146_v33 = vpop.f32.mrf.mxu1 }
 0x2ea   : > { %3391 = vmatmul.mubr.bf16.vlgmr.msra.gmra.mxu1 %v10835_v52  ;;  %v3106_v35 = vadd.f32 %v3105_v32, %v1094_v23  ;;  %3400 = vmatpush1.bf16.msra.mxu0 %v9177_v22  ;;  %v9237_v22 = vld [vmem:[#allocation8 + $0x500] ss:$48 sps:$4 sm:$0xff]  }
 0x2eb   : > { %3431 = vmatprep.mubr.bf16.mxu0 %v10829_v60  ;;  %3441 = vmatpush1.bf16.msra.mxu1 %v9180_v24  ;;  %v3107_v37 = vpop.f32.mrf.mxu0  ;;  %v3148_v38 = vpop.f32.mrf.mxu1  ;;  %v9240_v23 = vld [vmem:[#allocation8 + $0xb00] ss:$48 sps:$4 sm:$0xff]   ;;  %v9245_v24 = vld [vmem:[#allocation8 + $0x4a4] ss:$48 sps:$4 sm:$0xff]  }
 0x2ec   : > { %v10860_v41 = vadd.f32 %v3146_v33, %v3106_v35  ;;  %3472 = vmatprep.mubr.bf16.mxu1 %v10831_v61  ;;  %v3108_v42 = vadd.f32 %v3107_v37, %v1098_v25  ;;  %3401 = vmatprep.subr.bf16.mxu0 %v9185_v31  ;;  %v9248_v25 = vld [vmem:[#allocation8 + $0xaa4] ss:$48 sps:$4 sm:$0xff]   ;;  %v9243_v31 = vld [vmem:[#allocation8 + $0x4a0] ss:$48 sps:$4 sm:$0xff]  }
 0x2ed   : > { %3442 = vmatprep.subr.bf16.mxu1 %v9188_v34  ;;  %v3109_v44 = vpop.f32.mrf.mxu0  ;;  %v3150_v45 = vpop.f32.mrf.mxu1  ;;  %v9246_v32 = vld [vmem:[#allocation8 + $0xaa0] ss:$48 sps:$4 sm:$0xff]   ;;  %v9251_v33 = vld [vmem:[#allocation8 + $0x444] ss:$48 sps:$4 sm:$0xff]  }
 0x2ee   : > { %v10863_v46 = vadd.f32 %v3148_v38, %v3108_v42  ;;  %3402 = vmatpush1.bf16.msra.mxu0 %v9183_v36  ;;  %v9254_v34 = vld [vmem:[#allocation8 + $0xa44] ss:$48 sps:$4 sm:$0xff]   ;;  %v9249_v35 = vld [vmem:[#allocation8 + $0x440] ss:$48 sps:$4 sm:$0xff]  }
 0x2ef   : > { %3443 = vmatpush1.bf16.msra.mxu1 %v9186_v39  ;;  %v3110_v48 = vpop.f32.mrf.mxu0  ;;  %v3151_v53 = vpop.f32.mrf.mxu1  ;;  %3403 = vmatprep.subr.bf16.mxu0 %v9191_v40  ;;  %v9252_v36 = vld [vmem:[#allocation8 + $0xa40] ss:$48 sps:$4 sm:$0xff]   ;;  %v9257_v37 = vld [vmem:[#allocation8 + $0x3e4] ss:$48 sps:$4 sm:$0xff]  }
 0x2f0   : > { %3444 = vmatprep.subr.bf16.mxu1 %v9194_v43  ;;  %v9260_v38 = vld [vmem:[#allocation8 + $0x9e4] ss:$48 sps:$4 sm:$0xff]   ;;  %v9255_v39 = vld [vmem:[#allocation8 + $0x3e0] ss:$48 sps:$4 sm:$0xff]  }
 0x2f1   : > { %v9258_v40 = vld [vmem:[#allocation8 + $0x9e0] ss:$48 sps:$4 sm:$0xff]   ;;  %v9263_v42 = vld [vmem:[#allocation8 + $0x384] ss:$48 sps:$4 sm:$0xff]  }
 0x2f2   : > { %3404 = vmatpush1.bf16.msra.mxu0 %v9189_v47  ;;  %v9266_v43 = vld [vmem:[#allocation8 + $0x984] ss:$48 sps:$4 sm:$0xff]   ;;  %v9261_v44 = vld [vmem:[#allocation8 + $0x380] ss:$48 sps:$4 sm:$0xff]  }
 0x2f3   : > { %3445 = vmatpush1.bf16.msra.mxu1 %v9192_v54  ;;  %3405 = vmatprep.subr.bf16.mxu0 %v9197_v55  ;;  %v9264_v45 = vld [vmem:[#allocation8 + $0x980] ss:$48 sps:$4 sm:$0xff]   ;;  %v9269_v47 = vld [vmem:[#allocation8 + $0x324] ss:$48 sps:$4 sm:$0xff]   ;;  %v9275_v55 = vld [vmem:[#allocation8 + $0x2cc] ss:$48 sps:$4 sm:$0xff]  }
 0x2f4   : > { %3446 = vmatprep.subr.bf16.mxu1 %v9200_v56  ;;  %v9272_v48 = vld [vmem:[#allocation8 + $0x924] ss:$48 sps:$4 sm:$0xff]   ;;  %v9267_v53 = vld [vmem:[#allocation8 + $0x320] ss:$48 sps:$4 sm:$0xff]   ;;  %v9278_v56 = vld [vmem:[#allocation8 + $0x8cc] ss:$48 sps:$4 sm:$0xff]  }
 0x2f5   : > { %v9270_v54 = vld [vmem:[#allocation8 + $0x920] ss:$48 sps:$4 sm:$0xff]  }
 0x2f6   : > { %3406 = vmatpush1.bf16.msra.mxu0 %v9195_v57  ;;  %v1102_v57 = vrot.slane %v10851_v20, %v10815_v30 }
 0x2f7   : > { %3447 = vmatpush1.bf16.msra.mxu1 %v9198_v58  ;;  %3407 = vmatprep.subr.bf16.mxu0 %v9203_v59  ;;  %v9273_v58 = vld [vmem:[#allocation8 + $0x2c8] ss:$48 sps:$4 sm:$0xff]  }
 0x2f8   : > { %3448 = vmatprep.subr.bf16.mxu1 %v9206_v49  ;;  %v9276_v59 = vld [vmem:[#allocation8 + $0x8c8] ss:$48 sps:$4 sm:$0xff]   ;;  %v1106_v49 = vrot.slane %v10851_v20, %v10809_v28 }
 0x2fa   : > { %3408 = vmatpush1.bf16.msra.mxu0 %v9201_v51  ;;  %v9281_v51 = vld [vmem:[#allocation8 + $0x26c] ss:$48 sps:$4 sm:$0xff]  }
 0x2fb   : > { %3449 = vmatpush1.bf16.msra.mxu1 %v9204_v62  ;;  %3409 = vmatprep.subr.bf16.mxu0 %v9209_v63 }
 0x2fc   : > { %3450 = vmatprep.subr.bf16.mxu1 %v9212_v0  ;;  %v9284_v0 = vld [vmem:[#allocation8 + $0x86c] ss:$48 sps:$4 sm:$0xff]  }
 0x2fe   : > { %3410 = vmatpush1.bf16.msra.mxu0 %v9207_v1 }
 0x2ff   : > { %3451 = vmatpush1.bf16.msra.mxu1 %v9210_v2  ;;  %3411 = vmatprep.subr.bf16.mxu0 %v9215_v3  ;;  %v9279_v2 = vld [vmem:[#allocation8 + $0x268] ss:$48 sps:$4 sm:$0xff]  }
 0x300   : > { %3452 = vmatprep.subr.bf16.mxu1 %v9218_v4 }
 0x302   : > { %3412 = vmatpush1.bf16.msra.mxu0 %v9213_v5  ;;  %v9282_v5 = vld [vmem:[#allocation8 + $0x868] ss:$48 sps:$4 sm:$0xff]  }
 0x303   : > { %3453 = vmatpush1.bf16.msra.mxu1 %v9216_v6  ;;  %3413 = vmatprep.subr.bf16.mxu0 %v9221_v7  ;;  %v9287_v6 = vld [vmem:[#allocation8 + $0x20c] ss:$48 sps:$4 sm:$0xff]  }
 0x304   : > { %3454 = vmatprep.subr.bf16.mxu1 %v9224_v8 }
 0x306   : > { %3414 = vmatpush1.bf16.msra.mxu0 %v9219_v9  ;;  %v9290_v9 = vld [vmem:[#allocation8 + $0x80c] ss:$48 sps:$4 sm:$0xff]  }
 0x307   : > { %3455 = vmatpush1.bf16.msra.mxu1 %v9222_v10  ;;  %3415 = vmatprep.subr.bf16.mxu0 %v9227_v11 }
 0x308   : > { %3456 = vmatprep.subr.bf16.mxu1 %v9230_v12 }
 0x30a   : > { %3416 = vmatpush2.bf16.msra.mxu0 %v9225_v13  ;;  %v9285_v13 = vld [vmem:[#allocation8 + $0x208] ss:$48 sps:$4 sm:$0xff]  }
 0x30b   : > { %3457 = vmatpush2.bf16.msra.mxu1 %v9228_v14  ;;  %3417 = vmatprep.subr.bf16.mxu0 %v9233_v15  ;;  %v9288_v15 = vld [vmem:[#allocation8 + $0x808] ss:$48 sps:$4 sm:$0xff]  }
 0x30c   : > { %3458 = vmatprep.subr.bf16.mxu1 %v9236_v16  ;;  %v9293_v16 = vld [vmem:[#allocation8 + $0x1ac] ss:$48 sps:$4 sm:$0xff]  }
 0x30e   : > { %3418 = vmatpush2.bf16.msra.mxu0 %v9231_v17  ;;  %v9296_v17 = vld [vmem:[#allocation8 + $0x7ac] ss:$48 sps:$4 sm:$0xff]  }
 0x30f   : > { %3459 = vmatpush2.bf16.msra.mxu1 %v9234_v18  ;;  %3419 = vmatprep.subr.bf16.mxu0 %v9239_v19  ;;  %v9294_v18 = vld [vmem:[#allocation8 + $0x7a8] ss:$48 sps:$4 sm:$0xff]   ;;  %v9299_v19 = vld [vmem:[#allocation8 + $0x14c] ss:$48 sps:$4 sm:$0xff]  }
 0x310   : > { %3460 = vmatprep.subr.bf16.mxu1 %v9242_v21  ;;  %v9302_v21 = vld [vmem:[#allocation8 + $0x74c] ss:$48 sps:$4 sm:$0xff]  }
 0x312   : > { %3420 = vmatpush2.bf16.msra.mxu0 %v9237_v22  ;;  %v9297_v22 = vld [vmem:[#allocation8 + $0x148] ss:$48 sps:$4 sm:$0xff]  }
 0x313   : > { %3461 = vmatpush2.bf16.msra.mxu1 %v9240_v23  ;;  %3421 = vmatprep.subr.bf16.mxu0 %v9245_v24  ;;  %v9300_v23 = vld [vmem:[#allocation8 + $0x748] ss:$48 sps:$4 sm:$0xff]   ;;  %v9305_v24 = vld [vmem:[#allocation8 + $0xec] ss:$48 sps:$4 sm:$0xff]  }
 0x314   : > { %3462 = vmatprep.subr.bf16.mxu1 %v9248_v25  ;;  %v9308_v25 = vld [vmem:[#allocation8 + $0x6ec] ss:$48 sps:$4 sm:$0xff]  }
 0x316   : > { %3422 = vmatpush2.bf16.msra.mxu0 %v9243_v31  ;;  %v9303_v31 = vld [vmem:[#allocation8 + $0xe8] ss:$48 sps:$4 sm:$0xff]  }
 0x317   : > { %3463 = vmatpush2.bf16.msra.mxu1 %v9246_v32  ;;  %3423 = vmatprep.subr.bf16.mxu0 %v9251_v33  ;;  %v9306_v32 = vld [vmem:[#allocation8 + $0x6e8] ss:$48 sps:$4 sm:$0xff]   ;;  %v9311_v33 = vld [vmem:[#allocation8 + $0x8c] ss:$48 sps:$4 sm:$0xff]  }
 0x318   : > { %3464 = vmatprep.subr.bf16.mxu1 %v9254_v34  ;;  %v9314_v34 = vld [vmem:[#allocation8 + $0x68c] ss:$48 sps:$4 sm:$0xff]  }
 0x31a   : > { %3424 = vmatpush2.bf16.msra.mxu0 %v9249_v35  ;;  %v9309_v35 = vld [vmem:[#allocation8 + $0x88] ss:$48 sps:$4 sm:$0xff]  }
 0x31b   : > { %3465 = vmatpush2.bf16.msra.mxu1 %v9252_v36  ;;  %3425 = vmatprep.subr.bf16.mxu0 %v9257_v37  ;;  %v9312_v36 = vld [vmem:[#allocation8 + $0x688] ss:$48 sps:$4 sm:$0xff]   ;;  %v9317_v37 = vld [vmem:[#allocation8 + $0x2c] ss:$48 sps:$4 sm:$0xff]  }
 0x31c   : > { %3466 = vmatprep.subr.bf16.mxu1 %v9260_v38  ;;  %v9320_v38 = vld [vmem:[#allocation8 + $0x62c] ss:$48 sps:$4 sm:$0xff]  }
 0x31e   : > { %3426 = vmatpush2.bf16.msra.mxu0 %v9255_v39  ;;  %v9315_v39 = vld [vmem:[#allocation8 + $0x28] ss:$48 sps:$4 sm:$0xff]  }
 0x31f   : > { %3467 = vmatpush2.bf16.msra.mxu1 %v9258_v40  ;;  %3427 = vmatprep.subr.bf16.mxu0 %v9263_v42  ;;  %v9318_v40 = vld [vmem:[#allocation8 + $0x628] ss:$48 sps:$4 sm:$0xff]   ;;  %v9323_v42 = vld [vmem:[#allocation8 + $0x5cc] ss:$48 sps:$4 sm:$0xff]  }
 0x320   : > { %3468 = vmatprep.subr.bf16.mxu1 %v9266_v43  ;;  %v9326_v43 = vld [vmem:[#allocation8 + $0xbcc] ss:$48 sps:$4 sm:$0xff]  }
 0x322   : > { %3428 = vmatpush2.bf16.msra.mxu0 %v9261_v44  ;;  %v9321_v44 = vld [vmem:[#allocation8 + $0x5c8] ss:$48 sps:$4 sm:$0xff]  }
 0x323   : > { %3469 = vmatpush2.bf16.msra.mxu1 %v9264_v45  ;;  %3429 = vmatprep.subr.bf16.mxu0 %v9269_v47  ;;  %v9324_v45 = vld [vmem:[#allocation8 + $0xbc8] ss:$48 sps:$4 sm:$0xff]   ;;  %v9329_v47 = vld [vmem:[#allocation8 + $0x56c] ss:$48 sps:$4 sm:$0xff]  }
 0x324   : > { %3470 = vmatprep.subr.bf16.mxu1 %v9272_v48  ;;  %v9332_v48 = vld [vmem:[#allocation8 + $0xb6c] ss:$48 sps:$4 sm:$0xff]  }
 0x326   : > { %3430 = vmatpush2.bf16.msra.mxu0 %v9267_v53  ;;  %v9327_v53 = vld [vmem:[#allocation8 + $0x568] ss:$48 sps:$4 sm:$0xff]  }
 0x327   : > { %3471 = vmatpush2.bf16.msra.mxu1 %v9270_v54  ;;  %3481 = vmatprep.subr.bf16.mxu0 %v9275_v55  ;;  %v9330_v54 = vld [vmem:[#allocation8 + $0xb68] ss:$48 sps:$4 sm:$0xff]   ;;  %v9335_v55 = vld [vmem:[#allocation8 + $0x50c] ss:$48 sps:$4 sm:$0xff]  }
 0x328   : > { %3522 = vmatprep.subr.bf16.mxu1 %v9278_v56  ;;  %v9338_v56 = vld [vmem:[#allocation8 + $0xb0c] ss:$48 sps:$4 sm:$0xff]  }
 0x329   : > { %v3187_v62 = vpop.f32.mrf.mxu0  ;;  %v3228_v63 = vpop.f32.mrf.mxu1  ;;  %3432 = vmatmul.mubr.bf16.vlgmr.msra.gmra.mxu0 %v10833_v50 }
 0x32a   : > { %v3188_v1 = vadd.f32 %v3187_v62, %v1102_v57  ;;  %3473 = vmatmul.mubr.bf16.vlgmr.msra.gmra.mxu1 %v10835_v52  ;;  %3482 = vmatpush1.bf16.msra.mxu0 %v9273_v58  ;;  %v9333_v57 = vld [vmem:[#allocation8 + $0x508] ss:$48 sps:$4 sm:$0xff]  }
 0x32b   : > { %3513 = vmatprep.mubr.bf16.mxu0 %v10829_v60  ;;  %3523 = vmatpush1.bf16.msra.mxu1 %v9276_v59  ;;  %v3189_v3 = vpop.f32.mrf.mxu0  ;;  %v3230_v4 = vpop.f32.mrf.mxu1  ;;  %v9336_v58 = vld [vmem:[#allocation8 + $0xb08] ss:$48 sps:$4 sm:$0xff]   ;;  %v9341_v59 = vld [vmem:[#allocation8 + $0x4ac] ss:$48 sps:$4 sm:$0xff]  }
 0x32c   : > { %v10872_v7 = vadd.f32 %v3228_v63, %v3188_v1  ;;  %3554 = vmatprep.mubr.bf16.mxu1 %v10831_v61  ;;  %v3190_v8 = vadd.f32 %v3189_v3, %v1106_v49  ;;  %3483 = vmatprep.subr.bf16.mxu0 %v9281_v51  ;;  %v9291_v61 = vld [vmem:[#allocation8 + $0x1a8] ss:$48 sps:$4 sm:$0xff]   ;;  %v9344_v49 = vld [vmem:[#allocation8 + $0xaac] ss:$48 sps:$4 sm:$0xff]  }
 0x32d   : > { %v3191_v10 = vpop.f32.mrf.mxu0  ;;  %v3232_v11 = vpop.f32.mrf.mxu1  ;;  %3524 = vmatprep.subr.bf16.mxu1 %v9284_v0  ;;  %v9339_v51 = vld [vmem:[#allocation8 + $0x4a8] ss:$48 sps:$4 sm:$0xff]   ;;  %v9347_v63 = vld [vmem:[#allocation8 + $0x44c] ss:$48 sps:$4 sm:$0xff]  }
 0x32e   : > { %v10875_v12 = vadd.f32 %v3230_v4, %v3190_v8  ;;  %3484 = vmatpush1.bf16.msra.mxu0 %v9279_v2  ;;  %v9342_v62 = vld [vmem:[#allocation8 + $0xaa8] ss:$48 sps:$4 sm:$0xff]   ;;  %v9350_v0 = vld [vmem:[#allocation8 + $0xa4c] ss:$48 sps:$4 sm:$0xff]  }
 0x32f   : > { %3525 = vmatpush1.bf16.msra.mxu1 %v9282_v5  ;;  %v3192_v60 = vpop.f32.mrf.mxu0  ;;  %v3233_v14 = vpop.f32.mrf.mxu1  ;;  %3485 = vmatprep.subr.bf16.mxu0 %v9287_v6  ;;  %v9345_v1 = vld [vmem:[#allocation8 + $0x448] ss:$48 sps:$4 sm:$0xff]   ;;  %v9353_v3 = vld [vmem:[#allocation8 + $0x3ec] ss:$48 sps:$4 sm:$0xff]  }
 0x330   : > { %3526 = vmatprep.subr.bf16.mxu1 %v9290_v9  ;;  %v9348_v2 = vld [vmem:[#allocation8 + $0xa48] ss:$48 sps:$4 sm:$0xff]   ;;  %v9356_v4 = vld [vmem:[#allocation8 + $0x9ec] ss:$48 sps:$4 sm:$0xff]  }
 0x331   : > { %v9351_v5 = vld [vmem:[#allocation8 + $0x3e8] ss:$48 sps:$4 sm:$0xff]   ;;  %v9359_v8 = vld [vmem:[#allocation8 + $0x38c] ss:$48 sps:$4 sm:$0xff]  }
 0x332   : > { %3486 = vmatpush1.bf16.msra.mxu0 %v9285_v13  ;;  %v9354_v6 = vld [vmem:[#allocation8 + $0x9e8] ss:$48 sps:$4 sm:$0xff]   ;;  %v9362_v9 = vld [vmem:[#allocation8 + $0x98c] ss:$48 sps:$4 sm:$0xff]  }
 0x333   : > { %3527 = vmatpush1.bf16.msra.mxu1 %v9288_v15  ;;  %3487 = vmatprep.subr.bf16.mxu0 %v9293_v16  ;;  %v9357_v10 = vld [vmem:[#allocation8 + $0x388] ss:$48 sps:$4 sm:$0xff]   ;;  %v9365_v13 = vld [vmem:[#allocation8 + $0x32c] ss:$48 sps:$4 sm:$0xff]   ;;  %v1109_v15 = vsub.s32 4, %v10803_v26 }
 0x334   : > { %3528 = vmatprep.subr.bf16.mxu1 %v9296_v17  ;;  %v9360_v11 = vld [vmem:[#allocation8 + $0x988] ss:$48 sps:$4 sm:$0xff]   ;;  %v9368_v60 = vld [vmem:[#allocation8 + $0x92c] ss:$48 sps:$4 sm:$0xff]   ;;  %v1113_v17 = vsub.s32 5, %v10803_v26 }
 0x335   : > { %v9363_v14 = vld [vmem:[#allocation8 + $0x328] ss:$48 sps:$4 sm:$0xff]  }
 0x336   : > { %3488 = vmatpush1.bf16.msra.mxu0 %v9291_v61  ;;  %v9366_v16 = vld [vmem:[#allocation8 + $0x928] ss:$48 sps:$4 sm:$0xff]   ;;  %v1110_v61 = vrot.slane %v10851_v20, %v1109_v15 }
 0x337   : > { %3529 = vmatpush1.bf16.msra.mxu1 %v9294_v18  ;;  %3489 = vmatprep.subr.bf16.mxu0 %v9299_v19  ;;  %v10440_v18 = vmov 0.0   ;;  %v1114_v19 = vrot.slane %v10851_v20, %v1113_v17 }
 0x338   : > { %3530 = vmatprep.subr.bf16.mxu1 %v9302_v21 }
 0x33a   : > { %3490 = vmatpush1.bf16.msra.mxu0 %v9297_v22 }
 0x33b   : > { %3531 = vmatpush1.bf16.msra.mxu1 %v9300_v23  ;;  %3491 = vmatprep.subr.bf16.mxu0 %v9305_v24 }
 0x33c   : > { %3532 = vmatprep.subr.bf16.mxu1 %v9308_v25 }
 0x33e   : > { %3492 = vmatpush1.bf16.msra.mxu0 %v9303_v31 }
 0x33f   : > { %3533 = vmatpush1.bf16.msra.mxu1 %v9306_v32  ;;  %3493 = vmatprep.subr.bf16.mxu0 %v9311_v33 }
 0x340   : > { %3534 = vmatprep.subr.bf16.mxu1 %v9314_v34 }
 0x342   : > { %3494 = vmatpush1.bf16.msra.mxu0 %v9309_v35 }
 0x343   : > { %3535 = vmatpush1.bf16.msra.mxu1 %v9312_v36  ;;  %3495 = vmatprep.subr.bf16.mxu0 %v9317_v37 }
 0x344   : > { %3536 = vmatprep.subr.bf16.mxu1 %v9320_v38 }
 0x346   : > { %3496 = vmatpush1.bf16.msra.mxu0 %v9315_v39  ;;  %v3563_v39 = vpack.c.bf16 %v10860_v41, %v10860_v41 }
 0x347   : > { %3537 = vmatpush1.bf16.msra.mxu1 %v9318_v40  ;;  %3497 = vmatprep.subr.bf16.mxu0 %v9323_v42  ;;  %v3788_v40 = vpack.c.bf16 %v10863_v46, %v10863_v46  ;;  %v1117_v42 = vsub.s32 6, %v10803_v26 }
 0x348   : > { %3538 = vmatprep.subr.bf16.mxu1 %v9326_v43  ;;  %v1121_v43 = vsub.s32 7, %v10803_v26 }
 0x349   : > { %v1118_v41 = vrot.slane %v10851_v20, %v1117_v42 }
 0x34a   : > { %3498 = vmatpush2.bf16.msra.mxu0 %v9321_v44 }
 0x34b   : > { %3539 = vmatpush2.bf16.msra.mxu1 %v9324_v45  ;;  %3499 = vmatprep.subr.bf16.mxu0 %v9329_v47 }
 0x34c   : > { %3540 = vmatprep.subr.bf16.mxu1 %v9332_v48  ;;  %v1122_v48 = vrot.slane %v10851_v20, %v1121_v43  ;;  %v10913_v20 = vpack.c.bf16 %v10875_v12, %v10875_v12 }
 0x34e   : > { %3500 = vmatpush2.bf16.msra.mxu0 %v9327_v53 }
 0x34f   : > { %3541 = vmatpush2.bf16.msra.mxu1 %v9330_v54  ;;  %3501 = vmatprep.subr.bf16.mxu0 %v9335_v55 }
 0x350   : > { %3542 = vmatprep.subr.bf16.mxu1 %v9338_v56 }
 0x352   : > { %3502 = vmatpush2.bf16.msra.mxu0 %v9333_v57 }
 0x353   : > { %3543 = vmatpush2.bf16.msra.mxu1 %v9336_v58  ;;  %3503 = vmatprep.subr.bf16.mxu0 %v9341_v59 }
 0x354   : > { %3544 = vmatprep.subr.bf16.mxu1 %v9344_v49 }
 0x356   : > { %3504 = vmatpush2.bf16.msra.mxu0 %v9339_v51  ;;  %v4010_v51 = vpack.c.bf16 %v10872_v7, %v10872_v7 }
 0x357   : > { %3545 = vmatpush2.bf16.msra.mxu1 %v9342_v62  ;;  %3505 = vmatprep.subr.bf16.mxu0 %v9347_v63 }
 0x358   : > { %3546 = vmatprep.subr.bf16.mxu1 %v9350_v0 }
 0x35a   : > { %3506 = vmatpush2.bf16.msra.mxu0 %v9345_v1  ;;  %v1088_v1 = vld [vmem:[#allocation10 + $0x8] sm:$0xf] }
 0x35b   : > { %3547 = vmatpush2.bf16.msra.mxu1 %v9348_v2  ;;  %3507 = vmatprep.subr.bf16.mxu0 %v9353_v3  ;;  %v1126_v7 = vrot.slane %v1088_v1, %v10812_v29  ;;  %v1130_v2 = vrot.slane %v1088_v1, %v10806_v27 }
 0x35c   : > { %3548 = vmatprep.subr.bf16.mxu1 %v9356_v4 }
 0x35e   : > { %3508 = vmatpush2.bf16.msra.mxu0 %v9351_v5 }
 0x35f   : > { %3549 = vmatpush2.bf16.msra.mxu1 %v9354_v6  ;;  %3509 = vmatprep.subr.bf16.mxu0 %v9359_v8 }
 0x360   : > { %3550 = vmatprep.subr.bf16.mxu1 %v9362_v9 }
 0x362   : > { %3510 = vmatpush2.bf16.msra.mxu0 %v9357_v10 }
 0x363   : > { %3551 = vmatpush2.bf16.msra.mxu1 %v9360_v11  ;;  %3511 = vmatprep.subr.bf16.mxu0 %v9365_v13 }
 0x364   : > { %3552 = vmatprep.subr.bf16.mxu1 %v9368_v60 }
 0x366   : > { %3512 = vmatpush2.bf16.msra.mxu0 %v9363_v14 }
 0x367   : > { %3553 = vmatpush2.bf16.msra.mxu1 %v9366_v16  ;;  %8513 = vmatprep.subr.bf16.mxu0 %v10440_v18 }
 0x368   : > { %8519 = vmatprep.subr.bf16.mxu1 %v10440_v18 }
 0x369   : > { %v3269_v21 = vpop.f32.mrf.mxu0  ;;  %3514 = vmatmul.mubr.bf16.vlgmr.msra.gmra.mxu0 %v10833_v50 }
 0x36a   : > { %v3270_v22 = vadd.f32 %v3269_v21, %v1110_v61  ;;  %v3310_v23 = vpop.f32.mrf.mxu1  ;;  %3555 = vmatmul.mubr.bf16.vlgmr.msra.gmra.mxu1 %v10835_v52  ;;  %8515 = vmatprep.mubr.msk.bf16.mxu0 %vm10441_vm0, %v10440_v18 }
 0x36b   : > { %v3271_v24 = vpop.f32.mrf.mxu0  ;;  %8521 = vmatprep.mubr.msk.bf16.mxu1 %vm10441_vm0, %v10440_v18 }
 0x36c   : > { %v3311_v25 = vadd.f32 %v3310_v23, %v3270_v22  ;;  %v3272_v31 = vadd.f32 %v3271_v24, %v1114_v19  ;;  %v3312_v32 = vpop.f32.mrf.mxu1 }
 0x36d   : > { %v3273_v33 = vpop.f32.mrf.mxu0 }
 0x36e   : > { %v3564_v34 = vpack.c.bf16 %v3311_v25, %v3311_v25  ;;  %v3313_v35 = vadd.f32 %v3312_v32, %v3272_v31  ;;  %v3314_v50 = vpop.f32.mrf.mxu1  ;;  %v1134_v31 = vrot.slane %v1088_v1, %v10815_v30  ;;  %v1138_v32 = vrot.slane %v1088_v1, %v10809_v28 }
 0x36f   : > { %v3274_v36 = vpop.f32.mrf.mxu0 }
 0x370   : > { %v3571_v37 = vsel %vm3566_vm1, %v3564_v34, 0  ;;  %v3789_v52 = vpack.c.bf16 %v3313_v35, %v3313_v35  ;;  %v3315_v38 = vpop.f32.mrf.mxu1  ;;  %3678 = vrot.lane.b32.xlu1 %v3564_v34, %s10442_s2 }
 0x371   : > { %8514 = vmatpush3.bf16.xpose.msra.mxu0 %v3571_v37 }
 0x372   : > { %3900 = vrot.lane.b32.xlu0 %v3789_v52, %s10442_s2  ;;  %8525 = vmatprep.subr.bf16.mxu0 %v10440_v18  ;;  %v3795_v12 = vsel %vm3566_vm1, %v3789_v52, 0 }
 0x374   : > { %3675 = vrot.lane.b32.xlu1 %v3563_v39, %s10442_s2 }
 0x378   : > { %3897 = vrot.lane.b32.xlu1 %v3788_v40, %s10442_s2  ;;  %8516 = vmatmul.mubr.msk.bf16.vlgmr.msra.gmra.mxu0 %vm3566_vm1, %v3563_v39 }
 0x379   : > { %8527 = vmatprep.mubr.msk.bf16.mxu0 %vm10441_vm0, %v10440_v18 }
 0x3a9   : > { %v3351_v44 = vpop.f32.mrf.mxu0 }
 0x3aa   : > { %v3352_v45 = vadd.f32 %v3351_v44, %v1118_v41  ;;  %v3392_v47 = vpop.f32.mrf.mxu1 }
 0x3ab   : > { %v3353_v53 = vpop.f32.mrf.mxu0 }
 0x3ac   : > { %v3393_v46 = vadd.f32 %v3392_v47, %v3352_v45  ;;  %v3394_v54 = vpop.f32.mrf.mxu1  ;;  %v3354_v57 = vadd.f32 %v3353_v53, %v1122_v48 }
 0x3ad   : > { %v3355_v55 = vpop.f32.mrf.mxu0 }
 0x3ae   : > { %v4011_v56 = vpack.c.bf16 %v3393_v46, %v3393_v46  ;;  %v3396_v58 = vpop.f32.mrf.mxu1  ;;  %v3395_v26 = vadd.f32 %v3394_v54, %v3354_v57 }
 0x3af   : > { %v3356_v59 = vpop.f32.mrf.mxu0 }
 0x3b0   : > { %v3397_v49 = vpop.f32.mrf.mxu1  ;;  %4122 = vrot.lane.b32.xlu1 %v4011_v56, %s10442_s2  ;;  %v4233_v62 = vpack.c.bf16 %v3395_v26, %v3395_v26  ;;  %v4017_v23 = vsel %vm3566_vm1, %v4011_v56, 0 }
 0x3b2   : > { %v4239_v36 = vsel %vm3566_vm1, %v4233_v62, 0 }
 0x3b4   : > { %4119 = vrot.lane.b32.xlu1 %v4010_v51, %s10442_s2 }
 0x3b8   : > { %4344 = vrot.lane.b32.xlu1 %v4233_v62, %s10442_s2 }
 0x3bc   : > { %4341 = vrot.lane.b32.xlu1 %v10913_v20, %s10442_s2 }
 0x3e2   : > { %v3679_v63 = vpop.permute.xlu1 %3678 }
 0x3e3   : > { %v3684_v0 = vsel %vm3566_vm1, %v3679_v63, 0 }
 0x3e4   : > { %8526 = vmatpush3.bf16.xpose.msra.mxu0 %v3684_v0  ;;  %v3901_v17 = vpop.permute.xlu0 %3900 }
 0x3e5   : > { %8537 = vmatprep.subr.bf16.mxu0 %v10440_v18  ;;  %v3906_v21 = vsel %vm3566_vm1, %v3901_v17, 0 }
 0x3e6   : > { %v3676_v4 = vpop.permute.xlu1 %3675 }
 0x3e9   : > { %v3433_v3 = vpop.f32.mrf.mxu0 }
 0x3ea   : > { %v3434_v5 = vadd.f32 %v3433_v3, %v1126_v7  ;;  %v3474_v6 = vpop.f32.mrf.mxu1  ;;  %v3898_v22 = vpop.permute.xlu1 %3897 }
 0x3eb   : > { %v3435_v8 = vpop.f32.mrf.mxu0  ;;  %8528 = vmatmul.mubr.msk.bf16.vlgmr.msra.gmra.mxu0 %vm3566_vm1, %v3676_v4 }
 0x3ec   : > { %v3475_v9 = vadd.f32 %v3474_v6, %v3434_v5  ;;  %v3436_v10 = vadd.f32 %v3435_v8, %v1130_v2  ;;  %v3476_v11 = vpop.f32.mrf.mxu1  ;;  %8538 = vmatpush3.bf16.xpose.msra.mxu0 %v3795_v12  ;;  %8539 = vmatprep.mubr.msk.bf16.mxu0 %vm10441_vm0, %v10440_v18 }
 0x3ed   : > { %v3437_v13 = vpop.f32.mrf.mxu0  ;;  %8549 = vmatprep.subr.bf16.mxu0 %v10440_v18 }
 0x3ee   : > { %v10926_v60 = vpack.c.bf16 %v3475_v9, %v3475_v9  ;;  %v10928_v14 = vadd.f32 %v3476_v11, %v3436_v10  ;;  %v3478_v15 = vpop.f32.mrf.mxu1 }
 0x3ef   : > { %v3438_v16 = vpop.f32.mrf.mxu0 }
 0x3f0   : > { %v3632_v61 = vsel %vm3630_vm2, %v10926_v60, 0  ;;  %v3479_v19 = vpop.f32.mrf.mxu1 }
 0x3f1   : > { %8520 = vmatpush3.bf16.msra.mxu1 %v3632_v61 }
 0x3f2   : > { %8531 = vmatprep.subr.bf16.mxu1 %v10440_v18 }
 0x3f3   : > { %8540 = vmatmul.mubr.msk.bf16.vlgmr.msra.gmra.mxu0 %vm3566_vm1, %v3788_v40 }
 0x3f4   : > { %8550 = vmatpush3.bf16.xpose.msra.mxu0 %v3906_v21  ;;  %8551 = vmatprep.mubr.msk.bf16.mxu0 %vm10441_vm0, %v10440_v18 }
 0x3f5   : > { %8561 = vmatprep.subr.bf16.mxu0 %v10440_v18 }
 0x3fb   : > { %8552 = vmatmul.mubr.msk.bf16.vlgmr.msra.gmra.mxu0 %vm3566_vm1, %v3898_v22 }
 0x3fc   : > { %8562 = vmatpush3.bf16.xpose.msra.mxu0 %v4017_v23  ;;  %8563 = vmatprep.mubr.msk.bf16.mxu0 %vm10441_vm0, %v10440_v18 }
 0x3fd   : > { %8573 = vmatprep.subr.bf16.mxu0 %v10440_v18 }
 0x403   : > { %8564 = vmatmul.mubr.msk.bf16.vlgmr.msra.gmra.mxu0 %vm3566_vm1, %v4010_v51 }
 0x404   : > { %8575 = vmatprep.mubr.msk.bf16.mxu0 %vm10441_vm0, %v10440_v18 }
 0x422   : > { %v4123_v24 = vpop.permute.xlu1 %4122 }
 0x423   : > { %v4128_v25 = vsel %vm3566_vm1, %v4123_v24, 0 }
 0x424   : > { %8574 = vmatpush3.bf16.xpose.msra.mxu0 %v4128_v25 }
 0x425   : > { %8585 = vmatprep.subr.bf16.mxu0 %v10440_v18 }
 0x426   : > { %v4120_v34 = vpop.permute.xlu1 %4119 }
 0x429   : > { %v3515_v33 = vpop.f32.mrf.mxu0 }
 0x42a   : > { %v3516_v35 = vadd.f32 %v3515_v33, %v1134_v31  ;;  %v3556_v50 = vpop.f32.mrf.mxu1  ;;  %v4345_v44 = vpop.permute.xlu1 %4344 }
 0x42b   : > { %v3517_v37 = vpop.f32.mrf.mxu0  ;;  %8576 = vmatmul.mubr.msk.bf16.vlgmr.msra.gmra.mxu0 %vm3566_vm1, %v4120_v34  ;;  %v4350_v47 = vsel %vm3566_vm1, %v4345_v44, 0 }
 0x42c   : > { %v10952_v52 = vadd.f32 %v3556_v50, %v3516_v35  ;;  %v3518_v38 = vadd.f32 %v3517_v37, %v1138_v32  ;;  %v3558_v39 = vpop.f32.mrf.mxu1  ;;  %8586 = vmatpush3.bf16.xpose.msra.mxu0 %v4239_v36  ;;  %8587 = vmatprep.mubr.msk.bf16.mxu0 %vm10441_vm0, %v10440_v18 }
 0x42d   : > { %v3519_v40 = vpop.f32.mrf.mxu0  ;;  %8597 = vmatprep.subr.bf16.mxu0 %v10440_v18 }
 0x42e   : > { %v10957_v42 = vadd.f32 %v3558_v39, %v3518_v38  ;;  %v3560_v41 = vpop.f32.mrf.mxu1  ;;  %v4342_v46 = vpop.permute.xlu1 %4341 }
 0x42f   : > { %v3520_v43 = vpop.f32.mrf.mxu0 }
 0x430   : > { %v3561_v45 = vpop.f32.mrf.mxu1 }
 0x433   : > { %8588 = vmatmul.mubr.msk.bf16.vlgmr.msra.gmra.mxu0 %vm3566_vm1, %v10913_v20 }
 0x434   : > { %8598 = vmatpush3.bf16.xpose.msra.mxu0 %v4350_v47  ;;  %8599 = vmatprep.mubr.msk.bf16.mxu0 %vm10441_vm0, %v10440_v18 }
 0x438   : > { %v3607_v48 = vpop.f32.mrf.mxu0 }
 0x439   : > { %v3613_v53 = vmul.f32 0.125, %v3607_v48 }
 0x43a   : > { %v8517_v54 = vpop.f32.mrf.mxu0 }
 0x43b   : > { %8600 = vmatmul.mubr.msk.bf16.vlgmr.msra.gmra.mxu0 %vm3566_vm1, %v4342_v46  ;;  %v3615_v55 = vsel %vm3614_vm3, %v3613_v53, -inf }
 0x43c   : > { %3616 = vmax.xlane.f32.xlu1 %v3615_v55  ;;  %v3610_v56 = vpop.f32.mrf.mxu0 }
 0x43e   : > { %v8518_v57 = vpop.f32.mrf.mxu0 }
 0x4ab   : > { %v3720_v58 = vpop.f32.mrf.mxu0 }
 0x4ac   : > { %v3726_v59 = vmul.f32 0.125, %v3720_v58 }
 0x4ad   : > { %v8529_v49 = vpop.f32.mrf.mxu0 }
 0x4ae   : > { %v3727_v51 = vsel %vm3614_vm3, %v3726_v59, -inf }
 0x4af   : > { %3728 = vmax.xlane.f32.xlu0 %v3727_v51  ;;  %v3723_v26 = vpop.f32.mrf.mxu0 }
 0x4b1   : > { %v8530_v62 = vpop.f32.mrf.mxu0 }
 0x4b3   : > { %v3831_v20 = vpop.f32.mrf.mxu0 }
 0x4b4   : > { %v3837_v63 = vmul.f32 0.125, %v3831_v20 }
 0x4b5   : > { %v8541_v0 = vpop.f32.mrf.mxu0 }
 0x4b6   : > { %v3838_v1 = vsel %vm3614_vm3, %v3837_v63, -inf }
 0x4b7   : > { %3839 = vmax.xlane.f32.xlu0 %v3838_v1  ;;  %v3834_v7 = vpop.f32.mrf.mxu0 }
 0x4b9   : > { %v8542_v2 = vpop.f32.mrf.mxu0 }
 0x4bb   : > { %v3942_v3 = vpop.f32.mrf.mxu0 }
 0x4bc   : > { %v3948_v4 = vmul.f32 0.125, %v3942_v3 }
 0x4bd   : > { %v8553_v5 = vpop.f32.mrf.mxu0 }
 0x4be   : > { %v3949_v6 = vsel %vm3614_vm3, %v3948_v4, -inf }
 0x4bf   : > { %3950 = vmax.xlane.f32.xlu1 %v3949_v6  ;;  %v3945_v12 = vpop.f32.mrf.mxu0 }
 0x4c1   : > { %v8554_v8 = vpop.f32.mrf.mxu0 }
 0x4c3   : > { %v4053_v9 = vpop.f32.mrf.mxu0 }
 0x4c4   : > { %v4059_v10 = vmul.f32 0.125, %v4053_v9 }
 0x4c5   : > { %v8565_v11 = vpop.f32.mrf.mxu0  ;;  %v3617_v17 = vpop.xlane.xlu1 %3616 }
 0x4c6   : > { %v4060_v13 = vsel %vm3614_vm3, %v4059_v10, -inf  ;;  %v3618_v61 = vsub.f32 %v3613_v53, %v3617_v17 }
 0x4c7   : > { %4061 = vmax.xlane.f32.xlu0 %v4060_v13  ;;  %v4056_v15 = vpop.f32.mrf.mxu0 }
 0x4c8   : > { %v3619_v19 = vmul.f32 1.442695, %v3618_v61 }
 0x4c9   : > { %v8566_v16 = vpop.f32.mrf.mxu0 }
 0x4ca   : > { %9947 = vpow2.f32 %v3619_v19 }
 0x4d7   : > { %v10972_v50 = vpop.eup %9947 }
 0x4d8   : > { %v3621_v38 = vsel %vm3614_vm3, %v10972_v50, 0.0 }
 0x4eb   : > { %v4164_v21 = vpop.f32.mrf.mxu0 }
 0x4ec   : > { %v4170_v22 = vmul.f32 0.125, %v4164_v21 }
 0x4ed   : > { %v8577_v23 = vpop.f32.mrf.mxu0 }
 0x4ee   : > { %v4171_v24 = vsel %vm3614_vm3, %v4170_v22, -inf }
 0x4ef   : > { %4172 = vmax.xlane.f32.xlu1 %v4171_v24  ;;  %v4167_v25 = vpop.f32.mrf.mxu0  ;;  %v4012_v24 = vpack.c.bf16 %v10952_v52, %v10952_v52 }
 0x4f0   : > { %v4234_v25 = vpack.c.bf16 %v10957_v42, %v10957_v42 }
 0x4f1   : > { %v8578_v31 = vpop.f32.mrf.mxu0 }
 0x4f3   : > { %v4275_v32 = vpop.f32.mrf.mxu0 }
 0x4f4   : > { %v4281_v33 = vmul.f32 0.125, %v4275_v32 }
 0x4f5   : > { %v8589_v34 = vpop.f32.mrf.mxu0 }
 0x4f6   : > { %v4282_v35 = vsel %vm3614_vm3, %v4281_v33, -inf }
 0x4f7   : > { %4283 = vmax.xlane.f32.xlu0 %v4282_v35  ;;  %v4278_v36 = vpop.f32.mrf.mxu0 }
 0x4f9   : > { %v8590_v37 = vpop.f32.mrf.mxu0 }
 0x4fb   : > { %3622 = vadd.xlane.f32.xlu0 %v3621_v38  ;;  %v4386_v39 = vpop.f32.mrf.mxu0 }
 0x4fc   : > { %v4392_v40 = vmul.f32 0.125, %v4386_v39 }
 0x4fd   : > { %v8601_v41 = vpop.f32.mrf.mxu0 }
 0x4fe   : > { %v4393_v43 = vsel %vm3614_vm3, %v4392_v40, -inf }
 0x4ff   : > { %4394 = vmax.xlane.f32.xlu1 %v4393_v43  ;;  %v4389_v44 = vpop.f32.mrf.mxu0 }
 0x501   : > { %v8602_v45 = vpop.f32.mrf.mxu0 }
 0x538   : > { %v3729_v47 = vpop.xlane.xlu0 %3728 }
 0x539   : > { %v3730_v48 = vsub.f32 %v3726_v59, %v3729_v47  ;;  %v4076_v47 = vsel %vm3630_vm2, %v4012_v24, 0 }
 0x53b   : > { %v3731_v53 = vmul.f32 1.442695, %v3730_v48 }
 0x53d   : > { %9949 = vpow2.f32 %v3731_v53 }
 0x540   : > { %v3840_v46 = vpop.xlane.xlu0 %3839 }
 0x541   : > { %v3841_v54 = vsub.f32 %v3837_v63, %v3840_v46  ;;  %v3790_v63 = vpack.c.bf16 %v10928_v14, %v10928_v14 }
 0x543   : > { %v3842_v55 = vmul.f32 1.442695, %v3841_v54  ;;  %v3854_v42 = vsel %vm3630_vm2, %v3790_v63, 0 }
 0x545   : > { %9951 = vpow2.f32 %v3842_v55 }
 0x548   : > { %v3951_v56 = vpop.xlane.xlu1 %3950 }
 0x549   : > { %v3952_v57 = vsub.f32 %v3948_v4, %v3951_v56 }
 0x54a   : > { %v9950_v58 = vpop.eup %9949 }
 0x54b   : > { %v3953_v49 = vmul.f32 1.442695, %v3952_v57  ;;  %v3733_v51 = vsel %vm3614_vm3, %v9950_v58, 0.0 }
 0x54c   : > { %3734 = vadd.xlane.f32.xlu1 %v3733_v51 }
 0x54d   : > { %9953 = vpow2.f32 %v3953_v49 }
 0x550   : > { %v4062_v0 = vpop.xlane.xlu0 %4061 }
 0x551   : > { %v4063_v1 = vsub.f32 %v4059_v10, %v4062_v0 }
 0x552   : > { %v10978_v26 = vpop.eup %9951 }
 0x553   : > { %v3844_v62 = vsel %vm3614_vm3, %v10978_v26, 0.0  ;;  %v4064_v7 = vmul.f32 1.442695, %v4063_v1 }
 0x554   : > { %3845 = vadd.xlane.f32.xlu0 %v3844_v62 }
 0x555   : > { %9955 = vpow2.f32 %v4064_v7 }
 0x55a   : > { %v10982_v59 = vpop.eup %9953 }
 0x55b   : > { %v3955_v20 = vsel %vm3614_vm3, %v10982_v59, 0.0 }
 0x55c   : > { %3956 = vadd.xlane.f32.xlu1 %v3955_v20  ;;  %v4298_v20 = vsel %vm3630_vm2, %v4234_v25, 0 }
 0x562   : > { %v10991_v9 = vpop.eup %9955 }
 0x563   : > { %v4066_v11 = vsel %vm3614_vm3, %v10991_v9, 0.0 }
 0x56a   : > { %3962 = vrot.lane.b32.xlu0 %v3790_v63, %s10442_s2 }
 0x56d   : > { %3740 = vrot.lane.b32.xlu1 %v10926_v60, %s10442_s2 }
 0x578   : > { %v4173_v2 = vpop.xlane.xlu1 %4172 }
 0x579   : > { %v4174_v3 = vsub.f32 %v4170_v22, %v4173_v2 }
 0x57b   : > { %v4175_v4 = vmul.f32 1.442695, %v4174_v3 }
 0x57d   : > { %9957 = vpow2.f32 %v4175_v4 }
 0x580   : > { %v4284_v5 = vpop.xlane.xlu0 %4283 }
 0x581   : > { %v4285_v6 = vsub.f32 %v4281_v33, %v4284_v5 }
 0x583   : > { %v4286_v12 = vmul.f32 1.442695, %v4285_v6 }
 0x584   : > { %v3623_v8 = vpop.xlane.xlu0 %3622 }
 0x585   : > { %9959 = vpow2.f32 %v4286_v12 }
 0x586   : > { %9961 = vrcp.f32 %v3623_v8 }
 0x588   : > { %v4395_v14 = vpop.xlane.xlu1 %4394 }
 0x589   : > { %v4396_v60 = vsub.f32 %v4392_v40, %v4395_v14  ;;  %4067 = vadd.xlane.f32.xlu0 %v4066_v11  ;;  %v9371_v14 = vld [vmem:[#allocation11 + $0xe4] ss:$16 sps:$4 sm:$0xff]  }
 0x58a   : > { %v10995_v10 = vpop.eup %9957  ;;  %5268 = vmatprep.subr.bf16.mxu0 %v9371_v14  ;;  %v9374_v11 = vld [vmem:[#allocation11 + $0xc4] ss:$16 sps:$4 sm:$0xff]   ;;  %v9459_v14 = vld [vmem:[#allocation11 + $0x200] ss:$16 sps:$4 sm:$0xff]  }
 0x58b   : > { %v4397_v13 = vmul.f32 1.442695, %v4396_v60  ;;  %v4177_v15 = vsel %vm3614_vm3, %v10995_v10, 0.0  ;;  %v9372_v60 = vld [vmem:[#allocation11 + $0xc0] ss:$16 sps:$4 sm:$0xff]  }
 0x58d   : > { %9963 = vpow2.f32 %v4397_v13  ;;  %4178 = vadd.xlane.f32.xlu0 %v4177_v15  ;;  %v9380_v13 = vld [vmem:[#allocation11 + $0x84] ss:$16 sps:$4 sm:$0xff]   ;;  %v9378_v15 = vld [vmem:[#allocation11 + $0x80] ss:$16 sps:$4 sm:$0xff]  }
 0x592   : > { %v10999_v16 = vpop.eup %9959 }
 0x593   : > { %v9962_v17 = vpop.eup %9961  ;;  %v4288_v61 = vsel %vm3614_vm3, %v10999_v16, 0.0 }
 0x594   : > { %4289 = vadd.xlane.f32.xlu0 %v4288_v61  ;;  %v3625_v19 = vmul.f32 %v9962_v17, %v10972_v50  ;;  %v9381_v17 = vld [vmem:[#allocation11 + $0x60] ss:$16 sps:$4 sm:$0xff]   ;;  %v9386_v61 = vld [vmem:[#allocation11 + $0x44] ss:$16 sps:$4 sm:$0xff]  }
 0x596   : > { %v3626_v21 = vpack.c.bf16 %v3625_v19, %v3625_v19  ;;  %v9384_v19 = vld [vmem:[#allocation11 + $0x40] ss:$16 sps:$4 sm:$0xff]  }
 0x598   : > { %8522 = vmatmul.mubr.msk.bf16.vlgmr.msra.gmra.mxu1 %vm3614_vm3, %v3626_v21  ;;  %v9389_v21 = vld [vmem:[#allocation11 + $0x24] ss:$16 sps:$4 sm:$0xff]  }
 0x599   : > { %8533 = vmatprep.mubr.msk.bf16.mxu1 %vm10441_vm0, %v10440_v18 }
 0x59a   : > { %v11007_v22 = vpop.eup %9963 }
 0x59b   : > { %v4399_v23 = vsel %vm3614_vm3, %v11007_v22, 0.0 }
 0x59c   : > { %4400 = vadd.xlane.f32.xlu1 %v4399_v23  ;;  %v9392_v23 = vld [vmem:[#allocation11 + $0x4] ss:$16 sps:$4 sm:$0xff]  }
 0x5aa   : > { %4184 = vrot.lane.b32.xlu0 %v4012_v24, %s10442_s2  ;;  %v9390_v24 = vld [vmem:[#allocation11] ss:$16 sps:$4 sm:$0xff]  }
 0x5ae   : > { %4406 = vrot.lane.b32.xlu0 %v4234_v25, %s10442_s2  ;;  %v9395_v25 = vld [vmem:[#allocation11 + $0x1e4] ss:$16 sps:$4 sm:$0xff]  }
 0x5d5   : > { %v3735_v31 = vpop.xlane.xlu1 %3734 }
 0x5d6   : > { %9965 = vrcp.f32 %v3735_v31  ;;  %v9393_v31 = vld [vmem:[#allocation11 + $0x1e0] ss:$16 sps:$4 sm:$0xff]  }
 0x5dd   : > { %v3846_v32 = vpop.xlane.xlu0 %3845 }
 0x5de   : > { %9967 = vrcp.f32 %v3846_v32  ;;  %v9398_v32 = vld [vmem:[#allocation11 + $0x1c4] ss:$16 sps:$4 sm:$0xff]  }
 0x5e1   : > { %v3963_v39 = vpop.permute.xlu0 %3962 }
 0x5e2   : > { %v3968_v43 = vsel %vm3630_vm2, %v3963_v39, 0  ;;  %v9413_v39 = vld [vmem:[#allocation11 + $0x124] ss:$16 sps:$4 sm:$0xff]  }
 0x5e3   : > { %v9966_v33 = vpop.eup %9965 }
 0x5e4   : > { %v3737_v35 = vmul.f32 %v9966_v33, %v9950_v58  ;;  %v9396_v33 = vld [vmem:[#allocation11 + $0x1c0] ss:$16 sps:$4 sm:$0xff]  }
 0x5e5   : > { %v3957_v34 = vpop.xlane.xlu1 %3956 }
 0x5e6   : > { %9969 = vrcp.f32 %v3957_v34  ;;  %v3738_v52 = vpack.c.bf16 %v3737_v35, %v3737_v35  ;;  %v9401_v34 = vld [vmem:[#allocation11 + $0x1a4] ss:$16 sps:$4 sm:$0xff]   ;;  %v9399_v35 = vld [vmem:[#allocation11 + $0x1a0] ss:$16 sps:$4 sm:$0xff]  }
 0x5e9   : > { %v3741_v50 = vpop.permute.xlu1 %3740 }
 0x5ea   : > { %v3746_v36 = vsel %vm3630_vm2, %v3741_v50, 0  ;;  %v9404_v50 = vld [vmem:[#allocation11 + $0x184] ss:$16 sps:$4 sm:$0xff]  }
 0x5eb   : > { %8532 = vmatpush3.bf16.msra.mxu1 %v3746_v36  ;;  %v9968_v37 = vpop.eup %9967  ;;  %v9402_v36 = vld [vmem:[#allocation11 + $0x180] ss:$16 sps:$4 sm:$0xff]  }
 0x5ec   : > { %8543 = vmatprep.subr.bf16.mxu1 %v10440_v18  ;;  %v3848_v38 = vmul.f32 %v9968_v37, %v10978_v26  ;;  %v9405_v37 = vld [vmem:[#allocation11 + $0x160] ss:$16 sps:$4 sm:$0xff]  }
 0x5ee   : > { %8534 = vmatmul.mubr.msk.bf16.vlgmr.msra.gmra.mxu1 %vm3614_vm3, %v3738_v52  ;;  %v3849_v40 = vpack.c.bf16 %v3848_v38, %v3848_v38  ;;  %v9407_v52 = vld [vmem:[#allocation11 + $0x164] ss:$16 sps:$4 sm:$0xff]   ;;  %v9408_v38 = vld [vmem:[#allocation11 + $0x140] ss:$16 sps:$4 sm:$0xff]  }
 0x5ef   : > { %8544 = vmatpush3.bf16.msra.mxu1 %v3854_v42  ;;  %8545 = vmatprep.mubr.msk.bf16.mxu1 %vm10441_vm0, %v10440_v18  ;;  %v9410_v42 = vld [vmem:[#allocation11 + $0x144] ss:$16 sps:$4 sm:$0xff]  }
 0x5f0   : > { %8555 = vmatprep.subr.bf16.mxu1 %v10440_v18 }
 0x5f3   : > { %v9970_v41 = vpop.eup %9969 }
 0x5f4   : > { %v3959_v44 = vmul.f32 %v9970_v41, %v10982_v59 }
 0x5f6   : > { %8546 = vmatmul.mubr.msk.bf16.vlgmr.msra.gmra.mxu1 %vm3614_vm3, %v3849_v40  ;;  %v3960_v45 = vpack.c.bf16 %v3959_v44, %v3959_v44 }
 0x5f7   : > { %8556 = vmatpush3.bf16.msra.mxu1 %v3968_v43  ;;  %8557 = vmatprep.mubr.msk.bf16.mxu1 %vm10441_vm0, %v10440_v18  ;;  %v9411_v43 = vld [vmem:[#allocation11 + $0x120] ss:$16 sps:$4 sm:$0xff]  }
 0x5f8   : > { %8567 = vmatprep.subr.bf16.mxu1 %v10440_v18 }
 0x5fe   : > { %8558 = vmatmul.mubr.msk.bf16.vlgmr.msra.gmra.mxu1 %vm3614_vm3, %v3960_v45 }
 0x5ff   : > { %8568 = vmatpush3.bf16.msra.mxu1 %v4076_v47  ;;  %8569 = vmatprep.mubr.msk.bf16.mxu1 %vm10441_vm0, %v10440_v18  ;;  %v9416_v47 = vld [vmem:[#allocation11 + $0x104] ss:$16 sps:$4 sm:$0xff]  }
 0x600   : > { %8579 = vmatprep.subr.bf16.mxu1 %v10440_v18 }
 0x612   : > { %v4068_v48 = vpop.xlane.xlu0 %4067 }
 0x613   : > { %9971 = vrcp.f32 %v4068_v48 }
 0x616   : > { %v4179_v53 = vpop.xlane.xlu0 %4178 }
 0x617   : > { %9973 = vrcp.f32 %v4179_v53  ;;  %v9414_v53 = vld [vmem:[#allocation11 + $0x100] ss:$16 sps:$4 sm:$0xff]  }
 0x61d   : > { %v4290_v46 = vpop.xlane.xlu0 %4289 }
 0x61e   : > { %9975 = vrcp.f32 %v4290_v46  ;;  %v9417_v46 = vld [vmem:[#allocation11 + $0x2e0] ss:$16 sps:$4 sm:$0xff]  }
 0x620   : > { %v9972_v54 = vpop.eup %9971 }
 0x621   : > { %v4070_v55 = vmul.f32 %v9972_v54, %v10991_v9  ;;  %v4185_v56 = vpop.permute.xlu0 %4184  ;;  %v9369_v9 = vld [vmem:[#allocation11 + $0xe0] ss:$16 sps:$4 sm:$0xff]   ;;  %v9419_v54 = vld [vmem:[#allocation11 + $0x2e4] ss:$16 sps:$4 sm:$0xff]  }
 0x622   : > { %v4190_v49 = vsel %vm3630_vm2, %v4185_v56, 0  ;;  %5269 = vmatpush1.bf16.msra.mxu0 %v9369_v9  ;;  %v9422_v56 = vld [vmem:[#allocation11 + $0xec] ss:$16 sps:$4 sm:$0xff]   ;;  %v9455_v9 = vld [vmem:[#allocation11 + $0x224] ss:$16 sps:$4 sm:$0xff]  }
 0x623   : > { %v4071_v57 = vpack.c.bf16 %v4070_v55, %v4070_v55  ;;  %5270 = vmatprep.subr.bf16.mxu0 %v9374_v11  ;;  %v9461_v11 = vld [vmem:[#allocation11 + $0x204] ss:$16 sps:$4 sm:$0xff]  }
 0x624   : > { %v9974_v58 = vpop.eup %9973 }
 0x625   : > { %8570 = vmatmul.mubr.msk.bf16.vlgmr.msra.gmra.mxu1 %vm3614_vm3, %v4071_v57  ;;  %v4401_v51 = vpop.xlane.xlu1 %4400  ;;  %v4181_v26 = vmul.f32 %v9974_v58, %v10995_v10  ;;  %v4407_v0 = vpop.permute.xlu0 %4406  ;;  %v9375_v10 = vld [vmem:[#allocation11 + $0xa0] ss:$16 sps:$4 sm:$0xff]  }
 0x626   : > { %8580 = vmatpush3.bf16.msra.mxu1 %v4190_v49  ;;  %8581 = vmatprep.mubr.msk.bf16.mxu1 %vm10441_vm0, %v10440_v18  ;;  %9977 = vrcp.f32 %v4401_v51  ;;  %v4412_v2 = vsel %vm3630_vm2, %v4407_v0, 0  ;;  %v9423_v58 = vld [vmem:[#allocation11 + $0x2c0] ss:$16 sps:$4 sm:$0xff]   ;;  %v9425_v49 = vld [vmem:[#allocation11 + $0x2c4] ss:$16 sps:$4 sm:$0xff]  }
 0x627   : > { %8591 = vmatprep.subr.bf16.mxu1 %v10440_v18  ;;  %v4182_v62 = vpack.c.bf16 %v4181_v26, %v4181_v26  ;;  %5271 = vmatpush1.bf16.msra.mxu0 %v9372_v60  ;;  %v9465_v60 = vld [vmem:[#allocation11 + $0x3e0] ss:$16 sps:$4 sm:$0xff]  }
 0x62b   : > { %v9976_v59 = vpop.eup %9975 }
 0x62c   : > { %v4292_v63 = vmul.f32 %v9976_v59, %v10999_v16  ;;  %v9383_v16 = vld [vmem:[#allocation11 + $0x64] ss:$16 sps:$4 sm:$0xff]   ;;  %v9429_v59 = vld [vmem:[#allocation11 + $0x2a0] ss:$16 sps:$4 sm:$0xff]  }
 0x62d   : > { %8582 = vmatmul.mubr.msk.bf16.vlgmr.msra.gmra.mxu1 %vm3614_vm3, %v4182_v62 }
 0x62e   : > { %8592 = vmatpush3.bf16.msra.mxu1 %v4298_v20  ;;  %8593 = vmatprep.mubr.msk.bf16.mxu1 %vm10441_vm0, %v10440_v18  ;;  %v4293_v1 = vpack.c.bf16 %v4292_v63, %v4292_v63  ;;  %v9431_v20 = vld [vmem:[#allocation11 + $0x2a4] ss:$16 sps:$4 sm:$0xff]  }
 0x62f   : > { %8603 = vmatprep.subr.bf16.mxu1 %v10440_v18 }
 0x633   : > { %v9978_v7 = vpop.eup %9977 }
 0x634   : > { %v4403_v3 = vmul.f32 %v9978_v7, %v11007_v22  ;;  %v9387_v22 = vld [vmem:[#allocation11 + $0x20] ss:$16 sps:$4 sm:$0xff]   ;;  %v9437_v7 = vld [vmem:[#allocation11 + $0x284] ss:$16 sps:$4 sm:$0xff]  }
 0x635   : > { %8594 = vmatmul.mubr.msk.bf16.vlgmr.msra.gmra.mxu1 %vm3614_vm3, %v4293_v1  ;;  %v9435_v1 = vld [vmem:[#allocation11 + $0x280] ss:$16 sps:$4 sm:$0xff]  }
 0x636   : > { %8604 = vmatpush3.bf16.msra.mxu1 %v4412_v2  ;;  %8605 = vmatprep.mubr.msk.bf16.mxu1 %vm10441_vm0, %v10440_v18  ;;  %v4404_v4 = vpack.c.bf16 %v4403_v3, %v4403_v3  ;;  %v9377_v18 = vld [vmem:[#allocation11 + $0xa4] ss:$16 sps:$4 sm:$0xff]   ;;  %v9441_v3 = vld [vmem:[#allocation11 + $0x260] ss:$16 sps:$4 sm:$0xff]  }
 0x637   : > { %5272 = vmatprep.subr.bf16.mxu0 %v9377_v18  ;;  %5309 = vmatprep.subr.bf16.mxu1 %v9419_v54  ;;  %v9471_v18 = vld [vmem:[#allocation11 + $0x3c0] ss:$16 sps:$4 sm:$0xff]  }
 0x638   : > { %5273 = vmatpush1.bf16.msra.mxu0 %v9375_v10  ;;  %v9467_v10 = vld [vmem:[#allocation11 + $0x3e4] ss:$16 sps:$4 sm:$0xff]  }
 0x639   : > { %5274 = vmatprep.subr.bf16.mxu0 %v9380_v13  ;;  %v9473_v13 = vld [vmem:[#allocation11 + $0x3c4] ss:$16 sps:$4 sm:$0xff]  }
 0x63c   : > { %5275 = vmatpush1.bf16.msra.mxu0 %v9378_v15  ;;  %v9477_v15 = vld [vmem:[#allocation11 + $0x3a0] ss:$16 sps:$4 sm:$0xff]  }
 0x63d   : > { %8606 = vmatmul.mubr.msk.bf16.vlgmr.msra.gmra.mxu1 %vm3614_vm3, %v4404_v4  ;;  %5276 = vmatprep.subr.bf16.mxu0 %v9383_v16  ;;  %v9443_v4 = vld [vmem:[#allocation11 + $0x264] ss:$16 sps:$4 sm:$0xff]  }
 0x63e   : > { %5310 = vmatpush1.bf16.msra.mxu1 %v9417_v46  ;;  %v9479_v16 = vld [vmem:[#allocation11 + $0x3a4] ss:$16 sps:$4 sm:$0xff]  }
 0x63f   : > { %5311 = vmatprep.subr.bf16.mxu1 %v9425_v49 }
 0x640   : > { %5277 = vmatpush1.bf16.msra.mxu0 %v9381_v17  ;;  %v9483_v17 = vld [vmem:[#allocation11 + $0x380] ss:$16 sps:$4 sm:$0xff]  }
 0x641   : > { %5278 = vmatprep.subr.bf16.mxu0 %v9386_v61  ;;  %v9485_v61 = vld [vmem:[#allocation11 + $0x384] ss:$16 sps:$4 sm:$0xff]  }
 0x642   : > { %5312 = vmatpush1.bf16.msra.mxu1 %v9423_v58 }
 0x643   : > { %5313 = vmatprep.subr.bf16.mxu1 %v9431_v20  ;;  %v9434_v20 = vld [vmem:[#allocation11 + $0xac] ss:$16 sps:$4 sm:$0xff]  }
 0x644   : > { %5279 = vmatpush1.bf16.msra.mxu0 %v9384_v19 }
 0x645   : > { %5280 = vmatprep.subr.bf16.mxu0 %v9389_v21 }
 0x646   : > { %5314 = vmatpush1.bf16.msra.mxu1 %v9429_v59  ;;  %v9426_v59 = vld [vmem:[#allocation11 + $0xc8] ss:$16 sps:$4 sm:$0xff]  }
 0x647   : > { %5315 = vmatprep.subr.bf16.mxu1 %v9437_v7  ;;  %v9452_v7 = vld [vmem:[#allocation11 + $0x4c] ss:$16 sps:$4 sm:$0xff]  }
 0x648   : > { %5281 = vmatpush1.bf16.msra.mxu0 %v9387_v22  ;;  %v9489_v22 = vld [vmem:[#allocation11 + $0x360] ss:$16 sps:$4 sm:$0xff]  }
 0x649   : > { %5282 = vmatprep.subr.bf16.mxu0 %v9392_v23  ;;  %v9491_v23 = vld [vmem:[#allocation11 + $0x364] ss:$16 sps:$4 sm:$0xff]  }
 0x64a   : > { %5316 = vmatpush1.bf16.msra.mxu1 %v9435_v1  ;;  %v9444_v1 = vld [vmem:[#allocation11 + $0x68] ss:$16 sps:$4 sm:$0xff]  }
 0x64b   : > { %5317 = vmatprep.subr.bf16.mxu1 %v9443_v4  ;;  %v9456_v4 = vld [vmem:[#allocation11 + $0x28] ss:$16 sps:$4 sm:$0xff]  }
 0x64c   : > { %5283 = vmatpush1.bf16.msra.mxu0 %v9390_v24 }
 0x64d   : > { %5284 = vmatprep.subr.bf16.mxu0 %v9395_v25 }
 0x64e   : > { %5318 = vmatpush1.bf16.msra.mxu1 %v9441_v3  ;;  %v9458_v3 = vld [vmem:[#allocation11 + $0x2c] ss:$16 sps:$4 sm:$0xff]  }
 0x650   : > { %5285 = vmatpush2.bf16.msra.mxu0 %v9393_v31  ;;  %v9495_v31 = vld [vmem:[#allocation11 + $0x340] ss:$16 sps:$4 sm:$0xff]  }
 0x651   : > { %5286 = vmatprep.subr.bf16.mxu0 %v9398_v32  ;;  %v9497_v32 = vld [vmem:[#allocation11 + $0x344] ss:$16 sps:$4 sm:$0xff]  }
 0x654   : > { %5287 = vmatpush2.bf16.msra.mxu0 %v9396_v33 }
 0x655   : > { %5288 = vmatprep.subr.bf16.mxu0 %v9401_v34 }
 0x658   : > { %v11055_v5 = vpop.f32.mrf.mxu1  ;;  %5289 = vmatpush2.bf16.msra.mxu0 %v9399_v35  ;;  %v9501_v35 = vld [vmem:[#allocation11 + $0x320] ss:$16 sps:$4 sm:$0xff]  }
 0x659   : > { %5290 = vmatprep.subr.bf16.mxu0 %v9404_v50  ;;  %v9503_v50 = vld [vmem:[#allocation11 + $0x324] ss:$16 sps:$4 sm:$0xff]  }
 0x65a   : > { %v8523_v6 = vpop.f32.mrf.mxu1 }
 0x65b   : > { %v9447_v6 = vld [vmem:[#allocation11 + $0x240] ss:$16 sps:$4 sm:$0xff]  }
 0x65c   : > { %v3671_v12 = vpop.f32.mrf.mxu1  ;;  %5291 = vmatpush2.bf16.msra.mxu0 %v9402_v36 }
 0x65d   : > { %5292 = vmatprep.subr.bf16.mxu0 %v9407_v52  ;;  %v9449_v12 = vld [vmem:[#allocation11 + $0x244] ss:$16 sps:$4 sm:$0xff]  }
 0x65e   : > { %v8524_v8 = vpop.f32.mrf.mxu1  ;;  %5319 = vmatprep.subr.bf16.mxu1 %v9449_v12  ;;  %v9462_v12 = vld [vmem:[#allocation11 + $0x8] ss:$16 sps:$4 sm:$0xff]  }
 0x65f   : > { %5320 = vmatpush1.bf16.msra.mxu1 %v9447_v6  ;;  %v9453_v8 = vld [vmem:[#allocation11 + $0x220] ss:$16 sps:$4 sm:$0xff]   ;;  %v9464_v6 = vld [vmem:[#allocation11 + $0xc] ss:$16 sps:$4 sm:$0xff]  }
 0x660   : > { %5293 = vmatpush2.bf16.msra.mxu0 %v9405_v37  ;;  %5321 = vmatprep.subr.bf16.mxu1 %v9455_v9  ;;  %v9509_v37 = vld [vmem:[#allocation11 + $0x304] ss:$16 sps:$4 sm:$0xff]   ;;  %v9468_v9 = vld [vmem:[#allocation11 + $0x1e8] ss:$16 sps:$4 sm:$0xff]  }
 0x661   : > { %5294 = vmatprep.subr.bf16.mxu0 %v9410_v42 }
 0x663   : > { %5322 = vmatpush1.bf16.msra.mxu1 %v9453_v8  ;;  %v9470_v8 = vld [vmem:[#allocation11 + $0x1ec] ss:$16 sps:$4 sm:$0xff]  }
 0x664   : > { %5295 = vmatpush2.bf16.msra.mxu0 %v9408_v38  ;;  %5323 = vmatprep.subr.bf16.mxu1 %v9461_v11  ;;  %v9507_v38 = vld [vmem:[#allocation11 + $0x300] ss:$16 sps:$4 sm:$0xff]   ;;  %v9474_v11 = vld [vmem:[#allocation11 + $0x1c8] ss:$16 sps:$4 sm:$0xff]  }
 0x665   : > { %5296 = vmatprep.subr.bf16.mxu0 %v9413_v39 }
 0x667   : > { %5324 = vmatpush1.bf16.msra.mxu1 %v9459_v14  ;;  %v9476_v14 = vld [vmem:[#allocation11 + $0x1cc] ss:$16 sps:$4 sm:$0xff]  }
 0x668   : > { %5297 = vmatpush2.bf16.msra.mxu0 %v9411_v43  ;;  %5325 = vmatprep.subr.bf16.mxu1 %v9467_v10  ;;  %v9480_v10 = vld [vmem:[#allocation11 + $0x1a8] ss:$16 sps:$4 sm:$0xff]  }
 0x669   : > { %5298 = vmatprep.subr.bf16.mxu0 %v9416_v47 }
 0x66b   : > { %5326 = vmatpush2.bf16.msra.mxu1 %v9465_v60  ;;  %v9482_v60 = vld [vmem:[#allocation11 + $0x1ac] ss:$16 sps:$4 sm:$0xff]  }
 0x66c   : > { %5299 = vmatpush2.bf16.msra.mxu0 %v9414_v53  ;;  %5327 = vmatprep.subr.bf16.mxu1 %v9473_v13  ;;  %v9486_v13 = vld [vmem:[#allocation11 + $0x188] ss:$16 sps:$4 sm:$0xff]  }
 0x66d   : > { %5350 = vmatprep.subr.bf16.mxu0 %v9422_v56 }
 0x66f   : > { %5328 = vmatpush2.bf16.msra.mxu1 %v9471_v18  ;;  %v9488_v18 = vld [vmem:[#allocation11 + $0x18c] ss:$16 sps:$4 sm:$0xff]  }
 0x670   : > { %5329 = vmatprep.subr.bf16.mxu1 %v9479_v16  ;;  %v9492_v16 = vld [vmem:[#allocation11 + $0x168] ss:$16 sps:$4 sm:$0xff]  }
 0x673   : > { %5330 = vmatpush2.bf16.msra.mxu1 %v9477_v15  ;;  %v9494_v15 = vld [vmem:[#allocation11 + $0x16c] ss:$16 sps:$4 sm:$0xff]  }
 0x674   : > { %5331 = vmatprep.subr.bf16.mxu1 %v9485_v61  ;;  %v9498_v61 = vld [vmem:[#allocation11 + $0x148] ss:$16 sps:$4 sm:$0xff]  }
 0x677   : > { %5332 = vmatpush2.bf16.msra.mxu1 %v9483_v17  ;;  %v9500_v17 = vld [vmem:[#allocation11 + $0x14c] ss:$16 sps:$4 sm:$0xff]  }
 0x678   : > { %5333 = vmatprep.subr.bf16.mxu1 %v9491_v23  ;;  %v9512_v23 = vld [vmem:[#allocation11 + $0x10c] ss:$16 sps:$4 sm:$0xff]  }
 0x67b   : > { %5334 = vmatpush2.bf16.msra.mxu1 %v9489_v22  ;;  %v9504_v22 = vld [vmem:[#allocation11 + $0x128] ss:$16 sps:$4 sm:$0xff]  }
 0x67c   : > { %5335 = vmatprep.subr.bf16.mxu1 %v9497_v32  ;;  %v9510_v32 = vld [vmem:[#allocation11 + $0x108] ss:$16 sps:$4 sm:$0xff]  }
 0x67f   : > { %5336 = vmatpush2.bf16.msra.mxu1 %v9495_v31 }
 0x680   : > { %5337 = vmatprep.subr.bf16.mxu1 %v9503_v50 }
 0x683   : > { %5338 = vmatpush2.bf16.msra.mxu1 %v9501_v35 }
 0x684   : > { %5339 = vmatprep.subr.bf16.mxu1 %v9509_v37  ;;  %v9516_v37 = vld [vmem:[#allocation11 + $0x2c8] ss:$16 sps:$4 sm:$0xff]  }
 0x687   : > { %5340 = vmatpush2.bf16.msra.mxu1 %v9507_v38  ;;  %v9521_v38 = vld [vmem:[#allocation11 + $0x2ac] ss:$16 sps:$4 sm:$0xff]  }
 0x6ae   : > { %v3782_v40 = vpop.f32.mrf.mxu1 }
 0x6b0   : > { %v8535_v41 = vpop.f32.mrf.mxu1 }
 0x6b2   : > { %v3785_v44 = vpop.f32.mrf.mxu1 }
 0x6b4   : > { %v8536_v45 = vpop.f32.mrf.mxu1 }
 0x6b6   : > { %v11057_v48 = vpop.f32.mrf.mxu1 }
 0x6b8   : > { %v8547_v55 = vpop.f32.mrf.mxu1 }
 0x6ba   : > { %v3893_v57 = vpop.f32.mrf.mxu1 }
 0x6bc   : > { %v8548_v51 = vpop.f32.mrf.mxu1 }
 0x6be   : > { %v4004_v26 = vpop.f32.mrf.mxu1 }
 0x6bf   : > { %v8783_v62 = vpack.i.bf16 %v3782_v40, %v4004_v26  ;;  %v9515_v40 = vld [vmem:[#allocation11 + $0x2ec] ss:$16 sps:$4 sm:$0xff]   ;;  %v9420_v26 = vld [vmem:[#allocation11 + $0xe8] ss:$16 sps:$4 sm:$0xff]  }
 0x6c0   : > { %v8559_v63 = vpop.f32.mrf.mxu1  ;;  %5391 = vmatprep.subr.bf16.mxu1 %v9515_v40  ;;  %v9527_v40 = vld [vmem:[#allocation11 + $0x26c] ss:$16 sps:$4 sm:$0xff]  }
 0x6c1   : > { %8784 = vrot.lane.b32.xlu0 %v8783_v62, %s10442_s2  ;;  %v9428_v62 = vld [vmem:[#allocation11 + $0xcc] ss:$16 sps:$4 sm:$0xff]   ;;  %v9432_v63 = vld [vmem:[#allocation11 + $0xa8] ss:$16 sps:$4 sm:$0xff]  }
 0x6c2   : > { %v4007_v0 = vpop.f32.mrf.mxu1 }
 0x6c3   : > { %v9438_v0 = vld [vmem:[#allocation11 + $0x88] ss:$16 sps:$4 sm:$0xff]  }
 0x6c4   : > { %v8560_v2 = vpop.f32.mrf.mxu1 }
 0x6c5   : > { %v9450_v2 = vld [vmem:[#allocation11 + $0x48] ss:$16 sps:$4 sm:$0xff]  }
 0x6e5   : > { %v11060_v19 = vpop.f32.mrf.mxu1 }
 0x6e7   : > { %v8571_v21 = vpop.f32.mrf.mxu1 }
 0x6e8   : > { %v9506_v21 = vld [vmem:[#allocation11 + $0x12c] ss:$16 sps:$4 sm:$0xff]  }
 0x6e9   : > { %v4115_v24 = vpop.f32.mrf.mxu1 }
 0x6eb   : > { %v8572_v25 = vpop.f32.mrf.mxu1 }
 0x6ed   : > { %v4226_v33 = vpop.f32.mrf.mxu1 }
 0x6ef   : > { %v8583_v34 = vpop.f32.mrf.mxu1 }
 0x6f1   : > { %v4229_v36 = vpop.f32.mrf.mxu1 }
 0x6f2   : > { %v9513_v36 = vld [vmem:[#allocation11 + $0x2e8] ss:$16 sps:$4 sm:$0xff]  }
 0x6f3   : > { %v8584_v52 = vpop.f32.mrf.mxu1 }
 0x6f4   : > { %v9518_v52 = vld [vmem:[#allocation11 + $0x2cc] ss:$16 sps:$4 sm:$0xff]  }
 0x6f5   : > { %v11062_v42 = vpop.f32.mrf.mxu1 }
 0x6f7   : > { %v8595_v39 = vpop.f32.mrf.mxu1 }
 0x6f8   : > { %v9522_v39 = vld [vmem:[#allocation11 + $0x288] ss:$16 sps:$4 sm:$0xff]  }
 0x6f9   : > { %v4337_v41 = vpop.f32.mrf.mxu1 }
 0x6fa   : > { %v9525_v41 = vld [vmem:[#allocation11 + $0x268] ss:$16 sps:$4 sm:$0xff]  }
 0x6fb   : > { %v8596_v43 = vpop.f32.mrf.mxu1 }
 0x6fc   : > { %v9530_v43 = vld [vmem:[#allocation11 + $0x24c] ss:$16 sps:$4 sm:$0xff]  }
 0x6fd   : > { %v4448_v44 = vpop.f32.mrf.mxu1 }
 0x6fe   : > { %v8788_v45 = vpack.i.bf16 %v4226_v33, %v4448_v44  ;;  %v9528_v44 = vld [vmem:[#allocation11 + $0x248] ss:$16 sps:$4 sm:$0xff]  }
 0x6ff   : > { %v8607_v47 = vpop.f32.mrf.mxu1 }
 0x700   : > { %8789 = vrot.lane.b32.xlu0 %v8788_v45, %s10442_s2  ;;  %v9533_v45 = vld [vmem:[#allocation11 + $0x22c] ss:$16 sps:$4 sm:$0xff]   ;;  %v9531_v47 = vld [vmem:[#allocation11 + $0x228] ss:$16 sps:$4 sm:$0xff]  }
 0x701   : > { %v4451_v53 = vpop.f32.mrf.mxu1 }
 0x702   : > { %v9536_v53 = vld [vmem:[#allocation11 + $0x20c] ss:$16 sps:$4 sm:$0xff]  }
 0x703   : > { %v8608_v46 = vpop.f32.mrf.mxu1 }
 0x704   : > { %v9534_v46 = vld [vmem:[#allocation11 + $0x208] ss:$16 sps:$4 sm:$0xff]  }
 0x733   : > { %v8785_v54 = vpop.permute.xlu0 %8784 }
 0x734   : > { %v8787_v55 = vunpack.i.h.bf16 %v8785_v54  ;;  %v8786_v56 = vunpack.i.l.bf16 %v8785_v54  ;;  %v9539_v54 = vld [vmem:[#allocation11 + $0x3ec] ss:$16 sps:$4 sm:$0xff]  }
 0x736   : > { %v4470_v57 = vsel %vm3566_vm1, %v11055_v5, %v8787_v55  ;;  %v4471_v58 = vsel %vm3566_vm1, %v11057_v48, %v8786_v56  ;;  %v9440_v5 = vld [vmem:[#allocation11 + $0x8c] ss:$16 sps:$4 sm:$0xff]   ;;  %v9537_v55 = vld [vmem:[#allocation11 + $0x3e8] ss:$16 sps:$4 sm:$0xff]  }
 0x737   : > { %v11069_v49 = vpack.c.bf16 %v4470_v57, %v4470_v57  ;;  %v4475_v51 = vpack.c.bf16 %v4471_v58, %v4471_v58  ;;  %v9446_v48 = vld [vmem:[#allocation11 + $0x6c] ss:$16 sps:$4 sm:$0xff]   ;;  %v9540_v57 = vld [vmem:[#allocation11 + $0x3c8] ss:$16 sps:$4 sm:$0xff]  }
 0x738   : > { %v9542_v56 = vld [vmem:[#allocation11 + $0x3cc] ss:$16 sps:$4 sm:$0xff]  }
 0x739   : > { %5300 = vmatprep.mubr.bf16.mxu0 %v4475_v51  ;;  %v9545_v58 = vld [vmem:[#allocation11 + $0x3ac] ss:$16 sps:$4 sm:$0xff]  }
 0x73a   : > { %5301 = vmatmul.mubr.bf16.vlgmr.msra.gmra.mxu0 %v11069_v49 }
 0x73b   : > { %5351 = vmatpush1.bf16.msra.mxu0 %v9420_v26  ;;  %5382 = vmatprep.mubr.bf16.mxu0 %v4475_v51  ;;  %v9548_v51 = vld [vmem:[#allocation11 + $0x38c] ss:$16 sps:$4 sm:$0xff]   ;;  %v9546_v26 = vld [vmem:[#allocation11 + $0x388] ss:$16 sps:$4 sm:$0xff]  }
 0x73c   : > { %5352 = vmatprep.subr.bf16.mxu0 %v9428_v62  ;;  %v9551_v62 = vld [vmem:[#allocation11 + $0x36c] ss:$16 sps:$4 sm:$0xff]  }
 0x73f   : > { %5353 = vmatpush1.bf16.msra.mxu0 %v9426_v59  ;;  %v9549_v59 = vld [vmem:[#allocation11 + $0x368] ss:$16 sps:$4 sm:$0xff]  }
 0x740   : > { %5354 = vmatprep.subr.bf16.mxu0 %v9434_v20  ;;  %v9554_v20 = vld [vmem:[#allocation11 + $0x34c] ss:$16 sps:$4 sm:$0xff]  }
 0x743   : > { %5355 = vmatpush1.bf16.msra.mxu0 %v9432_v63  ;;  %v9552_v63 = vld [vmem:[#allocation11 + $0x348] ss:$16 sps:$4 sm:$0xff]  }
 0x744   : > { %5356 = vmatprep.subr.bf16.mxu0 %v9440_v5  ;;  %v9557_v5 = vld [vmem:[#allocation11 + $0x32c] ss:$16 sps:$4 sm:$0xff]  }
 0x747   : > { %5357 = vmatpush1.bf16.msra.mxu0 %v9438_v0  ;;  %v9555_v0 = vld [vmem:[#allocation11 + $0x328] ss:$16 sps:$4 sm:$0xff]  }
 0x748   : > { %5358 = vmatprep.subr.bf16.mxu0 %v9446_v48  ;;  %v9560_v48 = vld [vmem:[#allocation11 + $0x30c] ss:$16 sps:$4 sm:$0xff]  }
 0x74b   : > { %5359 = vmatpush1.bf16.msra.mxu0 %v9444_v1  ;;  %v9558_v1 = vld [vmem:[#allocation11 + $0x308] ss:$16 sps:$4 sm:$0xff]  }
 0x74c   : > { %5360 = vmatprep.subr.bf16.mxu0 %v9452_v7 }
 0x74f   : > { %5361 = vmatpush1.bf16.msra.mxu0 %v9450_v2 }
 0x750   : > { %5362 = vmatprep.subr.bf16.mxu0 %v9458_v3 }
 0x753   : > { %5363 = vmatpush1.bf16.msra.mxu0 %v9456_v4 }
 0x754   : > { %5364 = vmatprep.subr.bf16.mxu0 %v9464_v6 }
 0x757   : > { %5365 = vmatpush1.bf16.msra.mxu0 %v9462_v12 }
 0x758   : > { %5366 = vmatprep.subr.bf16.mxu0 %v9470_v8 }
 0x75b   : > { %5367 = vmatpush2.bf16.msra.mxu0 %v9468_v9 }
 0x75c   : > { %5368 = vmatprep.subr.bf16.mxu0 %v9476_v14 }
 0x75f   : > { %5369 = vmatpush2.bf16.msra.mxu0 %v9474_v11 }
 0x760   : > { %5370 = vmatprep.subr.bf16.mxu0 %v9482_v60 }
 0x763   : > { %5371 = vmatpush2.bf16.msra.mxu0 %v9480_v10 }
 0x764   : > { %5372 = vmatprep.subr.bf16.mxu0 %v9488_v18  ;;  %v4606_v18 = vld [vmem:[#allocation13] sm:$0xf] }
 0x767   : > { %5373 = vmatpush2.bf16.msra.mxu0 %v9486_v13  ;;  %v4615_v13 = vrot.slane %v4606_v18, %v10806_v27 }
 0x768   : > { %5374 = vmatprep.subr.bf16.mxu0 %v9494_v15  ;;  %v4611_v15 = vrot.slane %v4606_v18, %v10812_v29 }
 0x76b   : > { %5375 = vmatpush2.bf16.msra.mxu0 %v9492_v16 }
 0x76c   : > { %5376 = vmatprep.subr.bf16.mxu0 %v9500_v17 }
 0x76f   : > { %5377 = vmatpush2.bf16.msra.mxu0 %v9498_v61  ;;  %v4619_v61 = vrot.slane %v4606_v18, %v10815_v30 }
 0x770   : > { %5378 = vmatprep.subr.bf16.mxu0 %v9506_v21 }
 0x772   : > { %v8790_v24 = vpop.permute.xlu0 %8789 }
 0x773   : > { %5379 = vmatpush2.bf16.msra.mxu0 %v9504_v22  ;;  %v8792_v25 = vunpack.i.h.bf16 %v8790_v24  ;;  %v8791_v31 = vunpack.i.l.bf16 %v8790_v24 }
 0x774   : > { %5380 = vmatprep.subr.bf16.mxu0 %v9512_v23  ;;  %v4623_v23 = vrot.slane %v4606_v18, %v10809_v28  ;;  %v9611_v18 = vld [vmem:[#allocation17 + $0x1e4] ss:$16 sps:$4 sm:$0xff]  }
 0x775   : > { %v4472_v33 = vsel %vm3566_vm1, %v11060_v19, %v8792_v25  ;;  %v4473_v34 = vsel %vm3566_vm1, %v11062_v42, %v8791_v31  ;;  %v9519_v19 = vld [vmem:[#allocation11 + $0x2a8] ss:$16 sps:$4 sm:$0xff]   ;;  %v9524_v42 = vld [vmem:[#allocation11 + $0x28c] ss:$16 sps:$4 sm:$0xff]  }
 0x776   : > { %v11076_v35 = vpack.c.bf16 %v4472_v33, %v4472_v33  ;;  %v4477_v50 = vpack.c.bf16 %v4473_v34, %v4473_v34  ;;  %v9989_v25 = vld [vmem:[%s10737_s8 + $0x8] sm:$0xff]  ;;  %v9990_v33 = vld [vmem:[%s10737_s8] sm:$0xff] }
 0x777   : > { %5381 = vmatpush2.bf16.msra.mxu0 %v9510_v32 }
 0x778   : > { %5341 = vmatprep.mubr.bf16.mxu1 %v4477_v50 }
 0x779   : > { %5342 = vmatmul.mubr.bf16.vlgmr.msra.gmra.mxu1 %v11076_v35 }
 0x77a   : > { %5383 = vmatmul.mubr.bf16.vlgmr.msra.gmra.mxu0 %v11069_v49  ;;  %5392 = vmatpush1.bf16.msra.mxu1 %v9513_v36  ;;  %v9543_v49 = vld [vmem:[#allocation11 + $0x3a8] ss:$16 sps:$4 sm:$0xff]  }
 0x77b   : > { %5423 = vmatprep.mubr.bf16.mxu1 %v4477_v50  ;;  %5393 = vmatprep.subr.bf16.mxu1 %v9518_v52  ;;  %v9991_v52 = vld [vmem:[%s10737_s8 + $0x10] sm:$0xff] }
 0x77e   : > { %5394 = vmatpush1.bf16.msra.mxu1 %v9516_v37 }
 0x77f   : > { %5395 = vmatprep.subr.bf16.mxu1 %v9521_v38 }
 0x782   : > { %5396 = vmatpush1.bf16.msra.mxu1 %v9519_v19 }
 0x783   : > { %5397 = vmatprep.subr.bf16.mxu1 %v9524_v42 }
 0x786   : > { %5398 = vmatpush1.bf16.msra.mxu1 %v9522_v39  ;;  %v9992_v39 = vld [vmem:[%s10737_s8 + $0x18] sm:$0xff] }
 0x787   : > { %5399 = vmatprep.subr.bf16.mxu1 %v9527_v40 }
 0x78a   : > { %5400 = vmatpush1.bf16.msra.mxu1 %v9525_v41 }
 0x78b   : > { %5401 = vmatprep.subr.bf16.mxu1 %v9530_v43 }
 0x78e   : > { %5402 = vmatpush1.bf16.msra.mxu1 %v9528_v44 }
 0x78f   : > { %5403 = vmatprep.subr.bf16.mxu1 %v9533_v45  ;;  %v9561_v45 = vld [vmem:[#allocation17 + $0xe0] ss:$16 sps:$4 sm:$0xff]  }
 0x792   : > { %5404 = vmatpush1.bf16.msra.mxu1 %v9531_v47  ;;  %v9563_v47 = vld [vmem:[#allocation17 + $0xe4] ss:$16 sps:$4 sm:$0xff]  }
 0x793   : > { %5405 = vmatprep.subr.bf16.mxu1 %v9536_v53  ;;  %v9564_v53 = vld [vmem:[#allocation17 + $0x2e0] ss:$16 sps:$4 sm:$0xff]   ;;  %6308 = vmatprep.subr.bf16.mxu0 %v9563_v47 }
 0x794   : > { %6309 = vmatpush1.bf16.msra.mxu0 %v9561_v45  ;;  %v9624_v45 = vld [vmem:[#allocation17 + $0x3a0] ss:$16 sps:$4 sm:$0xff]  }
 0x795   : > { %v9627_v47 = vld [vmem:[#allocation17 + $0x180] ss:$16 sps:$4 sm:$0xff]  }
 0x796   : > { %5406 = vmatpush1.bf16.msra.mxu1 %v9534_v46  ;;  %v9566_v46 = vld [vmem:[#allocation17 + $0x2e4] ss:$16 sps:$4 sm:$0xff]  }
 0x797   : > { %5407 = vmatprep.subr.bf16.mxu1 %v9539_v54  ;;  %v9569_v54 = vld [vmem:[#allocation17 + $0xc4] ss:$16 sps:$4 sm:$0xff]  }
 0x798   : > { %6310 = vmatprep.subr.bf16.mxu0 %v9569_v54  ;;  %v9632_v54 = vld [vmem:[#allocation17 + $0x384] ss:$16 sps:$4 sm:$0xff]  }
 0x79a   : > { %5408 = vmatpush2.bf16.msra.mxu1 %v9537_v55  ;;  %v9572_v55 = vld [vmem:[#allocation17 + $0x2c4] ss:$16 sps:$4 sm:$0xff]  }
 0x79b   : > { %5409 = vmatprep.subr.bf16.mxu1 %v9542_v56  ;;  %v9567_v56 = vld [vmem:[#allocation17 + $0xc0] ss:$16 sps:$4 sm:$0xff]  }
 0x79c   : > { %6311 = vmatpush1.bf16.msra.mxu0 %v9567_v56  ;;  %v9638_v56 = vld [vmem:[#allocation17 + $0x364] ss:$16 sps:$4 sm:$0xff]  }
 0x79e   : > { %5410 = vmatpush2.bf16.msra.mxu1 %v9540_v57  ;;  %v9570_v57 = vld [vmem:[#allocation17 + $0x2c0] ss:$16 sps:$4 sm:$0xff]  }
 0x79f   : > { %5411 = vmatprep.subr.bf16.mxu1 %v9545_v58  ;;  %v9575_v58 = vld [vmem:[#allocation17 + $0xa4] ss:$16 sps:$4 sm:$0xff]  }
 0x7a0   : > { %6312 = vmatprep.subr.bf16.mxu0 %v9575_v58  ;;  %v9636_v58 = vld [vmem:[#allocation17 + $0x360] ss:$16 sps:$4 sm:$0xff]  }
 0x7a2   : > { %5412 = vmatpush2.bf16.msra.mxu1 %v9543_v49  ;;  %v9578_v49 = vld [vmem:[#allocation17 + $0x2a4] ss:$16 sps:$4 sm:$0xff]  }
 0x7a3   : > { %5413 = vmatprep.subr.bf16.mxu1 %v9548_v51  ;;  %v9573_v51 = vld [vmem:[#allocation17 + $0xa0] ss:$16 sps:$4 sm:$0xff]  }
 0x7a4   : > { %6313 = vmatpush1.bf16.msra.mxu0 %v9573_v51  ;;  %v9644_v51 = vld [vmem:[#allocation17 + $0x344] ss:$16 sps:$4 sm:$0xff]  }
 0x7a6   : > { %5414 = vmatpush2.bf16.msra.mxu1 %v9546_v26  ;;  %v9576_v26 = vld [vmem:[#allocation17 + $0x2a0] ss:$16 sps:$4 sm:$0xff]  }
 0x7a7   : > { %5415 = vmatprep.subr.bf16.mxu1 %v9551_v62  ;;  %v9581_v62 = vld [vmem:[#allocation17 + $0x84] ss:$16 sps:$4 sm:$0xff]  }
 0x7a8   : > { %6314 = vmatprep.subr.bf16.mxu0 %v9581_v62  ;;  %v9642_v62 = vld [vmem:[#allocation17 + $0x340] ss:$16 sps:$4 sm:$0xff]  }
 0x7aa   : > { %5416 = vmatpush2.bf16.msra.mxu1 %v9549_v59  ;;  %v9584_v59 = vld [vmem:[#allocation17 + $0x284] ss:$16 sps:$4 sm:$0xff]  }
 0x7ab   : > { %5417 = vmatprep.subr.bf16.mxu1 %v9554_v20  ;;  %v9579_v20 = vld [vmem:[#allocation17 + $0x80] ss:$16 sps:$4 sm:$0xff]  }
 0x7ac   : > { %6315 = vmatpush1.bf16.msra.mxu0 %v9579_v20  ;;  %v9650_v20 = vld [vmem:[#allocation17 + $0x324] ss:$16 sps:$4 sm:$0xff]  }
 0x7ae   : > { %5418 = vmatpush2.bf16.msra.mxu1 %v9552_v63  ;;  %v9582_v63 = vld [vmem:[#allocation17 + $0x280] ss:$16 sps:$4 sm:$0xff]  }
 0x7af   : > { %5419 = vmatprep.subr.bf16.mxu1 %v9557_v5  ;;  %v9587_v5 = vld [vmem:[#allocation17 + $0x64] ss:$16 sps:$4 sm:$0xff]  }
 0x7b0   : > { %6316 = vmatprep.subr.bf16.mxu0 %v9587_v5  ;;  %v9648_v5 = vld [vmem:[#allocation17 + $0x320] ss:$16 sps:$4 sm:$0xff]  }
 0x7b2   : > { %5420 = vmatpush2.bf16.msra.mxu1 %v9555_v0  ;;  %v9590_v0 = vld [vmem:[#allocation17 + $0x264] ss:$16 sps:$4 sm:$0xff]  }
 0x7b3   : > { %5421 = vmatprep.subr.bf16.mxu1 %v9560_v48  ;;  %v9585_v48 = vld [vmem:[#allocation17 + $0x60] ss:$16 sps:$4 sm:$0xff]  }
 0x7b4   : > { %6317 = vmatpush1.bf16.msra.mxu0 %v9585_v48  ;;  %v9656_v48 = vld [vmem:[#allocation17 + $0x304] ss:$16 sps:$4 sm:$0xff]  }
 0x7b6   : > { %5422 = vmatpush2.bf16.msra.mxu1 %v9558_v1  ;;  %v9588_v1 = vld [vmem:[#allocation17 + $0x260] ss:$16 sps:$4 sm:$0xff]  }
 0x7b7   : > { %6349 = vmatprep.subr.bf16.mxu1 %v9566_v46  ;;  %v9630_v46 = vld [vmem:[#allocation17 + $0x380] ss:$16 sps:$4 sm:$0xff]  }
 0x7b9   : > { %5424 = vmatmul.mubr.bf16.vlgmr.msra.gmra.mxu1 %v11076_v35 }
 0x7ba   : > { %6350 = vmatpush1.bf16.msra.mxu1 %v9564_v53  ;;  %v9629_v53 = vld [vmem:[#allocation17 + $0x184] ss:$16 sps:$4 sm:$0xff]  }
 0x7bb   : > { %6351 = vmatprep.subr.bf16.mxu1 %v9572_v55  ;;  %v9635_v55 = vld [vmem:[#allocation17 + $0x164] ss:$16 sps:$4 sm:$0xff]  }
 0x7be   : > { %6352 = vmatpush1.bf16.msra.mxu1 %v9570_v57  ;;  %v9633_v57 = vld [vmem:[#allocation17 + $0x160] ss:$16 sps:$4 sm:$0xff]  }
 0x7bf   : > { %6353 = vmatprep.subr.bf16.mxu1 %v9578_v49  ;;  %v9641_v49 = vld [vmem:[#allocation17 + $0x144] ss:$16 sps:$4 sm:$0xff]  }
 0x7c2   : > { %6354 = vmatpush1.bf16.msra.mxu1 %v9576_v26  ;;  %v9639_v26 = vld [vmem:[#allocation17 + $0x140] ss:$16 sps:$4 sm:$0xff]  }
 0x7c3   : > { %6355 = vmatprep.subr.bf16.mxu1 %v9584_v59  ;;  %v9647_v59 = vld [vmem:[#allocation17 + $0x124] ss:$16 sps:$4 sm:$0xff]  }
 0x7c6   : > { %6356 = vmatpush1.bf16.msra.mxu1 %v9582_v63  ;;  %v9645_v63 = vld [vmem:[#allocation17 + $0x120] ss:$16 sps:$4 sm:$0xff]  }
 0x7c7   : > { %6357 = vmatprep.subr.bf16.mxu1 %v9590_v0  ;;  %v9653_v0 = vld [vmem:[#allocation17 + $0x104] ss:$16 sps:$4 sm:$0xff]  }
 0x7ca   : > { %6358 = vmatpush1.bf16.msra.mxu1 %v9588_v1  ;;  %v9651_v1 = vld [vmem:[#allocation17 + $0x100] ss:$16 sps:$4 sm:$0xff]  }
 0x7fa   : > { %v5302_v7 = vpop.f32.mrf.mxu0 }
 0x7fb   : > { %v5303_v17 = vadd.f32 %v5302_v7, %v4611_v15  ;;  %v9593_v7 = vld [vmem:[#allocation17 + $0x44] ss:$16 sps:$4 sm:$0xff]   ;;  %v9609_v15 = vld [vmem:[#allocation17 + $0x1e0] ss:$16 sps:$4 sm:$0xff]  }
 0x7fc   : > { %v5304_v2 = vpop.f32.mrf.mxu0  ;;  %6318 = vmatprep.subr.bf16.mxu0 %v9593_v7  ;;  %v9654_v7 = vld [vmem:[#allocation17 + $0x300] ss:$16 sps:$4 sm:$0xff]  }
 0x7fd   : > { %v5305_v16 = vadd.f32 %v5304_v2, %v4615_v13  ;;  %v9596_v2 = vld [vmem:[#allocation17 + $0x244] ss:$16 sps:$4 sm:$0xff]  }
 0x7fe   : > { %v5306_v3 = vpop.f32.mrf.mxu0  ;;  %6359 = vmatprep.subr.bf16.mxu1 %v9596_v2  ;;  %v9614_v13 = vld [vmem:[#allocation17 + $0x3e4] ss:$16 sps:$4 sm:$0xff]   ;;  %v9659_v2 = vld [vmem:[#allocation17 + $0xec] ss:$16 sps:$4 sm:$0xff]  }
 0x7ff   : > { %v9591_v3 = vld [vmem:[#allocation17 + $0x40] ss:$16 sps:$4 sm:$0xff]  }
 0x800   : > { %v5307_v4 = vpop.f32.mrf.mxu0  ;;  %6319 = vmatpush1.bf16.msra.mxu0 %v9591_v3  ;;  %v9662_v3 = vld [vmem:[#allocation17 + $0x2ec] ss:$16 sps:$4 sm:$0xff]  }
 0x801   : > { %v9594_v4 = vld [vmem:[#allocation17 + $0x240] ss:$16 sps:$4 sm:$0xff]  }
 0x802   : > { %6360 = vmatpush1.bf16.msra.mxu1 %v9594_v4 }
 0x839   : > { %v5343_v6 = vpop.f32.mrf.mxu1 }
 0x83a   : > { %v5384_v12 = vpop.f32.mrf.mxu0  ;;  %v5344_v22 = vadd.f32 %v5343_v6, %v5303_v17  ;;  %v9599_v6 = vld [vmem:[#allocation17 + $0x24] ss:$16 sps:$4 sm:$0xff]  }
 0x83b   : > { %v5345_v8 = vpop.f32.mrf.mxu1  ;;  %v5385_v24 = vadd.f32 %v5384_v12, %v4619_v61  ;;  %v9602_v12 = vld [vmem:[#allocation17 + $0x224] ss:$16 sps:$4 sm:$0xff]   ;;  %6320 = vmatprep.subr.bf16.mxu0 %v9599_v6 }
 0x83c   : > { %v5386_v9 = vpop.f32.mrf.mxu0  ;;  %v5346_v21 = vadd.f32 %v5345_v8, %v5305_v16  ;;  %v11089_v34 = vadd.f32 %v9990_v33, %v5344_v22  ;;  %v9597_v8 = vld [vmem:[#allocation17 + $0x20] ss:$16 sps:$4 sm:$0xff]   ;;  %6361 = vmatprep.subr.bf16.mxu1 %v9602_v12  ;;  %v9617_v17 = vld [vmem:[#allocation17 + $0x1c4] ss:$16 sps:$4 sm:$0xff]  }
 0x83d   : > { %v5347_v14 = vpop.f32.mrf.mxu1  ;;  %v5387_v35 = vadd.f32 %v5386_v9, %v4623_v23  ;;  %v9600_v9 = vld [vmem:[#allocation17 + $0x220] ss:$16 sps:$4 sm:$0xff]   ;;  %6321 = vmatpush1.bf16.msra.mxu0 %v9597_v8  ;;  %v9620_v61 = vld [vmem:[#allocation17 + $0x3c4] ss:$16 sps:$4 sm:$0xff]   ;;  %v5436_v8 = vld [vmem:[#allocation14] sm:$0xf] }
 0x83e   : > { %v5388_v11 = vpop.f32.mrf.mxu0  ;;  %v11086_v31 = vadd.f32 %v9989_v25, %v5346_v21  ;;  %v9605_v14 = vld [vmem:[#allocation17 + $0x4] ss:$16 sps:$4 sm:$0xff]   ;;  %6362 = vmatpush1.bf16.msra.mxu1 %v9600_v9  ;;  %v9612_v16 = vld [vmem:[#allocation17 + $0x3e0] ss:$16 sps:$4 sm:$0xff]   ;;  %v5437_v9 = vld [vmem:[#allocation16] sm:$0xf] }
 0x83f   : > { %v5348_v60 = vpop.f32.mrf.mxu1  ;;  %v9608_v11 = vld [vmem:[#allocation17 + $0x204] ss:$16 sps:$4 sm:$0xff]   ;;  %6322 = vmatprep.subr.bf16.mxu0 %v9605_v14  ;;  %v9615_v21 = vld [vmem:[#allocation17 + $0x1c0] ss:$16 sps:$4 sm:$0xff]   ;;  %v5472_v14 = vrot.slane %v5436_v8, %v10806_v27 }
 0x840   : > { %v5389_v10 = vpop.f32.mrf.mxu0  ;;  %v5438_v19 = vadd.f32 %v11086_v31, %v11089_v34  ;;  %v9603_v60 = vld [vmem:[#allocation17] ss:$16 sps:$4 sm:$0xff]   ;;  %6363 = vmatprep.subr.bf16.mxu1 %v9608_v11  ;;  %v5480_v11 = vrot.slane %v5436_v8, %v10809_v28 }
 0x841   : > { %v9606_v10 = vld [vmem:[#allocation17 + $0x200] ss:$16 sps:$4 sm:$0xff]   ;;  %6323 = vmatpush1.bf16.msra.mxu0 %v9603_v60  ;;  %v5468_v60 = vrot.slane %v5436_v8, %v10812_v29 }
 0x842   : > { %6364 = vmatpush1.bf16.msra.mxu1 %v9606_v10  ;;  %6324 = vmatprep.subr.bf16.mxu0 %v9611_v18  ;;  %v9618_v22 = vld [vmem:[#allocation17 + $0x3c0] ss:$16 sps:$4 sm:$0xff]   ;;  %v5476_v10 = vrot.slane %v5436_v8, %v10815_v30  ;;  %v9702_v8 = vld [vmem:[#allocation17 + $0x208] ss:$16 sps:$4 sm:$0xff]  }
 0x843   : > { %6365 = vmatprep.subr.bf16.mxu1 %v9614_v13  ;;  %v5497_v13 = vrot.slane %v5437_v9, %v10806_v27 }
 0x845   : > { %6325 = vmatpush2.bf16.msra.mxu0 %v9609_v15  ;;  %v5505_v15 = vrot.slane %v5437_v9, %v10809_v28 }
 0x846   : > { %6366 = vmatpush2.bf16.msra.mxu1 %v9612_v16  ;;  %6326 = vmatprep.subr.bf16.mxu0 %v9617_v17  ;;  %v5493_v16 = vrot.slane %v5437_v9, %v10812_v29  ;;  %v5501_v17 = vrot.slane %v5437_v9, %v10815_v30  ;;  %v9707_v9 = vld [vmem:[#allocation17 + $0x1ec] ss:$16 sps:$4 sm:$0xff]  }
 0x847   : > { %6367 = vmatprep.subr.bf16.mxu1 %v9620_v61 }
 0x849   : > { %6327 = vmatpush2.bf16.msra.mxu0 %v9615_v21 }
 0x84a   : > { %6368 = vmatpush2.bf16.msra.mxu1 %v9618_v22 }
 0x879   : > { %v5425_v32 = vpop.f32.mrf.mxu1 }
 0x87a   : > { %v5426_v50 = vadd.f32 %v5425_v32, %v5385_v24 }
 0x87b   : > { %v5427_v36 = vpop.f32.mrf.mxu1 }
 0x87c   : > { %v11092_v37 = vadd.f32 %v9991_v52, %v5426_v50  ;;  %v5428_v38 = vadd.f32 %v5427_v36, %v5387_v35 }
 0x87d   : > { %v5429_v42 = vpop.f32.mrf.mxu1 }
 0x87e   : > { %v11097_v40 = vadd.f32 %v9992_v39, %v5428_v38  ;;  %v5439_v41 = vadd.f32 %v5438_v19, %v11092_v37 }
 0x87f   : > { %v5430_v43 = vpop.f32.mrf.mxu1 }
 0x880   : > { %v5440_v44 = vadd.f32 %v5439_v41, %v11097_v40  ;;  %v9623_v41 = vld [vmem:[#allocation17 + $0x1a4] ss:$16 sps:$4 sm:$0xff]  }
 0x881   : > { %v9626_v43 = vld [vmem:[#allocation17 + $0x3a4] ss:$16 sps:$4 sm:$0xff]   ;;  %6328 = vmatprep.subr.bf16.mxu0 %v9623_v41 }
 0x882   : > { %5441 = vadd.xlane.f32.xlu0 %v5440_v44  ;;  %v9621_v44 = vld [vmem:[#allocation17 + $0x1a0] ss:$16 sps:$4 sm:$0xff]   ;;  %6369 = vmatprep.subr.bf16.mxu1 %v9626_v43 }
 0x883   : > { %6329 = vmatpush2.bf16.msra.mxu0 %v9621_v44  ;;  %6370 = vmatpush2.bf16.msra.mxu1 %v9624_v45  ;;  %v9657_v44 = vld [vmem:[#allocation17 + $0xe8] ss:$16 sps:$4 sm:$0xff]  }
 0x884   : > { %6330 = vmatprep.subr.bf16.mxu0 %v9629_v53  ;;  %6371 = vmatprep.subr.bf16.mxu1 %v9632_v54  ;;  %v9660_v45 = vld [vmem:[#allocation17 + $0x2e8] ss:$16 sps:$4 sm:$0xff]   ;;  %v9674_v54 = vld [vmem:[#allocation17 + $0x2ac] ss:$16 sps:$4 sm:$0xff]  }
 0x885   : > { %v9666_v53 = vld [vmem:[#allocation17 + $0x2c8] ss:$16 sps:$4 sm:$0xff]  }
 0x887   : > { %6331 = vmatpush2.bf16.msra.mxu0 %v9627_v47  ;;  %6372 = vmatpush2.bf16.msra.mxu1 %v9630_v46  ;;  %v9671_v46 = vld [vmem:[#allocation17 + $0xac] ss:$16 sps:$4 sm:$0xff]  }
 0x888   : > { %6332 = vmatprep.subr.bf16.mxu0 %v9635_v55  ;;  %6373 = vmatprep.subr.bf16.mxu1 %v9638_v56  ;;  %v9669_v55 = vld [vmem:[#allocation17 + $0xa8] ss:$16 sps:$4 sm:$0xff]  }
 0x889   : > { %v9672_v56 = vld [vmem:[#allocation17 + $0x2a8] ss:$16 sps:$4 sm:$0xff]  }
 0x88b   : > { %6333 = vmatpush2.bf16.msra.mxu0 %v9633_v57  ;;  %6374 = vmatpush2.bf16.msra.mxu1 %v9636_v58  ;;  %v9677_v57 = vld [vmem:[#allocation17 + $0x8c] ss:$16 sps:$4 sm:$0xff]  }
 0x88c   : > { %6334 = vmatprep.subr.bf16.mxu0 %v9641_v49  ;;  %6375 = vmatprep.subr.bf16.mxu1 %v9644_v51  ;;  %v9680_v58 = vld [vmem:[#allocation17 + $0x28c] ss:$16 sps:$4 sm:$0xff]   ;;  %v9675_v49 = vld [vmem:[#allocation17 + $0x88] ss:$16 sps:$4 sm:$0xff]  }
 0x88d   : > { %v9678_v51 = vld [vmem:[#allocation17 + $0x288] ss:$16 sps:$4 sm:$0xff]  }
 0x88f   : > { %6335 = vmatpush2.bf16.msra.mxu0 %v9639_v26  ;;  %6376 = vmatpush2.bf16.msra.mxu1 %v9642_v62  ;;  %v9683_v26 = vld [vmem:[#allocation17 + $0x6c] ss:$16 sps:$4 sm:$0xff]  }
 0x890   : > { %6336 = vmatprep.subr.bf16.mxu0 %v9647_v59  ;;  %6377 = vmatprep.subr.bf16.mxu1 %v9650_v20  ;;  %v9686_v62 = vld [vmem:[#allocation17 + $0x26c] ss:$16 sps:$4 sm:$0xff]   ;;  %v9681_v59 = vld [vmem:[#allocation17 + $0x68] ss:$16 sps:$4 sm:$0xff]  }
 0x891   : > { %v9684_v20 = vld [vmem:[#allocation17 + $0x268] ss:$16 sps:$4 sm:$0xff]  }
 0x893   : > { %6337 = vmatpush2.bf16.msra.mxu0 %v9645_v63  ;;  %6378 = vmatpush2.bf16.msra.mxu1 %v9648_v5  ;;  %v9689_v63 = vld [vmem:[#allocation17 + $0x4c] ss:$16 sps:$4 sm:$0xff]  }
 0x894   : > { %6338 = vmatprep.subr.bf16.mxu0 %v9653_v0  ;;  %6379 = vmatprep.subr.bf16.mxu1 %v9656_v48  ;;  %v9692_v5 = vld [vmem:[#allocation17 + $0x24c] ss:$16 sps:$4 sm:$0xff]   ;;  %v9687_v0 = vld [vmem:[#allocation17 + $0x48] ss:$16 sps:$4 sm:$0xff]  }
 0x895   : > { %v9690_v48 = vld [vmem:[#allocation17 + $0x248] ss:$16 sps:$4 sm:$0xff]  }
 0x897   : > { %6339 = vmatpush2.bf16.msra.mxu0 %v9651_v1  ;;  %6380 = vmatpush2.bf16.msra.mxu1 %v9654_v7  ;;  %v9695_v1 = vld [vmem:[#allocation17 + $0x2c] ss:$16 sps:$4 sm:$0xff]  }
 0x898   : > { %6390 = vmatprep.subr.bf16.mxu0 %v9659_v2  ;;  %6431 = vmatprep.subr.bf16.mxu1 %v9662_v3  ;;  %v9698_v7 = vld [vmem:[#allocation17 + $0x22c] ss:$16 sps:$4 sm:$0xff]   ;;  %v9693_v2 = vld [vmem:[#allocation17 + $0x28] ss:$16 sps:$4 sm:$0xff]  }
 0x899   : > { %v9696_v3 = vld [vmem:[#allocation17 + $0x228] ss:$16 sps:$4 sm:$0xff]  }
 0x90b   : > { %v5442_v23 = vpop.xlane.xlu0 %5441 }
 0x90c   : > { %v5443_v24 = vmul.f32 0.001953125, %v5442_v23 }
 0x90e   : > { %v11102_v25 = vsub.f32 %v11089_v34, %v5443_v24  ;;  %v11105_v32 = vsub.f32 %v11086_v31, %v5443_v24  ;;  %v11108_v33 = vsub.f32 %v11092_v37, %v5443_v24  ;;  %v11111_v35 = vsub.f32 %v11097_v40, %v5443_v24 }
 0x910   : > { %v5448_v50 = vmul.f32 %v11102_v25, %v11102_v25  ;;  %v5449_v36 = vmul.f32 %v11105_v32, %v11105_v32  ;;  %v5450_v52 = vmul.f32 %v11108_v33, %v11108_v33  ;;  %v5451_v19 = vmul.f32 %v11111_v35, %v11111_v35 }
 0x912   : > { %v5452_v38 = vadd.f32 %v5449_v36, %v5448_v50 }
 0x914   : > { %v5453_v42 = vadd.f32 %v5452_v38, %v5450_v52 }
 0x916   : > { %v5454_v39 = vadd.f32 %v5453_v42, %v5451_v19 }
 0x918   : > { %5455 = vadd.xlane.f32.xlu1 %v5454_v39 }
 0x9a1   : > { %v5456_v4 = vpop.xlane.xlu1 %5455 }
 0x9a2   : > { %v5457_v6 = vmul.f32 0.001953125, %v5456_v4  ;;  %v9701_v4 = vld [vmem:[#allocation17 + $0xc] ss:$16 sps:$4 sm:$0xff]  }
 0x9a4   : > { %v5458_v12 = vadd.f32 1e-05, %v5457_v6  ;;  %v9704_v6 = vld [vmem:[#allocation17 + $0x20c] ss:$16 sps:$4 sm:$0xff]  }
 0x9a6   : > { %9979 = vrsqrt.f32 %v5458_v12  ;;  %v9699_v12 = vld [vmem:[#allocation17 + $0x8] ss:$16 sps:$4 sm:$0xff]  }
 0x9b3   : > { %v9980_v18 = vpop.eup %9979 }
 0x9b4   : > { %v5461_v61 = vmul.f32 %v9980_v18, %v11105_v32  ;;  %v5463_v21 = vmul.f32 %v9980_v18, %v11111_v35  ;;  %v5460_v22 = vmul.f32 %v9980_v18, %v11102_v25  ;;  %v5462_v23 = vmul.f32 %v9980_v18, %v11108_v33  ;;  %v9665_v25 = vld [vmem:[#allocation17 + $0xcc] ss:$16 sps:$4 sm:$0xff]   ;;  %v9663_v35 = vld [vmem:[#allocation17 + $0xc8] ss:$16 sps:$4 sm:$0xff]  }
 0x9b5   : > { %v9668_v33 = vld [vmem:[#allocation17 + $0x2cc] ss:$16 sps:$4 sm:$0xff]  }
 0x9b6   : > { %v5486_v24 = vmul.f32 %v5472_v14, %v5461_v61  ;;  %v5488_v50 = vmul.f32 %v5480_v11, %v5463_v21  ;;  %v5485_v36 = vmul.f32 %v5468_v60, %v5460_v22  ;;  %v5487_v52 = vmul.f32 %v5476_v10, %v5462_v23  ;;  %v9710_v14 = vld [vmem:[#allocation17 + $0x3ec] ss:$16 sps:$4 sm:$0xff]   ;;  %v9705_v11 = vld [vmem:[#allocation17 + $0x1e8] ss:$16 sps:$4 sm:$0xff]  }
 0x9b7   : > { %v9708_v60 = vld [vmem:[#allocation17 + $0x3e8] ss:$16 sps:$4 sm:$0xff]   ;;  %v9713_v10 = vld [vmem:[#allocation17 + $0x1cc] ss:$16 sps:$4 sm:$0xff]  }
 0x9b8   : > { %v5511_v38 = vadd.f32 %v5497_v13, %v5486_v24  ;;  %v5513_v19 = vadd.f32 %v5505_v15, %v5488_v50  ;;  %v5510_v42 = vadd.f32 %v5493_v16, %v5485_v36  ;;  %v5512_v39 = vadd.f32 %v5501_v17, %v5487_v52  ;;  %v9716_v18 = vld [vmem:[#allocation17 + $0x3cc] ss:$16 sps:$4 sm:$0xff]   ;;  %v9711_v13 = vld [vmem:[#allocation17 + $0x1c8] ss:$16 sps:$4 sm:$0xff]  }
 0x9b9   : > { %v9714_v15 = vld [vmem:[#allocation17 + $0x3c8] ss:$16 sps:$4 sm:$0xff]   ;;  %v9719_v16 = vld [vmem:[#allocation17 + $0x1ac] ss:$16 sps:$4 sm:$0xff]  }
 0x9ba   : > { %v5515_v41 = vpack.c.bf16 %v5511_v38, %v5511_v38  ;;  %v5517_v43 = vpack.c.bf16 %v5513_v19, %v5513_v19  ;;  %v11133_v47 = vpack.c.bf16 %v5510_v42, %v5510_v42  ;;  %v11135_v32 = vpack.c.bf16 %v5512_v39, %v5512_v39  ;;  %v9722_v17 = vld [vmem:[#allocation17 + $0x3ac] ss:$16 sps:$4 sm:$0xff]   ;;  %v9717_v61 = vld [vmem:[#allocation17 + $0x1a8] ss:$16 sps:$4 sm:$0xff]  }
 0x9bb   : > { %v9720_v21 = vld [vmem:[#allocation17 + $0x3a8] ss:$16 sps:$4 sm:$0xff]   ;;  %v9725_v22 = vld [vmem:[#allocation17 + $0x18c] ss:$16 sps:$4 sm:$0xff]  }
 0x9bc   : > { %6340 = vmatprep.mubr.bf16.mxu0 %v5515_v41  ;;  %6381 = vmatprep.mubr.bf16.mxu1 %v5517_v43  ;;  %v9728_v23 = vld [vmem:[#allocation17 + $0x38c] ss:$16 sps:$4 sm:$0xff]   ;;  %v9723_v24 = vld [vmem:[#allocation17 + $0x188] ss:$16 sps:$4 sm:$0xff]  }
 0x9bd   : > { %6341 = vmatmul.mubr.bf16.vlgmr.msra.gmra.mxu0 %v11133_v47  ;;  %6382 = vmatmul.mubr.bf16.vlgmr.msra.gmra.mxu1 %v11135_v32  ;;  %v9726_v50 = vld [vmem:[#allocation17 + $0x388] ss:$16 sps:$4 sm:$0xff]   ;;  %v9731_v36 = vld [vmem:[#allocation17 + $0x16c] ss:$16 sps:$4 sm:$0xff]  }
 0x9be   : > { %6391 = vmatpush1.bf16.msra.mxu0 %v9657_v44  ;;  %6432 = vmatpush1.bf16.msra.mxu1 %v9660_v45  ;;  %v9734_v52 = vld [vmem:[#allocation17 + $0x36c] ss:$16 sps:$4 sm:$0xff]   ;;  %v9729_v38 = vld [vmem:[#allocation17 + $0x168] ss:$16 sps:$4 sm:$0xff]  }
 0x9bf   : > { %6422 = vmatprep.mubr.bf16.mxu0 %v5515_v41  ;;  %6463 = vmatprep.mubr.bf16.mxu1 %v5517_v43  ;;  %v9732_v19 = vld [vmem:[#allocation17 + $0x368] ss:$16 sps:$4 sm:$0xff]   ;;  %v9737_v42 = vld [vmem:[#allocation17 + $0x14c] ss:$16 sps:$4 sm:$0xff]  }
 0x9c0   : > { %6392 = vmatprep.subr.bf16.mxu0 %v9665_v25  ;;  %6433 = vmatprep.subr.bf16.mxu1 %v9668_v33  ;;  %v9740_v39 = vld [vmem:[#allocation17 + $0x34c] ss:$16 sps:$4 sm:$0xff]   ;;  %v9735_v41 = vld [vmem:[#allocation17 + $0x148] ss:$16 sps:$4 sm:$0xff]  }
 0x9c1   : > { %v9738_v43 = vld [vmem:[#allocation17 + $0x348] ss:$16 sps:$4 sm:$0xff]   ;;  %v9743_v44 = vld [vmem:[#allocation17 + $0x12c] ss:$16 sps:$4 sm:$0xff]  }
 0x9c2   : > { %6393 = vmatpush1.bf16.msra.mxu0 %v9663_v35  ;;  %6434 = vmatpush1.bf16.msra.mxu1 %v9666_v53  ;;  %v9746_v45 = vld [vmem:[#allocation17 + $0x32c] ss:$16 sps:$4 sm:$0xff]   ;;  %v9741_v25 = vld [vmem:[#allocation17 + $0x128] ss:$16 sps:$4 sm:$0xff]  }
 0x9c3   : > { %6394 = vmatprep.subr.bf16.mxu0 %v9671_v46  ;;  %6435 = vmatprep.subr.bf16.mxu1 %v9674_v54  ;;  %v9744_v33 = vld [vmem:[#allocation17 + $0x328] ss:$16 sps:$4 sm:$0xff]   ;;  %v9749_v35 = vld [vmem:[#allocation17 + $0x10c] ss:$16 sps:$4 sm:$0xff]  }
 0x9c4   : > { %v9752_v53 = vld [vmem:[#allocation17 + $0x30c] ss:$16 sps:$4 sm:$0xff]   ;;  %v9747_v46 = vld [vmem:[#allocation17 + $0x108] ss:$16 sps:$4 sm:$0xff]  }
 0x9c5   : > { %v9750_v54 = vld [vmem:[#allocation17 + $0x308] ss:$16 sps:$4 sm:$0xff]  }
 0x9c6   : > { %6395 = vmatpush1.bf16.msra.mxu0 %v9669_v55  ;;  %6436 = vmatpush1.bf16.msra.mxu1 %v9672_v56  ;;  %v9755_v55 = vld [vmem:[#allocation20 + $0xe4] ss:$16 sps:$4 sm:$0xff]   ;;  %v9753_v56 = vld [vmem:[#allocation20 + $0xe0] ss:$16 sps:$4 sm:$0xff]  }
 0x9c7   : > { %6396 = vmatprep.subr.bf16.mxu0 %v9677_v57  ;;  %6437 = vmatprep.subr.bf16.mxu1 %v9680_v58  ;;  %v9758_v57 = vld [vmem:[#allocation20 + $0xc4] ss:$16 sps:$4 sm:$0xff]   ;;  %v9756_v58 = vld [vmem:[#allocation20 + $0xc0] ss:$16 sps:$4 sm:$0xff]  }
 0x9ca   : > { %6397 = vmatpush1.bf16.msra.mxu0 %v9675_v49  ;;  %6438 = vmatpush1.bf16.msra.mxu1 %v9678_v51  ;;  %v9761_v49 = vld [vmem:[#allocation20 + $0xa4] ss:$16 sps:$4 sm:$0xff]   ;;  %v9759_v51 = vld [vmem:[#allocation20 + $0xa0] ss:$16 sps:$4 sm:$0xff]  }
 0x9cb   : > { %6398 = vmatprep.subr.bf16.mxu0 %v9683_v26  ;;  %6439 = vmatprep.subr.bf16.mxu1 %v9686_v62  ;;  %v9764_v26 = vld [vmem:[#allocation20 + $0x84] ss:$16 sps:$4 sm:$0xff]   ;;  %v9762_v62 = vld [vmem:[#allocation20 + $0x80] ss:$16 sps:$4 sm:$0xff]  }
 0x9ce   : > { %6399 = vmatpush1.bf16.msra.mxu0 %v9681_v59  ;;  %6440 = vmatpush1.bf16.msra.mxu1 %v9684_v20  ;;  %v9767_v59 = vld [vmem:[#allocation20 + $0x64] ss:$16 sps:$4 sm:$0xff]   ;;  %v9765_v20 = vld [vmem:[#allocation20 + $0x60] ss:$16 sps:$4 sm:$0xff]  }
 0x9cf   : > { %6400 = vmatprep.subr.bf16.mxu0 %v9689_v63  ;;  %6441 = vmatprep.subr.bf16.mxu1 %v9692_v5  ;;  %v9770_v63 = vld [vmem:[#allocation20 + $0x44] ss:$16 sps:$4 sm:$0xff]   ;;  %v9771_v5 = vld [vmem:[#allocation20 + $0x20] ss:$16 sps:$4 sm:$0xff]  }
 0x9d2   : > { %6401 = vmatpush1.bf16.msra.mxu0 %v9687_v0  ;;  %6442 = vmatpush1.bf16.msra.mxu1 %v9690_v48  ;;  %v9776_v0 = vld [vmem:[#allocation20 + $0x4] ss:$16 sps:$4 sm:$0xff]   ;;  %v9774_v48 = vld [vmem:[#allocation20] ss:$16 sps:$4 sm:$0xff]  }
 0x9d3   : > { %6402 = vmatprep.subr.bf16.mxu0 %v9695_v1  ;;  %6443 = vmatprep.subr.bf16.mxu1 %v9698_v7  ;;  %v9801_v1 = vld [vmem:[#allocation20 + $0x2e0] ss:$16 sps:$4 sm:$0xff]   ;;  %v9803_v7 = vld [vmem:[#allocation20 + $0x2e4] ss:$16 sps:$4 sm:$0xff]  }
 0x9d6   : > { %6403 = vmatpush1.bf16.msra.mxu0 %v9693_v2  ;;  %6444 = vmatpush1.bf16.msra.mxu1 %v9696_v3  ;;  %v9779_v2 = vld [vmem:[#allocation20 + $0x1e4] ss:$16 sps:$4 sm:$0xff]   ;;  %v9777_v3 = vld [vmem:[#allocation20 + $0x1e0] ss:$16 sps:$4 sm:$0xff]  }
 0x9d7   : > { %6404 = vmatprep.subr.bf16.mxu0 %v9701_v4  ;;  %6445 = vmatprep.subr.bf16.mxu1 %v9704_v6  ;;  %v9782_v4 = vld [vmem:[#allocation20 + $0x1c4] ss:$16 sps:$4 sm:$0xff]   ;;  %v9807_v6 = vld [vmem:[#allocation20 + $0x2c0] ss:$16 sps:$4 sm:$0xff]  }
 0x9da   : > { %6405 = vmatpush1.bf16.msra.mxu0 %v9699_v12  ;;  %6446 = vmatpush1.bf16.msra.mxu1 %v9702_v8  ;;  %v9809_v12 = vld [vmem:[#allocation20 + $0x2c4] ss:$16 sps:$4 sm:$0xff]   ;;  %v9780_v8 = vld [vmem:[#allocation20 + $0x1c0] ss:$16 sps:$4 sm:$0xff]  }
 0x9db   : > { %6406 = vmatprep.subr.bf16.mxu0 %v9707_v9  ;;  %6447 = vmatprep.subr.bf16.mxu1 %v9710_v14  ;;  %v9785_v9 = vld [vmem:[#allocation20 + $0x1a4] ss:$16 sps:$4 sm:$0xff]   ;;  %v9813_v14 = vld [vmem:[#allocation20 + $0x2a0] ss:$16 sps:$4 sm:$0xff]  }
 0x9de   : > { %6407 = vmatpush2.bf16.msra.mxu0 %v9705_v11  ;;  %6448 = vmatpush2.bf16.msra.mxu1 %v9708_v60  ;;  %v9815_v11 = vld [vmem:[#allocation20 + $0x2a4] ss:$16 sps:$4 sm:$0xff]   ;;  %v9783_v60 = vld [vmem:[#allocation20 + $0x1a0] ss:$16 sps:$4 sm:$0xff]  }
 0x9df   : > { %6408 = vmatprep.subr.bf16.mxu0 %v9713_v10  ;;  %6449 = vmatprep.subr.bf16.mxu1 %v9716_v18  ;;  %v9788_v10 = vld [vmem:[#allocation20 + $0x184] ss:$16 sps:$4 sm:$0xff]   ;;  %v9819_v18 = vld [vmem:[#allocation20 + $0x280] ss:$16 sps:$4 sm:$0xff]  }
 0x9e2   : > { %6409 = vmatpush2.bf16.msra.mxu0 %v9711_v13  ;;  %6450 = vmatpush2.bf16.msra.mxu1 %v9714_v15  ;;  %v9821_v13 = vld [vmem:[#allocation20 + $0x284] ss:$16 sps:$4 sm:$0xff]   ;;  %v9786_v15 = vld [vmem:[#allocation20 + $0x180] ss:$16 sps:$4 sm:$0xff]  }
 0x9e3   : > { %6410 = vmatprep.subr.bf16.mxu0 %v9719_v16  ;;  %6451 = vmatprep.subr.bf16.mxu1 %v9722_v17  ;;  %v9791_v16 = vld [vmem:[#allocation20 + $0x164] ss:$16 sps:$4 sm:$0xff]   ;;  %v9825_v17 = vld [vmem:[#allocation20 + $0x260] ss:$16 sps:$4 sm:$0xff]  }
 0x9e6   : > { %6411 = vmatpush2.bf16.msra.mxu0 %v9717_v61  ;;  %6452 = vmatpush2.bf16.msra.mxu1 %v9720_v21  ;;  %v9827_v61 = vld [vmem:[#allocation20 + $0x264] ss:$16 sps:$4 sm:$0xff]   ;;  %v9789_v21 = vld [vmem:[#allocation20 + $0x160] ss:$16 sps:$4 sm:$0xff]  }
 0x9e7   : > { %6412 = vmatprep.subr.bf16.mxu0 %v9725_v22  ;;  %6453 = vmatprep.subr.bf16.mxu1 %v9728_v23  ;;  %v9794_v22 = vld [vmem:[#allocation20 + $0x144] ss:$16 sps:$4 sm:$0xff]   ;;  %v9831_v23 = vld [vmem:[#allocation20 + $0x240] ss:$16 sps:$4 sm:$0xff]  }
 0x9ea   : > { %6413 = vmatpush2.bf16.msra.mxu0 %v9723_v24  ;;  %6454 = vmatpush2.bf16.msra.mxu1 %v9726_v50  ;;  %v9833_v24 = vld [vmem:[#allocation20 + $0x244] ss:$16 sps:$4 sm:$0xff]   ;;  %v9792_v50 = vld [vmem:[#allocation20 + $0x140] ss:$16 sps:$4 sm:$0xff]  }
 0x9eb   : > { %6414 = vmatprep.subr.bf16.mxu0 %v9731_v36  ;;  %6455 = vmatprep.subr.bf16.mxu1 %v9734_v52  ;;  %v9797_v36 = vld [vmem:[#allocation20 + $0x124] ss:$16 sps:$4 sm:$0xff]   ;;  %v9837_v52 = vld [vmem:[#allocation20 + $0x220] ss:$16 sps:$4 sm:$0xff]  }
 0x9ee   : > { %6415 = vmatpush2.bf16.msra.mxu0 %v9729_v38  ;;  %6456 = vmatpush2.bf16.msra.mxu1 %v9732_v19  ;;  %v9839_v38 = vld [vmem:[#allocation20 + $0x224] ss:$16 sps:$4 sm:$0xff]   ;;  %v9795_v19 = vld [vmem:[#allocation20 + $0x120] ss:$16 sps:$4 sm:$0xff]  }
 0x9ef   : > { %6416 = vmatprep.subr.bf16.mxu0 %v9737_v42  ;;  %6457 = vmatprep.subr.bf16.mxu1 %v9740_v39  ;;  %v9800_v42 = vld [vmem:[#allocation20 + $0x104] ss:$16 sps:$4 sm:$0xff]   ;;  %v9843_v39 = vld [vmem:[#allocation20 + $0x200] ss:$16 sps:$4 sm:$0xff]  }
 0x9f2   : > { %6417 = vmatpush2.bf16.msra.mxu0 %v9735_v41  ;;  %6458 = vmatpush2.bf16.msra.mxu1 %v9738_v43  ;;  %v9845_v41 = vld [vmem:[#allocation20 + $0x204] ss:$16 sps:$4 sm:$0xff]   ;;  %v9798_v43 = vld [vmem:[#allocation20 + $0x100] ss:$16 sps:$4 sm:$0xff]  }
 0x9f3   : > { %6418 = vmatprep.subr.bf16.mxu0 %v9743_v44  ;;  %6459 = vmatprep.subr.bf16.mxu1 %v9746_v45  ;;  %v9806_v44 = vld [vmem:[#allocation20 + $0xec] ss:$16 sps:$4 sm:$0xff]   ;;  %v9849_v45 = vld [vmem:[#allocation20 + $0x3e0] ss:$16 sps:$4 sm:$0xff]  }
 0x9f6   : > { %6419 = vmatpush2.bf16.msra.mxu0 %v9741_v25  ;;  %6460 = vmatpush2.bf16.msra.mxu1 %v9744_v33  ;;  %v9851_v25 = vld [vmem:[#allocation20 + $0x3e4] ss:$16 sps:$4 sm:$0xff]  }
 0x9f7   : > { %6420 = vmatprep.subr.bf16.mxu0 %v9749_v35  ;;  %6461 = vmatprep.subr.bf16.mxu1 %v9752_v53  ;;  %v9857_v33 = vld [vmem:[#allocation20 + $0x3c4] ss:$16 sps:$4 sm:$0xff]   ;;  %v9855_v35 = vld [vmem:[#allocation20 + $0x3c0] ss:$16 sps:$4 sm:$0xff]  }
 0x9f8   : > { %v9863_v53 = vld [vmem:[#allocation20 + $0x3a4] ss:$16 sps:$4 sm:$0xff]  }
 0x9fa   : > { %6421 = vmatpush2.bf16.msra.mxu0 %v9747_v46  ;;  %6462 = vmatpush2.bf16.msra.mxu1 %v9750_v54  ;;  %v9861_v46 = vld [vmem:[#allocation20 + $0x3a0] ss:$16 sps:$4 sm:$0xff]   ;;  %v9869_v54 = vld [vmem:[#allocation20 + $0x384] ss:$16 sps:$4 sm:$0xff]  }
 0x9fb   : > { %7286 = vmatprep.subr.bf16.mxu0 %v9755_v55  ;;  %7327 = vmatprep.subr.bf16.mxu1 %v9803_v7  ;;  %v9867_v55 = vld [vmem:[#allocation20 + $0x380] ss:$16 sps:$4 sm:$0xff]  }
 0x9fd   : > { %6423 = vmatmul.mubr.bf16.vlgmr.msra.gmra.mxu0 %v11133_v47  ;;  %6464 = vmatmul.mubr.bf16.vlgmr.msra.gmra.mxu1 %v11135_v32  ;;  %v9768_v47 = vld [vmem:[#allocation20 + $0x40] ss:$16 sps:$4 sm:$0xff]   ;;  %v9773_v32 = vld [vmem:[#allocation20 + $0x24] ss:$16 sps:$4 sm:$0xff]  }
 0x9fe   : > { %7287 = vmatpush1.bf16.msra.mxu0 %v9753_v56  ;;  %7328 = vmatpush1.bf16.msra.mxu1 %v9801_v1  ;;  %v9875_v56 = vld [vmem:[#allocation20 + $0x364] ss:$16 sps:$4 sm:$0xff]  }
 0x9ff   : > { %7288 = vmatprep.subr.bf16.mxu0 %v9758_v57  ;;  %7329 = vmatprep.subr.bf16.mxu1 %v9809_v12  ;;  %v9873_v57 = vld [vmem:[#allocation20 + $0x360] ss:$16 sps:$4 sm:$0xff]  }
 0xa02   : > { %7289 = vmatpush1.bf16.msra.mxu0 %v9756_v58  ;;  %7330 = vmatpush1.bf16.msra.mxu1 %v9807_v6  ;;  %v9881_v58 = vld [vmem:[#allocation20 + $0x344] ss:$16 sps:$4 sm:$0xff]  }
 0xa03   : > { %7290 = vmatprep.subr.bf16.mxu0 %v9761_v49  ;;  %7331 = vmatprep.subr.bf16.mxu1 %v9815_v11  ;;  %v9879_v49 = vld [vmem:[#allocation20 + $0x340] ss:$16 sps:$4 sm:$0xff]  }
 0xa06   : > { %7291 = vmatpush1.bf16.msra.mxu0 %v9759_v51  ;;  %7332 = vmatpush1.bf16.msra.mxu1 %v9813_v14  ;;  %v9887_v51 = vld [vmem:[#allocation20 + $0x324] ss:$16 sps:$4 sm:$0xff]  }
 0xa07   : > { %7292 = vmatprep.subr.bf16.mxu0 %v9764_v26  ;;  %7333 = vmatprep.subr.bf16.mxu1 %v9821_v13  ;;  %v9885_v26 = vld [vmem:[#allocation20 + $0x320] ss:$16 sps:$4 sm:$0xff]  }
 0xa0a   : > { %7293 = vmatpush1.bf16.msra.mxu0 %v9762_v62  ;;  %7334 = vmatpush1.bf16.msra.mxu1 %v9819_v18  ;;  %v9893_v62 = vld [vmem:[#allocation20 + $0x304] ss:$16 sps:$4 sm:$0xff]  }
 0xa0b   : > { %7294 = vmatprep.subr.bf16.mxu0 %v9767_v59  ;;  %7335 = vmatprep.subr.bf16.mxu1 %v9827_v61  ;;  %v9891_v59 = vld [vmem:[#allocation20 + $0x300] ss:$16 sps:$4 sm:$0xff]  }
 0xa0e   : > { %7295 = vmatpush1.bf16.msra.mxu0 %v9765_v20  ;;  %7336 = vmatpush1.bf16.msra.mxu1 %v9825_v17  ;;  %v9899_v20 = vld [vmem:[#allocation20 + $0x2ec] ss:$16 sps:$4 sm:$0xff]  }
 0xa0f   : > { %7296 = vmatprep.subr.bf16.mxu0 %v9770_v63  ;;  %7337 = vmatprep.subr.bf16.mxu1 %v9833_v24  ;;  %v11141_v63 = vld [vmem:[#allocation19] sm:$0xf] }
 0xa10   : > { %v9812_v24 = vld [vmem:[#allocation20 + $0xcc] ss:$16 sps:$4 sm:$0xff]  }
 0xa12   : > { %7297 = vmatpush1.bf16.msra.mxu0 %v9768_v47  ;;  %7338 = vmatpush1.bf16.msra.mxu1 %v9831_v23  ;;  %v5651_v47 = vrot.slane %v11141_v63, %v10812_v29 }
 0xa13   : > { %7298 = vmatprep.subr.bf16.mxu0 %v9773_v32  ;;  %7339 = vmatprep.subr.bf16.mxu1 %v9839_v38  ;;  %v5655_v32 = vrot.slane %v11141_v63, %v10806_v27  ;;  %v9824_v38 = vld [vmem:[#allocation20 + $0x8c] ss:$16 sps:$4 sm:$0xff]  }
 0xa16   : > { %7299 = vmatpush1.bf16.msra.mxu0 %v9771_v5  ;;  %7340 = vmatpush1.bf16.msra.mxu1 %v9837_v52  ;;  %v9816_v52 = vld [vmem:[#allocation20 + $0xa8] ss:$16 sps:$4 sm:$0xff]  }
 0xa17   : > { %7300 = vmatprep.subr.bf16.mxu0 %v9776_v0  ;;  %7341 = vmatprep.subr.bf16.mxu1 %v9845_v41  ;;  %v9836_v41 = vld [vmem:[#allocation20 + $0x4c] ss:$16 sps:$4 sm:$0xff]  }
 0xa1a   : > { %7301 = vmatpush1.bf16.msra.mxu0 %v9774_v48  ;;  %7342 = vmatpush1.bf16.msra.mxu1 %v9843_v39  ;;  %v9828_v39 = vld [vmem:[#allocation20 + $0x68] ss:$16 sps:$4 sm:$0xff]  }
 0xa1b   : > { %7302 = vmatprep.subr.bf16.mxu0 %v9779_v2  ;;  %7343 = vmatprep.subr.bf16.mxu1 %v9851_v25  ;;  %v9848_v25 = vld [vmem:[#allocation20 + $0xc] ss:$16 sps:$4 sm:$0xff]  }
 0xa1e   : > { %7303 = vmatpush2.bf16.msra.mxu0 %v9777_v3  ;;  %7344 = vmatpush2.bf16.msra.mxu1 %v9849_v45  ;;  %v9840_v45 = vld [vmem:[#allocation20 + $0x28] ss:$16 sps:$4 sm:$0xff]  }
 0xa1f   : > { %7304 = vmatprep.subr.bf16.mxu0 %v9782_v4  ;;  %7345 = vmatprep.subr.bf16.mxu1 %v9857_v33  ;;  %v9846_v33 = vld [vmem:[#allocation20 + $0x8] ss:$16 sps:$4 sm:$0xff]  }
 0xa22   : > { %7305 = vmatpush2.bf16.msra.mxu0 %v9780_v8  ;;  %7346 = vmatpush2.bf16.msra.mxu1 %v9855_v35  ;;  %v9854_v35 = vld [vmem:[#allocation20 + $0x1ec] ss:$16 sps:$4 sm:$0xff]  }
 0xa23   : > { %7306 = vmatprep.subr.bf16.mxu0 %v9785_v9  ;;  %7347 = vmatprep.subr.bf16.mxu1 %v9863_v53  ;;  %v9852_v53 = vld [vmem:[#allocation20 + $0x1e8] ss:$16 sps:$4 sm:$0xff]  }
 0xa26   : > { %7307 = vmatpush2.bf16.msra.mxu0 %v9783_v60  ;;  %7348 = vmatpush2.bf16.msra.mxu1 %v9861_v46  ;;  %v9860_v46 = vld [vmem:[#allocation20 + $0x1cc] ss:$16 sps:$4 sm:$0xff]  }
 0xa27   : > { %7308 = vmatprep.subr.bf16.mxu0 %v9788_v10  ;;  %7349 = vmatprep.subr.bf16.mxu1 %v9869_v54  ;;  %v5659_v54 = vrot.slane %v11141_v63, %v10815_v30 }
 0xa2a   : > { %7309 = vmatpush2.bf16.msra.mxu0 %v9786_v15  ;;  %7350 = vmatpush2.bf16.msra.mxu1 %v9867_v55  ;;  %v5663_v55 = vrot.slane %v11141_v63, %v10809_v28 }
 0xa2b   : > { %7310 = vmatprep.subr.bf16.mxu0 %v9791_v16  ;;  %7351 = vmatprep.subr.bf16.mxu1 %v9875_v56  ;;  %v9858_v56 = vld [vmem:[#allocation20 + $0x1c8] ss:$16 sps:$4 sm:$0xff]  }
 0xa2e   : > { %7311 = vmatpush2.bf16.msra.mxu0 %v9789_v21  ;;  %7352 = vmatpush2.bf16.msra.mxu1 %v9873_v57 }
 0xa2f   : > { %7312 = vmatprep.subr.bf16.mxu0 %v9794_v22  ;;  %7353 = vmatprep.subr.bf16.mxu1 %v9881_v58  ;;  %v9804_v22 = vld [vmem:[#allocation20 + $0xe8] ss:$16 sps:$4 sm:$0xff]  }
 0xa32   : > { %7313 = vmatpush2.bf16.msra.mxu0 %v9792_v50  ;;  %7354 = vmatpush2.bf16.msra.mxu1 %v9879_v49  ;;  %v9810_v50 = vld [vmem:[#allocation20 + $0xc8] ss:$16 sps:$4 sm:$0xff]   ;;  %v9866_v49 = vld [vmem:[#allocation20 + $0x1ac] ss:$16 sps:$4 sm:$0xff]  }
 0xa33   : > { %7314 = vmatprep.subr.bf16.mxu0 %v9797_v36  ;;  %7355 = vmatprep.subr.bf16.mxu1 %v9887_v51  ;;  %v9818_v36 = vld [vmem:[#allocation20 + $0xac] ss:$16 sps:$4 sm:$0xff]  }
 0xa36   : > { %7315 = vmatpush2.bf16.msra.mxu0 %v9795_v19  ;;  %7356 = vmatpush2.bf16.msra.mxu1 %v9885_v26  ;;  %v9822_v19 = vld [vmem:[#allocation20 + $0x88] ss:$16 sps:$4 sm:$0xff]  }
 0xa37   : > { %7316 = vmatprep.subr.bf16.mxu0 %v9800_v42  ;;  %7357 = vmatprep.subr.bf16.mxu1 %v9893_v62  ;;  %v9830_v42 = vld [vmem:[#allocation20 + $0x6c] ss:$16 sps:$4 sm:$0xff]  }
 0xa3a   : > { %7317 = vmatpush2.bf16.msra.mxu0 %v9798_v43  ;;  %7358 = vmatpush2.bf16.msra.mxu1 %v9891_v59  ;;  %v9834_v43 = vld [vmem:[#allocation20 + $0x48] ss:$16 sps:$4 sm:$0xff]  }
 0xa3b   : > { %7368 = vmatprep.subr.bf16.mxu0 %v9806_v44  ;;  %7409 = vmatprep.subr.bf16.mxu1 %v9899_v20  ;;  %v9842_v44 = vld [vmem:[#allocation20 + $0x2c] ss:$16 sps:$4 sm:$0xff]  }
 0xa7d   : > { %v6342_v5 = vpop.f32.mrf.mxu0  ;;  %v6383_v0 = vpop.f32.mrf.mxu1 }
 0xa7e   : > { %v6343_v48 = vadd.f32 %v6342_v5, %v5651_v47  ;;  %v9864_v47 = vld [vmem:[#allocation20 + $0x1a8] ss:$16 sps:$4 sm:$0xff]  }
 0xa7f   : > { %v6344_v1 = vpop.f32.mrf.mxu0  ;;  %v6385_v7 = vpop.f32.mrf.mxu1 }
 0xa80   : > { %v6384_v2 = vadd.f32 %v6383_v0, %v6343_v48  ;;  %v6345_v3 = vadd.f32 %v6344_v1, %v5655_v32  ;;  %v9872_v0 = vld [vmem:[#allocation20 + $0x18c] ss:$16 sps:$4 sm:$0xff]  }
 0xa81   : > { %v6346_v4 = vpop.f32.mrf.mxu0  ;;  %v6387_v6 = vpop.f32.mrf.mxu1 }
 0xa82   : > { %v6476_v12 = vmul.f32 0.70710677, %v6384_v2  ;;  %v6386_v8 = vadd.f32 %v6385_v7, %v6345_v3  ;;  %v6472_v13 = vmul.f32 0.5, %v6384_v2  ;;  %v9870_v3 = vld [vmem:[#allocation20 + $0x188] ss:$16 sps:$4 sm:$0xff]  }
 0xa83   : > { %v6347_v9 = vpop.f32.mrf.mxu0  ;;  %v6388_v14 = vpop.f32.mrf.mxu1  ;;  %v9878_v4 = vld [vmem:[#allocation20 + $0x16c] ss:$16 sps:$4 sm:$0xff]   ;;  %v9876_v6 = vld [vmem:[#allocation20 + $0x168] ss:$16 sps:$4 sm:$0xff]  }
 0xa84   : > { %9981 = verf.f32 %v6476_v12  ;;  %v6477_v11 = vmul.f32 0.70710677, %v6386_v8  ;;  %v6473_v15 = vmul.f32 0.5, %v6386_v8  ;;  %v9884_v12 = vld [vmem:[#allocation20 + $0x14c] ss:$16 sps:$4 sm:$0xff]  }
 0xa85   : > { %v9882_v8 = vld [vmem:[#allocation20 + $0x148] ss:$16 sps:$4 sm:$0xff]   ;;  %v9890_v9 = vld [vmem:[#allocation20 + $0x12c] ss:$16 sps:$4 sm:$0xff]  }
 0xa86   : > { %9983 = verf.f32 %v6477_v11  ;;  %v9888_v14 = vld [vmem:[#allocation20 + $0x128] ss:$16 sps:$4 sm:$0xff]  }
 0xa91   : > { %v9982_v60 = vpop.eup %9981 }
 0xa92   : > { %v6484_v10 = vadd.f32 1.0, %v9982_v60  ;;  %v9896_v60 = vld [vmem:[#allocation20 + $0x10c] ss:$16 sps:$4 sm:$0xff]  }
 0xa93   : > { %v9984_v18 = vpop.eup %9983 }
 0xa94   : > { %v6485_v16 = vadd.f32 1.0, %v9984_v18  ;;  %v6488_v17 = vmul.f32 %v6484_v10, %v6472_v13 }
 0xa96   : > { %v6489_v61 = vmul.f32 %v6485_v16, %v6473_v15  ;;  %v11147_v23 = vpack.c.bf16 %v6488_v17, %v6488_v17  ;;  %v9894_v16 = vld [vmem:[#allocation20 + $0x108] ss:$16 sps:$4 sm:$0xff]  }
 0xa98   : > { %v6493_v21 = vpack.c.bf16 %v6489_v61, %v6489_v61 }
 0xa9a   : > { %7318 = vmatprep.mubr.bf16.mxu0 %v6493_v21 }
 0xa9b   : > { %7319 = vmatmul.mubr.bf16.vlgmr.msra.gmra.mxu0 %v11147_v23 }
 0xa9c   : > { %7369 = vmatpush1.bf16.msra.mxu0 %v9804_v22  ;;  %7400 = vmatprep.mubr.bf16.mxu0 %v6493_v21 }
 0xa9d   : > { %7370 = vmatprep.subr.bf16.mxu0 %v9812_v24  ;;  %v9897_v24 = vld [vmem:[#allocation20 + $0x2e8] ss:$16 sps:$4 sm:$0xff]  }
 0xaa0   : > { %7371 = vmatpush1.bf16.msra.mxu0 %v9810_v50 }
 0xaa1   : > { %7372 = vmatprep.subr.bf16.mxu0 %v9818_v36  ;;  %v9902_v36 = vld [vmem:[#allocation20 + $0x2cc] ss:$16 sps:$4 sm:$0xff]  }
 0xaa4   : > { %7373 = vmatpush1.bf16.msra.mxu0 %v9816_v52  ;;  %v9900_v52 = vld [vmem:[#allocation20 + $0x2c8] ss:$16 sps:$4 sm:$0xff]  }
 0xaa5   : > { %7374 = vmatprep.subr.bf16.mxu0 %v9824_v38  ;;  %v9905_v38 = vld [vmem:[#allocation20 + $0x2ac] ss:$16 sps:$4 sm:$0xff]  }
 0xaa8   : > { %7375 = vmatpush1.bf16.msra.mxu0 %v9822_v19  ;;  %v9903_v19 = vld [vmem:[#allocation20 + $0x2a8] ss:$16 sps:$4 sm:$0xff]  }
 0xaa9   : > { %7376 = vmatprep.subr.bf16.mxu0 %v9830_v42  ;;  %v9908_v42 = vld [vmem:[#allocation20 + $0x28c] ss:$16 sps:$4 sm:$0xff]  }
 0xaac   : > { %7377 = vmatpush1.bf16.msra.mxu0 %v9828_v39  ;;  %v9906_v39 = vld [vmem:[#allocation20 + $0x288] ss:$16 sps:$4 sm:$0xff]  }
 0xaad   : > { %7378 = vmatprep.subr.bf16.mxu0 %v9836_v41  ;;  %v9911_v41 = vld [vmem:[#allocation20 + $0x26c] ss:$16 sps:$4 sm:$0xff]  }
 0xab0   : > { %7379 = vmatpush1.bf16.msra.mxu0 %v9834_v43  ;;  %v9909_v43 = vld [vmem:[#allocation20 + $0x268] ss:$16 sps:$4 sm:$0xff]  }
 0xab1   : > { %7380 = vmatprep.subr.bf16.mxu0 %v9842_v44  ;;  %v9914_v44 = vld [vmem:[#allocation20 + $0x24c] ss:$16 sps:$4 sm:$0xff]  }
 0xab4   : > { %7381 = vmatpush1.bf16.msra.mxu0 %v9840_v45  ;;  %v9912_v45 = vld [vmem:[#allocation20 + $0x248] ss:$16 sps:$4 sm:$0xff]  }
 0xab5   : > { %7382 = vmatprep.subr.bf16.mxu0 %v9848_v25  ;;  %v9915_v25 = vld [vmem:[#allocation20 + $0x228] ss:$16 sps:$4 sm:$0xff]  }
 0xab8   : > { %7383 = vmatpush1.bf16.msra.mxu0 %v9846_v33  ;;  %v9920_v33 = vld [vmem:[#allocation20 + $0x20c] ss:$16 sps:$4 sm:$0xff]  }
 0xab9   : > { %7384 = vmatprep.subr.bf16.mxu0 %v9854_v35  ;;  %v9918_v35 = vld [vmem:[#allocation20 + $0x208] ss:$16 sps:$4 sm:$0xff]  }
 0xabc   : > { %7385 = vmatpush2.bf16.msra.mxu0 %v9852_v53  ;;  %v9923_v53 = vld [vmem:[#allocation20 + $0x3ec] ss:$16 sps:$4 sm:$0xff]  }
 0xabd   : > { %v6424_v57 = vpop.f32.mrf.mxu0  ;;  %v6465_v58 = vpop.f32.mrf.mxu1  ;;  %7386 = vmatprep.subr.bf16.mxu0 %v9860_v46  ;;  %v9921_v46 = vld [vmem:[#allocation20 + $0x3e8] ss:$16 sps:$4 sm:$0xff]  }
 0xabe   : > { %v6425_v51 = vadd.f32 %v6424_v57, %v5659_v54  ;;  %v9926_v54 = vld [vmem:[#allocation20 + $0x3cc] ss:$16 sps:$4 sm:$0xff]   ;;  %v9927_v57 = vld [vmem:[#allocation20 + $0x3a8] ss:$16 sps:$4 sm:$0xff]  }
 0xabf   : > { %v6426_v26 = vpop.f32.mrf.mxu0  ;;  %v6467_v62 = vpop.f32.mrf.mxu1 }
 0xac0   : > { %v6466_v59 = vadd.f32 %v6465_v58, %v6425_v51  ;;  %v6427_v20 = vadd.f32 %v6426_v26, %v5663_v55  ;;  %7387 = vmatpush2.bf16.msra.mxu0 %v9858_v56  ;;  %v9924_v55 = vld [vmem:[#allocation20 + $0x3c8] ss:$16 sps:$4 sm:$0xff]   ;;  %v9929_v56 = vld [vmem:[#allocation20 + $0x3ac] ss:$16 sps:$4 sm:$0xff]  }
 0xac1   : > { %v6428_v32 = vpop.f32.mrf.mxu0  ;;  %v6469_v5 = vpop.f32.mrf.mxu1  ;;  %7388 = vmatprep.subr.bf16.mxu0 %v9866_v49  ;;  %v9932_v58 = vld [vmem:[#allocation20 + $0x38c] ss:$16 sps:$4 sm:$0xff]   ;;  %v9930_v49 = vld [vmem:[#allocation20 + $0x388] ss:$16 sps:$4 sm:$0xff]  }
 0xac2   : > { %v6478_v48 = vmul.f32 0.70710677, %v6466_v59  ;;  %v6468_v1 = vadd.f32 %v6467_v62, %v6427_v20  ;;  %v6474_v13 = vmul.f32 0.5, %v6466_v59  ;;  %v9935_v51 = vld [vmem:[#allocation20 + $0x36c] ss:$16 sps:$4 sm:$0xff]  }
 0xac3   : > { %v6429_v7 = vpop.f32.mrf.mxu0  ;;  %v6470_v63 = vpop.f32.mrf.mxu1  ;;  %v9933_v26 = vld [vmem:[#allocation20 + $0x368] ss:$16 sps:$4 sm:$0xff]   ;;  %v9938_v62 = vld [vmem:[#allocation20 + $0x34c] ss:$16 sps:$4 sm:$0xff]  }
 0xac4   : > { %9985 = verf.f32 %v6478_v48  ;;  %v6479_v2 = vmul.f32 0.70710677, %v6468_v1  ;;  %7389 = vmatpush2.bf16.msra.mxu0 %v9864_v47  ;;  %v6475_v15 = vmul.f32 0.5, %v6468_v1  ;;  %v9936_v59 = vld [vmem:[#allocation20 + $0x348] ss:$16 sps:$4 sm:$0xff]  }
 0xac5   : > { %7390 = vmatprep.subr.bf16.mxu0 %v9872_v0  ;;  %v9941_v20 = vld [vmem:[#allocation20 + $0x32c] ss:$16 sps:$4 sm:$0xff]   ;;  %v9939_v47 = vld [vmem:[#allocation20 + $0x328] ss:$16 sps:$4 sm:$0xff]   ;;  %v6624_v63 = vld [vmem:[#allocation22] sm:$0xf] }
 0xac6   : > { %9987 = verf.f32 %v6479_v2  ;;  %v9944_v32 = vld [vmem:[#allocation20 + $0x30c] ss:$16 sps:$4 sm:$0xff]   ;;  %v9942_v5 = vld [vmem:[#allocation20 + $0x308] ss:$16 sps:$4 sm:$0xff]   ;;  %v6629_v2 = vrot.slane %v6624_v63, %v10812_v29 }
 0xac8   : > { %7391 = vmatpush2.bf16.msra.mxu0 %v9870_v3  ;;  %v6633_v3 = vrot.slane %v6624_v63, %v10806_v27 }
 0xac9   : > { %7392 = vmatprep.subr.bf16.mxu0 %v9878_v4 }
 0xacc   : > { %7393 = vmatpush2.bf16.msra.mxu0 %v9876_v6 }
 0xacd   : > { %7394 = vmatprep.subr.bf16.mxu0 %v9884_v12 }
 0xad0   : > { %7395 = vmatpush2.bf16.msra.mxu0 %v9882_v8 }
 0xad1   : > { %v9986_v11 = vpop.eup %9985  ;;  %7396 = vmatprep.subr.bf16.mxu0 %v9890_v9 }
 0xad2   : > { %v6486_v10 = vadd.f32 1.0, %v9986_v11 }
 0xad3   : > { %v9988_v18 = vpop.eup %9987 }
 0xad4   : > { %7397 = vmatpush2.bf16.msra.mxu0 %v9888_v14  ;;  %v6487_v17 = vadd.f32 1.0, %v9988_v18  ;;  %v6490_v61 = vmul.f32 %v6486_v10, %v6474_v13 }
 0xad5   : > { %7398 = vmatprep.subr.bf16.mxu0 %v9896_v60 }
 0xad6   : > { %v6491_v21 = vmul.f32 %v6487_v17, %v6475_v15  ;;  %v11154_v50 = vpack.c.bf16 %v6490_v61, %v6490_v61  ;;  %v6641_v17 = vrot.slane %v6624_v63, %v10809_v28 }
 0xad8   : > { %7399 = vmatpush2.bf16.msra.mxu0 %v9894_v16  ;;  %v6495_v22 = vpack.c.bf16 %v6491_v21, %v6491_v21  ;;  %v6637_v16 = vrot.slane %v6624_v63, %v10815_v30 }
 0xada   : > { %7359 = vmatprep.mubr.bf16.mxu1 %v6495_v22 }
 0xadb   : > { %7360 = vmatmul.mubr.bf16.vlgmr.msra.gmra.mxu1 %v11154_v50  ;;  %7401 = vmatmul.mubr.bf16.vlgmr.msra.gmra.mxu0 %v11147_v23  ;;  %v9917_v23 = vld [vmem:[#allocation20 + $0x22c] ss:$16 sps:$4 sm:$0xff]  }
 0xadc   : > { %7410 = vmatpush1.bf16.msra.mxu1 %v9897_v24  ;;  %7441 = vmatprep.mubr.bf16.mxu1 %v6495_v22 }
 0xadd   : > { %7411 = vmatprep.subr.bf16.mxu1 %v9902_v36 }
 0xae0   : > { %7412 = vmatpush1.bf16.msra.mxu1 %v9900_v52 }
 0xae1   : > { %7413 = vmatprep.subr.bf16.mxu1 %v9905_v38 }
 0xae4   : > { %7414 = vmatpush1.bf16.msra.mxu1 %v9903_v19 }
 0xae5   : > { %7415 = vmatprep.subr.bf16.mxu1 %v9908_v42 }
 0xae8   : > { %7416 = vmatpush1.bf16.msra.mxu1 %v9906_v39 }
 0xae9   : > { %7417 = vmatprep.subr.bf16.mxu1 %v9911_v41 }
 0xaec   : > { %7418 = vmatpush1.bf16.msra.mxu1 %v9909_v43 }
 0xaed   : > { %7419 = vmatprep.subr.bf16.mxu1 %v9914_v44 }
 0xaf0   : > { %7420 = vmatpush1.bf16.msra.mxu1 %v9912_v45 }
 0xaf1   : > { %7421 = vmatprep.subr.bf16.mxu1 %v9917_v23 }
 0xaf4   : > { %7422 = vmatpush1.bf16.msra.mxu1 %v9915_v25 }
 0xaf5   : > { %7423 = vmatprep.subr.bf16.mxu1 %v9920_v33 }
 0xaf8   : > { %7424 = vmatpush1.bf16.msra.mxu1 %v9918_v35 }
 0xaf9   : > { %7425 = vmatprep.subr.bf16.mxu1 %v9923_v53 }
 0xafc   : > { %7426 = vmatpush2.bf16.msra.mxu1 %v9921_v46 }
 0xafd   : > { %7427 = vmatprep.subr.bf16.mxu1 %v9926_v54 }
 0xb00   : > { %7428 = vmatpush2.bf16.msra.mxu1 %v9924_v55 }
 0xb01   : > { %7429 = vmatprep.subr.bf16.mxu1 %v9929_v56 }
 0xb04   : > { %7430 = vmatpush2.bf16.msra.mxu1 %v9927_v57 }
 0xb05   : > { %7431 = vmatprep.subr.bf16.mxu1 %v9932_v58 }
 0xb08   : > { %7432 = vmatpush2.bf16.msra.mxu1 %v9930_v49 }
 0xb09   : > { %7433 = vmatprep.subr.bf16.mxu1 %v9935_v51 }
 0xb0c   : > { %7434 = vmatpush2.bf16.msra.mxu1 %v9933_v26 }
 0xb0d   : > { %7435 = vmatprep.subr.bf16.mxu1 %v9938_v62 }
 0xb10   : > { %7436 = vmatpush2.bf16.msra.mxu1 %v9936_v59 }
 0xb11   : > { %7437 = vmatprep.subr.bf16.mxu1 %v9941_v20 }
 0xb14   : > { %7438 = vmatpush2.bf16.msra.mxu1 %v9939_v47 }
 0xb15   : > { %7439 = vmatprep.subr.bf16.mxu1 %v9944_v32 }
 0xb18   : > { %7440 = vmatpush2.bf16.msra.mxu1 %v9942_v5 }
 0xb1b   : > { %7442 = vmatmul.mubr.bf16.vlgmr.msra.gmra.mxu1 %v11154_v50 }
 0xb5b   : > { %v7320_v0 = vpop.f32.mrf.mxu0 }
 0xb5c   : > { %v7321_v4 = vadd.f32 %v7320_v0, %v6629_v2 }
 0xb5d   : > { %v7322_v48 = vpop.f32.mrf.mxu0 }
 0xb5e   : > { %v7323_v8 = vadd.f32 %v7322_v48, %v6633_v3 }
 0xb5f   : > { %v7324_v1 = vpop.f32.mrf.mxu0 }
 0xb61   : > { %v7325_v7 = vpop.f32.mrf.mxu0 }
 0xb9b   : > { %v7361_v6 = vpop.f32.mrf.mxu1  ;;  %v7402_v12 = vpop.f32.mrf.mxu0 }
 0xb9c   : > { %v7362_v9 = vadd.f32 %v7361_v6, %v7321_v4  ;;  %v7403_v61 = vadd.f32 %v7402_v12, %v6637_v16 }
 0xb9d   : > { %v7363_v14 = vpop.f32.mrf.mxu1  ;;  %v7404_v11 = vpop.f32.mrf.mxu0 }
 0xb9e   : > { %v7450_v60 = vadd.f32 %v7362_v9, %v11089_v34  ;;  %v7364_v10 = vadd.f32 %v7363_v14, %v7323_v8  ;;  %v7405_v34 = vadd.f32 %v7404_v11, %v6641_v17 }
 0xb9f   : > { %v7365_v18 = vpop.f32.mrf.mxu1  ;;  %v7406_v13 = vpop.f32.mrf.mxu0 }
 0xba0   : > { %7454 = vst [vmem:[%s614_s4] sm:$0xff] %v7450_v60  ;;  %v7451_v29 = vadd.f32 %v7364_v10, %v11086_v31 }
 0xba1   : > { %v7366_v15 = vpop.f32.mrf.mxu1  ;;  %v7407_v27 = vpop.f32.mrf.mxu0 }
 0xba2   : > { %7455 = vst [vmem:[%s614_s4 + $0x8] sm:$0xff] %v7451_v29 }
 0xbdb   : > { %v7443_v21 = vpop.f32.mrf.mxu1 }
 0xbdc   : > { %v7444_v22 = vadd.f32 %v7443_v21, %v7403_v61 }
 0xbdd   : > { %v7445_v24 = vpop.f32.mrf.mxu1 }
 0xbde   : > { %v7452_v50 = vadd.f32 %v7444_v22, %v11092_v37  ;;  %v7446_v36 = vadd.f32 %v7445_v24, %v7405_v34 }
 0xbdf   : > { %v7447_v31 = vpop.f32.mrf.mxu1 }
 0xbe0   : > { %7456 = vst [vmem:[%s614_s4 + $0x10] sm:$0xff] %v7452_v50  ;;  %v7453_v52 = vadd.f32 %v7446_v36, %v11097_v40 }
 0xbe1   : > { %v7448_v28 = vpop.f32.mrf.mxu1 }
 0xbe2   : > { %7457 = vst [vmem:[%s614_s4 + $0x18] sm:$0xff] %v7453_v52 }
 0xbe3   : > { %10346 = shalt.err (!%p10343_p0)
}
 0xbe4   : > { %s10347_s1 = scalar_lea.hbm %s11173_s17, 512  ;;  %s10351_s7 = scalar_lea.hbm %s11223_s13, 1024 }
 0xbe5   : > { %p10348_p2 = scmp.ne.s32.totalorder %s11173_s17, %s10347_s1  ;;  %p10352_p9 = scmp.lt.s32.totalorder %s11173_s17, %s11223_s13 }
 0xbe6   : > { %p10353_p13 = scmp.lt.s32.totalorder %s10351_s7, %s10347_s1 }
 0xbe7   : > { %p10349_p5 = pnand %p10348_p2, %p11267_p6 }
 0xbe8   : > { %p10354_p1 = por %p10353_p13, %p10352_p9 }
 0xbe9   : > { %p10350_p8 = pneg %p10349_p5 }
 0xbeb   : > { %p10355_p3 = pnand %p10354_p1, %p10350_p8 }
 0xbed   : > { %10358 = shalt.err (!%p10355_p3)
}
 0xbee   : > { %8659 = dma.vmem_to_hbm [thread:$0]  (%p11267_p6), %s7474_s15, 512, %s11173_s17, %s7459_s29  }
 0xbef PF: > { %s7485_s4 = sand.u32 1, %s10409_s25   ;;  %p11268_p11 = scmp.ne.s32.totalorder %s11251_s16, 0 }
 0xbf0   : > { %p11269_p10 = scmp.ge.s32.totalorder %s10421_s28, 2  ;;  %s7486_s5 = scalar_lea.sflag [#allocation4], %s7485_s4 }
 0xbf2   : > { %p8703_p12 = pnand %p11269_p10, %p11268_p11 }
 0xbf4   : > { %p8704_p7 = pneg %p8703_p12 }
 0xbf6   : > { %10404 = dma.done.wait (%p8704_p7), %s7486_s5, 512  }
 0xbf7   : > { %10406 = vsyncadd (%p8704_p7), %s7486_s5, 4294966784  ;;  %p32_p4 = scmp.ge.s32.totalorder %s10668_s18, 4   ;;  %s11270_s25 = smov %s10413_s26 }
 0xbf8   : > { %s11271_s26 = smov %s10417_s27  ;;  %s11272_s27 = smov %s10679_s20 }
 0xbf9   : > { %s11273_s28 = smov %s10668_s18  ;;  %34 = sbr.rel (!%p32_p4) target bundleno = 20 (0x14), region = 165 }
 0xbfe   :  { %7491 = vsyncpa [#allocation3], 1 }
 0xbff   :  { %7493 = vsyncpa [#allocation3 + $0x1], 1 }
 0xc00   :  { %7494 = vsyncpa [#allocation6], 1 }
 0xc01   :  { %7495 = vsyncpa [#allocation9], 1 }
 0xc02   :  { %7496 = vsyncpa [#allocation12], 1 }
 0xc03   :  { %7497 = vsyncpa [#allocation15], 1 }
 0xc04   :  { %7498 = vsyncpa [#allocation18], 1 }
 0xc05   :  { %7499 = vsyncpa [#allocation21], 1 }
 0xc06   :  { %7500 = vsyncpa [#allocation4], 1 }
 0xc07   :  { %7502 = vsyncpa [#allocation4 + $0x1], 1 }

</bundles_post_ra>
